<compile_context>
chip_gen: v6e
topology: v6e:2x2x1
jax: 0.10.0
libtpu: 0.0.40
codegen_flags: <defaults>
</compile_context>

<pallas_src>
import numpy as np
import jax
import jax.numpy as jnp
from jax import lax
from jax.experimental import pallas as pl
from jax.experimental.pallas import tpu as pltpu

# --- model hyperparameters (from the PyTorch source) ---
EMBD_DIM = 16
MAX_LEN = 10
T = MAX_LEN + 2            # 12
RHS_MAX_LEN = 4
VOCAB_SIZE = 14
NUM_HEADS = 4
HEAD_SIZE = 4
HIDDEN = 4 * EMBD_DIM      # 64
MASK_DIAG = T - (RHS_MAX_LEN + 1)   # 7  (tril diagonal offset)
LN_EPS = 1e-5
VPAD = 128                 # lane-dense padded vocab width

# --- consolidated weight slab layout ---
_QW = NUM_HEADS * HEAD_SIZE                 # 16
_QKV_OFF = 0
_PROJ_OFF = 3 * _QW                         # 48
_W1_OFF = _PROJ_OFF + EMBD_DIM              # 64
_WOUT_OFF = _W1_OFF + HIDDEN                # 128
_WMAT_COLS = _WOUT_OFF + VPAD               # 256

# rows of the (16, 128) "vec" slab
_LN1_G, _LN1_B, _LN2_G, _LN2_B, _LNF_G, _LNF_B, _BPROJ, _B2, _B1, _BOUT = range(10)
_VEC_ROWS = 16


def _layernorm(h, g, b):
    mu = jnp.mean(h, axis=-1, keepdims=True)
    var = jnp.mean((h - mu) ** 2, axis=-1, keepdims=True)
    return (h - mu) * lax.rsqrt(var + LN_EPS) * g + b


def gpt_kernel(
    x_ref,       # (Nb, E)          flat activations for this grid step
    bias_ref,    # (Nb, Nb)         additive mask: 0 allowed / -1e30 masked
    wmat_ref,    # (E, 256)         wqkv(48) | wproj(16) | w1(64) | wout_pad(128)
    w2_ref,      # (HIDDEN, E)
    vec_ref,     # (16, 128)        all gain / bias vectors, row-indexed
    out_ref,     # (Nb, VPAD)       lane-dense logits slab
):
    x = x_ref[...]                                  # (Nb, E) f32
    vec = vec_ref[...]                              # (16, 128)
    wmat = wmat_ref[...]                            # (E, 256)
    bias = bias_ref[...]                            # (Nb, Nb)

    def vrow(i, width):
        return vec[i:i + 1, :width]                 # (1, width)

    # ---------------- attention branch ----------------
    h1 = _layernorm(x, vrow(_LN1_G, EMBD_DIM), vrow(_LN1_B, EMBD_DIM))
    # single fused QKV matmul: (Nb,16) @ (16,48)
    qkv = jnp.dot(h1, wmat[:, _QKV_OFF:_PROJ_OFF],
                  preferred_element_type=jnp.float32)          # (Nb, 48)

    # NOTE: intentional fidelity to the PyTorch code: /D**(-0.5) == *sqrt(D), D=EMBD_DIM
    scale = jnp.float32(float(EMBD_DIM) ** 0.5)

    ctxs = []
    for h in range(NUM_HEADS):                       # unrolled at trace time
        qh = qkv[:, h * HEAD_SIZE:(h + 1) * HEAD_SIZE]                       # (Nb, hs)
        kh = qkv[:, _QW + h * HEAD_SIZE:_QW + (h + 1) * HEAD_SIZE]           # (Nb, hs)
        vh = qkv[:, 2 * _QW + h * HEAD_SIZE:2 * _QW + (h + 1) * HEAD_SIZE]   # (Nb, hs)
        # scores over all rows of the step; cross-sample entries masked by `bias`
        wei = lax.dot_general(qh, kh, (((1,), (1,)), ((), ())),
                              preferred_element_type=jnp.float32) * scale + bias  # (Nb, Nb)
        wei = wei - jnp.max(wei, axis=-1, keepdims=True)
        p = jnp.exp(wei)
        p = p * pl.reciprocal(jnp.sum(p, axis=-1, keepdims=True))            # exact recip
        ctxs.append(jnp.dot(p, vh, preferred_element_type=jnp.float32))      # (Nb, hs)

    ctx = jnp.concatenate(ctxs, axis=-1)                                     # (Nb, 16)
    sa = jnp.dot(ctx, wmat[:, _PROJ_OFF:_W1_OFF],
                 preferred_element_type=jnp.float32) + vrow(_BPROJ, EMBD_DIM)
    x = x + sa

    # ---------------- MLP branch ----------------
    h2 = _layernorm(x, vrow(_LN2_G, EMBD_DIM), vrow(_LN2_B, EMBD_DIM))
    m = jnp.dot(h2, wmat[:, _W1_OFF:_WOUT_OFF],
                preferred_element_type=jnp.float32) + vrow(_B1, HIDDEN)
    m = jnp.maximum(m, 0.0)
    m = jnp.dot(m, w2_ref[...],
                preferred_element_type=jnp.float32) + vrow(_B2, EMBD_DIM)
    x = x + m

    # ---------------- final LayerNorm + LM head (lane-dense output) ----------------
    hf = _layernorm(x, vrow(_LNF_G, EMBD_DIM), vrow(_LNF_B, EMBD_DIM))
    logits = jnp.dot(hf, wmat[:, _WOUT_OFF:_WMAT_COLS],
                     preferred_element_type=jnp.float32) + vrow(_BOUT, VPAD)
    out_ref[...] = logits.astype(out_ref.dtype)      # one wide (Nb, 128) store


def _dual_tensorcore():
    """True only on chips with 2 TensorCores (v7x); v5e/v6e are single-TC."""
    try:
        return "v7" in jax.devices()[0].device_kind.lower()
    except Exception:
        return False


def gpt_forward(tokens, params, y=None):
    """tokens: (B, S) int32, S <= T.  Returns (logits (B, S, VOCAB), loss)."""
    B, S = tokens.shape
    assert S <= T, "sequence length must be <= T (positional table size)"

    # --- embedding gathers: wrapper-side plain JAX (tables < 1 KiB, pure glue) ---
    tok_embd = params["tok_emb"][tokens]                       # (B, S, E)
    pos_embd = params["pos_emb"][jnp.arange(S)]                # (S, E)
    embd = (tok_embd + pos_embd[None]).astype(jnp.float32)     # (B, S, E)

    # pad sequence dim to a sublane multiple so the flat (row, E) layout is clean
    Sp = max(8, ((S + 7) // 8) * 8)
    if Sp != S:
        embd = jnp.pad(embd, ((0, 0), (0, Sp - S), (0, 0)))

    # grid: 1 step on single-TC chips; 2 parallel steps only on dual-TC (v7x)
    # with at least ~64 rows of work per core.
    grid_b = 2 if (_dual_tensorcore() and B % 2 == 0 and (B * Sp) // 2 >= 64) else 1
    Bt = B // grid_b
    Nb = Bt * Sp

    x_flat = embd.reshape(B * Sp, EMBD_DIM)                    # (B*Sp, E)

    # --- static additive mask (block-diag per sample + banded causal + key pad) ---
    r = np.arange(Nb)
    t = r % Sp
    blk = r // Sp
    allowed = ((blk[:, None] == blk[None, :])
               & (t[None, :] <= t[:, None] + MASK_DIAG)
               & (t[None, :] < S))
    bias = jnp.asarray(np.where(allowed, 0.0, -1e30).astype(np.float32))   # (Nb, Nb)

    # --- consolidated weight slabs (static wrapper-side prep) ---
    wmat = jnp.zeros((EMBD_DIM, _WMAT_COLS), jnp.float32)
    wmat = wmat.at[:, 0:_QW].set(params["wq"])
    wmat = wmat.at[:, _QW:2 * _QW].set(params["wk"])
    wmat = wmat.at[:, 2 * _QW:3 * _QW].set(params["wv"])
    wmat = wmat.at[:, _PROJ_OFF:_W1_OFF].set(params["wproj"])
    wmat = wmat.at[:, _W1_OFF:_WOUT_OFF].set(params["w1"])
    wmat = wmat.at[:, _WOUT_OFF:_WOUT_OFF + VOCAB_SIZE].set(params["wout"])

    vec = jnp.zeros((_VEC_ROWS, VPAD), jnp.float32)
    vec = vec.at[_LN1_G, :EMBD_DIM].set(params["ln1_g"][0])
    vec = vec.at[_LN1_B, :EMBD_DIM].set(params["ln1_b"][0])
    vec = vec.at[_LN2_G, :EMBD_DIM].set(params["ln2_g"][0])
    vec = vec.at[_LN2_B, :EMBD_DIM].set(params["ln2_b"][0])
    vec = vec.at[_LNF_G, :EMBD_DIM].set(params["lnf_g"][0])
    vec = vec.at[_LNF_B, :EMBD_DIM].set(params["lnf_b"][0])
    vec = vec.at[_BPROJ, :EMBD_DIM].set(params["bproj"][0])
    vec = vec.at[_B2, :EMBD_DIM].set(params["b2"][0])
    vec = vec.at[_B1, :HIDDEN].set(params["b1"][0])
    vec = vec.at[_BOUT, :VOCAB_SIZE].set(params["bout"][0])

    w2 = params["w2"]                                          # (HIDDEN, E)

    out_flat = pl.pallas_call(
        gpt_kernel,
        out_shape=jax.ShapeDtypeStruct((B * Sp, VPAD), jnp.float32),
        grid=(grid_b,),
        in_specs=[
            pl.BlockSpec((Nb, EMBD_DIM), lambda i: (i, 0)),
            pl.BlockSpec((Nb, Nb), lambda i: (0, 0)),
            pl.BlockSpec((EMBD_DIM, _WMAT_COLS), lambda i: (0, 0)),
            pl.BlockSpec((HIDDEN, EMBD_DIM), lambda i: (0, 0)),
            pl.BlockSpec((_VEC_ROWS, VPAD), lambda i: (0, 0)),
        ],
        out_specs=pl.BlockSpec((Nb, VPAD), lambda i: (i, 0)),
        compiler_params=pltpu.CompilerParams(dimension_semantics=("parallel",)),
    )(x_flat, bias, wmat, w2, vec)

    logits = out_flat.reshape(B, Sp, VPAD)[:, :S, :VOCAB_SIZE]

    if y is None:
        loss = None
    else:  # cross-entropy, wrapper-side plain JAX (matches torch F.cross_entropy)
        logp = jax.nn.log_softmax(logits.reshape(-1, VOCAB_SIZE), axis=-1)
        loss = -jnp.mean(jnp.take_along_axis(logp, y.reshape(-1)[:, None], axis=-1))
    return logits, loss


# ------------------------- parameter init (deterministic) -------------------------
def init_params(key):
    ks = jax.random.split(key, 16)
    s = 0.02

    tok_emb = jax.random.normal(ks[0], (VOCAB_SIZE, EMBD_DIM), jnp.float32)
    tok_emb = tok_emb.at[13].set(0.0)          # padding_idx=13 row zeroed (as nn.Embedding does)
    pos_emb = jax.random.normal(ks[1], (T, EMBD_DIM), jnp.float32)

    def lin(k, fan_in, fan_out):
        kw, kb = jax.random.split(k)
        w = jax.random.normal(kw, (fan_in, fan_out), jnp.float32) * s
        b = jax.random.normal(kb, (1, fan_out), jnp.float32) * s
        return w, b

    wq = jax.random.normal(ks[2], (EMBD_DIM, NUM_HEADS * HEAD_SIZE), jnp.float32) * s
    wk = jax.random.normal(ks[3], (EMBD_DIM, NUM_HEADS * HEAD_SIZE), jnp.float32) * s
    wv = jax.random.normal(ks[4], (EMBD_DIM, NUM_HEADS * HEAD_SIZE), jnp.float32) * s
    wproj, bproj = lin(ks[5], NUM_HEADS * HEAD_SIZE, EMBD_DIM)
    w1, b1 = lin(ks[6], EMBD_DIM, HIDDEN)
    w2, b2 = lin(ks[7], HIDDEN, EMBD_DIM)
    wout, bout = lin(ks[8], EMBD_DIM, VOCAB_SIZE)

    ones = lambda: jnp.ones((1, EMBD_DIM), jnp.float32)
    zeros = lambda: jnp.zeros((1, EMBD_DIM), jnp.float32)

    return dict(
        tok_emb=tok_emb, pos_emb=pos_emb,
        ln1_g=ones(), ln1_b=zeros(),
        wq=wq, wk=wk, wv=wv, wproj=wproj, bproj=bproj,
        ln2_g=ones(), ln2_b=zeros(),
        w1=w1, b1=b1, w2=w2, b2=b2,
        lnf_g=ones(), lnf_b=zeros(),
        wout=wout, bout=bout,
    )


# ------------------------- pure-JAX reference (mirrors PyTorch math) -------------------------
def reference_forward(tokens, p):
    B, S = tokens.shape
    x = p["tok_emb"][tokens] + p["pos_emb"][jnp.arange(S)][None]

    def ln(h, g, b):
        mu = jnp.mean(h, axis=-1, keepdims=True)
        var = jnp.mean((h - mu) ** 2, axis=-1, keepdims=True)
        return (h - mu) / jnp.sqrt(var + LN_EPS) * g + b

    h1 = ln(x, p["ln1_g"][0], p["ln1_b"][0])
    q = h1 @ p["wq"]; k = h1 @ p["wk"]; v = h1 @ p["wv"]
    row = jnp.arange(S)[:, None]; col = jnp.arange(S)[None, :]
    allowed = col <= row + MASK_DIAG
    scale = float(EMBD_DIM) ** 0.5
    outs = []
    for h in range(NUM_HEADS):
        sl = slice(h * HEAD_SIZE, (h + 1) * HEAD_SIZE)
        wei = jnp.einsum("bqd,bkd->bqk", q[..., sl], k[..., sl]) * scale
        wei = jnp.where(allowed[None], wei, -jnp.inf)
        wei = jax.nn.softmax(wei, axis=-1)
        outs.append(jnp.einsum("bqk,bkd->bqd", wei, v[..., sl]))
    sa = jnp.concatenate(outs, axis=-1) @ p["wproj"] + p["bproj"][0]
    x = x + sa
    h2 = ln(x, p["ln2_g"][0], p["ln2_b"][0])
    m = jnp.maximum(h2 @ p["w1"] + p["b1"][0], 0.0) @ p["w2"] + p["b2"][0]
    x = x + m
    hf = ln(x, p["lnf_g"][0], p["lnf_b"][0])
    return hf @ p["wout"] + p["bout"][0]


if __name__ == "__main__":
    key = jax.random.PRNGKey(0)
    kp, kx = jax.random.split(key)
    params = init_params(kp)

    B, S = 8, T   # S = 12 exercises the banded causal mask
    tokens = jax.random.randint(kx, (B, S), 0, VOCAB_SIZE, dtype=jnp.int32)

    logits, loss = gpt_forward(tokens, params)
    logits = jax.block_until_ready(logits)

    ref = reference_forward(tokens, params)
    np.testing.assert_allclose(np.asarray(logits), np.asarray(ref), rtol=2e-4, atol=5e-5)

    print("KERNEL_OK")
</pallas_src>

<mosaic_0001>
module attributes {stable_mosaic.version = 11 : i64} {
  func.func @gpt_kernel(%arg0: i32, %arg1: memref<128x16xf32, #tpu.memory_space<vmem>>, %arg2: memref<128x128xf32, #tpu.memory_space<vmem>>, %arg3: memref<16x256xf32, #tpu.memory_space<vmem>>, %arg4: memref<64x16xf32, #tpu.memory_space<vmem>>, %arg5: memref<16x128xf32, #tpu.memory_space<vmem>>, %arg6: memref<128x128xf32, #tpu.memory_space<vmem>>) attributes {dimension_semantics = [#tpu.dimension_semantics<parallel>], iteration_bounds = array<i64: 1>, scalar_prefetch = 0 : i64, scratch_operands = 0 : i64, tpu.core_type = #tpu.core_type<tc>, window_params = [{transform_indices = @transform_0, window_bounds = array<i64: 128, 16>}, {pipeline_mode = #tpu.pipeline_mode<synchronous>, transform_indices = @transform_1, window_bounds = array<i64: 128, 128>}, {pipeline_mode = #tpu.pipeline_mode<synchronous>, transform_indices = @transform_2, window_bounds = array<i64: 16, 256>}, {pipeline_mode = #tpu.pipeline_mode<synchronous>, transform_indices = @transform_3, window_bounds = array<i64: 64, 16>}, {pipeline_mode = #tpu.pipeline_mode<synchronous>, transform_indices = @transform_4, window_bounds = array<i64: 16, 128>}, {transform_indices = @transform_5, window_bounds = array<i64: 128, 128>}]} {
    %c0 = arith.constant 0 : index
    %c0_0 = arith.constant 0 : index
    %0 = vector.load %arg1[%c0, %c0_0] : memref<128x16xf32, #tpu.memory_space<vmem>>, vector<128x16xf32>
    %c0_1 = arith.constant 0 : index
    %c0_2 = arith.constant 0 : index
    %1 = vector.load %arg5[%c0_1, %c0_2] : memref<16x128xf32, #tpu.memory_space<vmem>>, vector<16x128xf32>
    %c0_3 = arith.constant 0 : index
    %c0_4 = arith.constant 0 : index
    %2 = vector.load %arg3[%c0_3, %c0_4] : memref<16x256xf32, #tpu.memory_space<vmem>>, vector<16x256xf32>
    %c0_5 = arith.constant 0 : index
    %c0_6 = arith.constant 0 : index
    %3 = vector.load %arg2[%c0_5, %c0_6] : memref<128x128xf32, #tpu.memory_space<vmem>>, vector<128x128xf32>
    %4 = vector.extract_strided_slice %1 {offsets = [0, 0], sizes = [1, 16], strides = [1, 1]} : vector<16x128xf32> to vector<1x16xf32>
    %5 = vector.extract_strided_slice %1 {offsets = [1, 0], sizes = [1, 16], strides = [1, 1]} : vector<16x128xf32> to vector<1x16xf32>
    %cst = arith.constant dense<0.000000e+00> : vector<128xf32>
    %6 = vector.multi_reduction <add>, %0, %cst [1] : vector<128x16xf32> to vector<128xf32>
    %7 = vector.shape_cast %6 : vector<128xf32> to vector<128x1xf32>
    %cst_7 = arith.constant 1.600000e+01 : f32
    %8 = vector.broadcast %cst_7 : f32 to vector<128x1xf32>
    %9 = arith.divf %7, %8 : vector<128x1xf32>
    %10 = vector.broadcast %9 : vector<128x1xf32> to vector<128x16xf32>
    %11 = arith.subf %0, %10 : vector<128x16xf32>
    %12 = arith.mulf %11, %11 : vector<128x16xf32>
    %cst_8 = arith.constant dense<0.000000e+00> : vector<128xf32>
    %13 = vector.multi_reduction <add>, %12, %cst_8 [1] : vector<128x16xf32> to vector<128xf32>
    %14 = vector.shape_cast %13 : vector<128xf32> to vector<128x1xf32>
    %cst_9 = arith.constant 1.600000e+01 : f32
    %15 = vector.broadcast %cst_9 : f32 to vector<128x1xf32>
    %16 = arith.divf %14, %15 : vector<128x1xf32>
    %17 = vector.broadcast %9 : vector<128x1xf32> to vector<128x16xf32>
    %18 = arith.subf %0, %17 : vector<128x16xf32>
    %cst_10 = arith.constant 9.99999974E-6 : f32
    %19 = vector.broadcast %cst_10 : f32 to vector<128x1xf32>
    %20 = arith.addf %16, %19 : vector<128x1xf32>
    %21 = math.rsqrt %20 : vector<128x1xf32>
    %22 = vector.broadcast %21 : vector<128x1xf32> to vector<128x16xf32>
    %23 = arith.mulf %18, %22 : vector<128x16xf32>
    %24 = vector.broadcast %4 : vector<1x16xf32> to vector<128x16xf32>
    %25 = arith.mulf %23, %24 : vector<128x16xf32>
    %26 = vector.broadcast %5 : vector<1x16xf32> to vector<128x16xf32>
    %27 = arith.addf %25, %26 : vector<128x16xf32>
    %28 = vector.extract_strided_slice %2 {offsets = [0, 0], sizes = [16, 48], strides = [1, 1]} : vector<16x256xf32> to vector<16x48xf32>
    %cst_11 = arith.constant dense<0.000000e+00> : vector<128x48xf32>
    %29 = tpu.matmul %27, %28, %cst_11 {dimension_numbers = #tpu.dot_dimension_numbers<[1], [0], [0], [1], [0, 0, 1, 1], [], []>} : vector<128x16xf32>, vector<16x48xf32>, vector<128x48xf32> -> vector<128x48xf32>
    %30 = vector.extract_strided_slice %29 {offsets = [0, 0], sizes = [128, 4], strides = [1, 1]} : vector<128x48xf32> to vector<128x4xf32>
    %31 = vector.extract_strided_slice %29 {offsets = [0, 16], sizes = [128, 4], strides = [1, 1]} : vector<128x48xf32> to vector<128x4xf32>
    %32 = vector.extract_strided_slice %29 {offsets = [0, 32], sizes = [128, 4], strides = [1, 1]} : vector<128x48xf32> to vector<128x4xf32>
    %cst_12 = arith.constant dense<0.000000e+00> : vector<128x128xf32>
    %33 = tpu.matmul %30, %31, %cst_12 {dimension_numbers = #tpu.dot_dimension_numbers<[1], [1], [0], [0], [0, 0, 1, 0], [], []>} : vector<128x4xf32>, vector<128x4xf32>, vector<128x128xf32> -> vector<128x128xf32>
    %cst_13 = arith.constant 4.000000e+00 : f32
    %34 = vector.broadcast %cst_13 : f32 to vector<128x128xf32>
    %35 = arith.mulf %33, %34 : vector<128x128xf32>
    %36 = arith.addf %35, %3 : vector<128x128xf32>
    %cst_14 = arith.constant dense<0xFF800000> : vector<128xf32>
    %37 = vector.multi_reduction <maximumf>, %36, %cst_14 [1] : vector<128x128xf32> to vector<128xf32>
    %38 = vector.shape_cast %37 : vector<128xf32> to vector<128x1xf32>
    %39 = vector.broadcast %38 : vector<128x1xf32> to vector<128x128xf32>
    %40 = arith.subf %36, %39 : vector<128x128xf32>
    %41 = math.exp %40 : vector<128x128xf32>
    %cst_15 = arith.constant dense<0.000000e+00> : vector<128xf32>
    %42 = vector.multi_reduction <add>, %41, %cst_15 [1] : vector<128x128xf32> to vector<128xf32>
    %43 = vector.shape_cast %42 : vector<128xf32> to vector<128x1xf32>
    %44 = tpu.reciprocal %43 : vector<128x1xf32> -> vector<128x1xf32>
    %45 = vector.broadcast %44 : vector<128x1xf32> to vector<128x128xf32>
    %46 = arith.mulf %41, %45 : vector<128x128xf32>
    %cst_16 = arith.constant dense<0.000000e+00> : vector<128x4xf32>
    %47 = tpu.matmul %46, %32, %cst_16 {dimension_numbers = #tpu.dot_dimension_numbers<[1], [0], [0], [1], [0, 0, 1, 1], [], []>} : vector<128x128xf32>, vector<128x4xf32>, vector<128x4xf32> -> vector<128x4xf32>
    %48 = vector.extract_strided_slice %29 {offsets = [0, 4], sizes = [128, 4], strides = [1, 1]} : vector<128x48xf32> to vector<128x4xf32>
    %49 = vector.extract_strided_slice %29 {offsets = [0, 20], sizes = [128, 4], strides = [1, 1]} : vector<128x48xf32> to vector<128x4xf32>
    %50 = vector.extract_strided_slice %29 {offsets = [0, 36], sizes = [128, 4], strides = [1, 1]} : vector<128x48xf32> to vector<128x4xf32>
    %cst_17 = arith.constant dense<0.000000e+00> : vector<128x128xf32>
    %51 = tpu.matmul %48, %49, %cst_17 {dimension_numbers = #tpu.dot_dimension_numbers<[1], [1], [0], [0], [0, 0, 1, 0], [], []>} : vector<128x4xf32>, vector<128x4xf32>, vector<128x128xf32> -> vector<128x128xf32>
    %cst_18 = arith.constant 4.000000e+00 : f32
    %52 = vector.broadcast %cst_18 : f32 to vector<128x128xf32>
    %53 = arith.mulf %51, %52 : vector<128x128xf32>
    %54 = arith.addf %53, %3 : vector<128x128xf32>
    %cst_19 = arith.constant dense<0xFF800000> : vector<128xf32>
    %55 = vector.multi_reduction <maximumf>, %54, %cst_19 [1] : vector<128x128xf32> to vector<128xf32>
    %56 = vector.shape_cast %55 : vector<128xf32> to vector<128x1xf32>
    %57 = vector.broadcast %56 : vector<128x1xf32> to vector<128x128xf32>
    %58 = arith.subf %54, %57 : vector<128x128xf32>
    %59 = math.exp %58 : vector<128x128xf32>
    %cst_20 = arith.constant dense<0.000000e+00> : vector<128xf32>
    %60 = vector.multi_reduction <add>, %59, %cst_20 [1] : vector<128x128xf32> to vector<128xf32>
    %61 = vector.shape_cast %60 : vector<128xf32> to vector<128x1xf32>
    %62 = tpu.reciprocal %61 : vector<128x1xf32> -> vector<128x1xf32>
    %63 = vector.broadcast %62 : vector<128x1xf32> to vector<128x128xf32>
    %64 = arith.mulf %59, %63 : vector<128x128xf32>
    %cst_21 = arith.constant dense<0.000000e+00> : vector<128x4xf32>
    %65 = tpu.matmul %64, %50, %cst_21 {dimension_numbers = #tpu.dot_dimension_numbers<[1], [0], [0], [1], [0, 0, 1, 1], [], []>} : vector<128x128xf32>, vector<128x4xf32>, vector<128x4xf32> -> vector<128x4xf32>
    %66 = vector.extract_strided_slice %29 {offsets = [0, 8], sizes = [128, 4], strides = [1, 1]} : vector<128x48xf32> to vector<128x4xf32>
    %67 = vector.extract_strided_slice %29 {offsets = [0, 24], sizes = [128, 4], strides = [1, 1]} : vector<128x48xf32> to vector<128x4xf32>
    %68 = vector.extract_strided_slice %29 {offsets = [0, 40], sizes = [128, 4], strides = [1, 1]} : vector<128x48xf32> to vector<128x4xf32>
    %cst_22 = arith.constant dense<0.000000e+00> : vector<128x128xf32>
    %69 = tpu.matmul %66, %67, %cst_22 {dimension_numbers = #tpu.dot_dimension_numbers<[1], [1], [0], [0], [0, 0, 1, 0], [], []>} : vector<128x4xf32>, vector<128x4xf32>, vector<128x128xf32> -> vector<128x128xf32>
    %cst_23 = arith.constant 4.000000e+00 : f32
    %70 = vector.broadcast %cst_23 : f32 to vector<128x128xf32>
    %71 = arith.mulf %69, %70 : vector<128x128xf32>
    %72 = arith.addf %71, %3 : vector<128x128xf32>
    %cst_24 = arith.constant dense<0xFF800000> : vector<128xf32>
    %73 = vector.multi_reduction <maximumf>, %72, %cst_24 [1] : vector<128x128xf32> to vector<128xf32>
    %74 = vector.shape_cast %73 : vector<128xf32> to vector<128x1xf32>
    %75 = vector.broadcast %74 : vector<128x1xf32> to vector<128x128xf32>
    %76 = arith.subf %72, %75 : vector<128x128xf32>
    %77 = math.exp %76 : vector<128x128xf32>
    %cst_25 = arith.constant dense<0.000000e+00> : vector<128xf32>
    %78 = vector.multi_reduction <add>, %77, %cst_25 [1] : vector<128x128xf32> to vector<128xf32>
    %79 = vector.shape_cast %78 : vector<128xf32> to vector<128x1xf32>
    %80 = tpu.reciprocal %79 : vector<128x1xf32> -> vector<128x1xf32>
    %81 = vector.broadcast %80 : vector<128x1xf32> to vector<128x128xf32>
    %82 = arith.mulf %77, %81 : vector<128x128xf32>
    %cst_26 = arith.constant dense<0.000000e+00> : vector<128x4xf32>
    %83 = tpu.matmul %82, %68, %cst_26 {dimension_numbers = #tpu.dot_dimension_numbers<[1], [0], [0], [1], [0, 0, 1, 1], [], []>} : vector<128x128xf32>, vector<128x4xf32>, vector<128x4xf32> -> vector<128x4xf32>
    %84 = vector.extract_strided_slice %29 {offsets = [0, 12], sizes = [128, 4], strides = [1, 1]} : vector<128x48xf32> to vector<128x4xf32>
    %85 = vector.extract_strided_slice %29 {offsets = [0, 28], sizes = [128, 4], strides = [1, 1]} : vector<128x48xf32> to vector<128x4xf32>
    %86 = vector.extract_strided_slice %29 {offsets = [0, 44], sizes = [128, 4], strides = [1, 1]} : vector<128x48xf32> to vector<128x4xf32>
    %cst_27 = arith.constant dense<0.000000e+00> : vector<128x128xf32>
    %87 = tpu.matmul %84, %85, %cst_27 {dimension_numbers = #tpu.dot_dimension_numbers<[1], [1], [0], [0], [0, 0, 1, 0], [], []>} : vector<128x4xf32>, vector<128x4xf32>, vector<128x128xf32> -> vector<128x128xf32>
    %cst_28 = arith.constant 4.000000e+00 : f32
    %88 = vector.broadcast %cst_28 : f32 to vector<128x128xf32>
    %89 = arith.mulf %87, %88 : vector<128x128xf32>
    %90 = arith.addf %89, %3 : vector<128x128xf32>
    %cst_29 = arith.constant dense<0xFF800000> : vector<128xf32>
    %91 = vector.multi_reduction <maximumf>, %90, %cst_29 [1] : vector<128x128xf32> to vector<128xf32>
    %92 = vector.shape_cast %91 : vector<128xf32> to vector<128x1xf32>
    %93 = vector.broadcast %92 : vector<128x1xf32> to vector<128x128xf32>
    %94 = arith.subf %90, %93 : vector<128x128xf32>
    %95 = math.exp %94 : vector<128x128xf32>
    %cst_30 = arith.constant dense<0.000000e+00> : vector<128xf32>
    %96 = vector.multi_reduction <add>, %95, %cst_30 [1] : vector<128x128xf32> to vector<128xf32>
    %97 = vector.shape_cast %96 : vector<128xf32> to vector<128x1xf32>
    %98 = tpu.reciprocal %97 : vector<128x1xf32> -> vector<128x1xf32>
    %99 = vector.broadcast %98 : vector<128x1xf32> to vector<128x128xf32>
    %100 = arith.mulf %95, %99 : vector<128x128xf32>
    %cst_31 = arith.constant dense<0.000000e+00> : vector<128x4xf32>
    %101 = tpu.matmul %100, %86, %cst_31 {dimension_numbers = #tpu.dot_dimension_numbers<[1], [0], [0], [1], [0, 0, 1, 1], [], []>} : vector<128x128xf32>, vector<128x4xf32>, vector<128x4xf32> -> vector<128x4xf32>
    %102 = tpu.concatenate %47, %65, %83, %101 in 1 : vector<128x4xf32>, vector<128x4xf32>, vector<128x4xf32>, vector<128x4xf32> -> vector<128x16xf32>
    %103 = vector.extract_strided_slice %2 {offsets = [0, 48], sizes = [16, 16], strides = [1, 1]} : vector<16x256xf32> to vector<16x16xf32>
    %cst_32 = arith.constant dense<0.000000e+00> : vector<128x16xf32>
    %104 = tpu.matmul %102, %103, %cst_32 {dimension_numbers = #tpu.dot_dimension_numbers<[1], [0], [0], [1], [0, 0, 1, 1], [], []>} : vector<128x16xf32>, vector<16x16xf32>, vector<128x16xf32> -> vector<128x16xf32>
    %105 = vector.extract_strided_slice %1 {offsets = [6, 0], sizes = [1, 16], strides = [1, 1]} : vector<16x128xf32> to vector<1x16xf32>
    %106 = vector.broadcast %105 : vector<1x16xf32> to vector<128x16xf32>
    %107 = arith.addf %104, %106 : vector<128x16xf32>
    %108 = arith.addf %0, %107 : vector<128x16xf32>
    %109 = vector.extract_strided_slice %1 {offsets = [2, 0], sizes = [1, 16], strides = [1, 1]} : vector<16x128xf32> to vector<1x16xf32>
    %110 = vector.extract_strided_slice %1 {offsets = [3, 0], sizes = [1, 16], strides = [1, 1]} : vector<16x128xf32> to vector<1x16xf32>
    %cst_33 = arith.constant dense<0.000000e+00> : vector<128xf32>
    %111 = vector.multi_reduction <add>, %108, %cst_33 [1] : vector<128x16xf32> to vector<128xf32>
    %112 = vector.shape_cast %111 : vector<128xf32> to vector<128x1xf32>
    %cst_34 = arith.constant 1.600000e+01 : f32
    %113 = vector.broadcast %cst_34 : f32 to vector<128x1xf32>
    %114 = arith.divf %112, %113 : vector<128x1xf32>
    %115 = vector.broadcast %114 : vector<128x1xf32> to vector<128x16xf32>
    %116 = arith.subf %108, %115 : vector<128x16xf32>
    %117 = arith.mulf %116, %116 : vector<128x16xf32>
    %cst_35 = arith.constant dense<0.000000e+00> : vector<128xf32>
    %118 = vector.multi_reduction <add>, %117, %cst_35 [1] : vector<128x16xf32> to vector<128xf32>
    %119 = vector.shape_cast %118 : vector<128xf32> to vector<128x1xf32>
    %cst_36 = arith.constant 1.600000e+01 : f32
    %120 = vector.broadcast %cst_36 : f32 to vector<128x1xf32>
    %121 = arith.divf %119, %120 : vector<128x1xf32>
    %122 = vector.broadcast %114 : vector<128x1xf32> to vector<128x16xf32>
    %123 = arith.subf %108, %122 : vector<128x16xf32>
    %cst_37 = arith.constant 9.99999974E-6 : f32
    %124 = vector.broadcast %cst_37 : f32 to vector<128x1xf32>
    %125 = arith.addf %121, %124 : vector<128x1xf32>
    %126 = math.rsqrt %125 : vector<128x1xf32>
    %127 = vector.broadcast %126 : vector<128x1xf32> to vector<128x16xf32>
    %128 = arith.mulf %123, %127 : vector<128x16xf32>
    %129 = vector.broadcast %109 : vector<1x16xf32> to vector<128x16xf32>
    %130 = arith.mulf %128, %129 : vector<128x16xf32>
    %131 = vector.broadcast %110 : vector<1x16xf32> to vector<128x16xf32>
    %132 = arith.addf %130, %131 : vector<128x16xf32>
    %133 = vector.extract_strided_slice %2 {offsets = [0, 64], sizes = [16, 64], strides = [1, 1]} : vector<16x256xf32> to vector<16x64xf32>
    %cst_38 = arith.constant dense<0.000000e+00> : vector<128x64xf32>
    %134 = tpu.matmul %132, %133, %cst_38 {dimension_numbers = #tpu.dot_dimension_numbers<[1], [0], [0], [1], [0, 0, 1, 1], [], []>} : vector<128x16xf32>, vector<16x64xf32>, vector<128x64xf32> -> vector<128x64xf32>
    %135 = vector.extract_strided_slice %1 {offsets = [8, 0], sizes = [1, 64], strides = [1, 1]} : vector<16x128xf32> to vector<1x64xf32>
    %136 = vector.broadcast %135 : vector<1x64xf32> to vector<128x64xf32>
    %137 = arith.addf %134, %136 : vector<128x64xf32>
    %cst_39 = arith.constant 0.000000e+00 : f32
    %138 = vector.broadcast %cst_39 : f32 to vector<128x64xf32>
    %139 = arith.maximumf %137, %138 : vector<128x64xf32>
    %c0_40 = arith.constant 0 : index
    %c0_41 = arith.constant 0 : index
    %140 = vector.load %arg4[%c0_40, %c0_41] : memref<64x16xf32, #tpu.memory_space<vmem>>, vector<64x16xf32>
    %cst_42 = arith.constant dense<0.000000e+00> : vector<128x16xf32>
    %141 = tpu.matmul %139, %140, %cst_42 {dimension_numbers = #tpu.dot_dimension_numbers<[1], [0], [0], [1], [0, 0, 1, 1], [], []>} : vector<128x64xf32>, vector<64x16xf32>, vector<128x16xf32> -> vector<128x16xf32>
    %142 = vector.extract_strided_slice %1 {offsets = [7, 0], sizes = [1, 16], strides = [1, 1]} : vector<16x128xf32> to vector<1x16xf32>
    %143 = vector.broadcast %142 : vector<1x16xf32> to vector<128x16xf32>
    %144 = arith.addf %141, %143 : vector<128x16xf32>
    %145 = arith.addf %108, %144 : vector<128x16xf32>
    %146 = vector.extract_strided_slice %1 {offsets = [4, 0], sizes = [1, 16], strides = [1, 1]} : vector<16x128xf32> to vector<1x16xf32>
    %147 = vector.extract_strided_slice %1 {offsets = [5, 0], sizes = [1, 16], strides = [1, 1]} : vector<16x128xf32> to vector<1x16xf32>
    %cst_43 = arith.constant dense<0.000000e+00> : vector<128xf32>
    %148 = vector.multi_reduction <add>, %145, %cst_43 [1] : vector<128x16xf32> to vector<128xf32>
    %149 = vector.shape_cast %148 : vector<128xf32> to vector<128x1xf32>
    %cst_44 = arith.constant 1.600000e+01 : f32
    %150 = vector.broadcast %cst_44 : f32 to vector<128x1xf32>
    %151 = arith.divf %149, %150 : vector<128x1xf32>
    %152 = vector.broadcast %151 : vector<128x1xf32> to vector<128x16xf32>
    %153 = arith.subf %145, %152 : vector<128x16xf32>
    %154 = arith.mulf %153, %153 : vector<128x16xf32>
    %cst_45 = arith.constant dense<0.000000e+00> : vector<128xf32>
    %155 = vector.multi_reduction <add>, %154, %cst_45 [1] : vector<128x16xf32> to vector<128xf32>
    %156 = vector.shape_cast %155 : vector<128xf32> to vector<128x1xf32>
    %cst_46 = arith.constant 1.600000e+01 : f32
    %157 = vector.broadcast %cst_46 : f32 to vector<128x1xf32>
    %158 = arith.divf %156, %157 : vector<128x1xf32>
    %159 = vector.broadcast %151 : vector<128x1xf32> to vector<128x16xf32>
    %160 = arith.subf %145, %159 : vector<128x16xf32>
    %cst_47 = arith.constant 9.99999974E-6 : f32
    %161 = vector.broadcast %cst_47 : f32 to vector<128x1xf32>
    %162 = arith.addf %158, %161 : vector<128x1xf32>
    %163 = math.rsqrt %162 : vector<128x1xf32>
    %164 = vector.broadcast %163 : vector<128x1xf32> to vector<128x16xf32>
    %165 = arith.mulf %160, %164 : vector<128x16xf32>
    %166 = vector.broadcast %146 : vector<1x16xf32> to vector<128x16xf32>
    %167 = arith.mulf %165, %166 : vector<128x16xf32>
    %168 = vector.broadcast %147 : vector<1x16xf32> to vector<128x16xf32>
    %169 = arith.addf %167, %168 : vector<128x16xf32>
    %170 = vector.extract_strided_slice %2 {offsets = [0, 128], sizes = [16, 128], strides = [1, 1]} : vector<16x256xf32> to vector<16x128xf32>
    %cst_48 = arith.constant dense<0.000000e+00> : vector<128x128xf32>
    %171 = tpu.matmul %169, %170, %cst_48 {dimension_numbers = #tpu.dot_dimension_numbers<[1], [0], [0], [1], [0, 0, 1, 1], [], []>} : vector<128x16xf32>, vector<16x128xf32>, vector<128x128xf32> -> vector<128x128xf32>
    %172 = vector.extract_strided_slice %1 {offsets = [9, 0], sizes = [1, 128], strides = [1, 1]} : vector<16x128xf32> to vector<1x128xf32>
    %173 = vector.broadcast %172 : vector<1x128xf32> to vector<128x128xf32>
    %174 = arith.addf %171, %173 : vector<128x128xf32>
    %c0_49 = arith.constant 0 : index
    %c0_50 = arith.constant 0 : index
    %175 = vector.load %arg6[%c0_49, %c0_50] : memref<128x128xf32, #tpu.memory_space<vmem>>, vector<128x128xf32>
    tpu.vector_store %arg6[%c0_49, %c0_50], %174 {strides = array<i32>} : memref<128x128xf32, #tpu.memory_space<vmem>>, vector<128x128xf32>,
    return
  }
  func.func @transform_0(%arg0: i32) -> (i32, i32) {
    %c0_i32 = arith.constant 0 : i32
    %c0_i32_0 = arith.constant 0 : i32
    return %arg0, %c0_i32 : i32, i32
  }
  func.func @transform_1(%arg0: i32) -> (i32, i32) {
    %c0_i32 = arith.constant 0 : i32
    %c0_i32_0 = arith.constant 0 : i32
    %c0_i32_1 = arith.constant 0 : i32
    return %c0_i32, %c0_i32_0 : i32, i32
  }
  func.func @transform_2(%arg0: i32) -> (i32, i32) {
    %c0_i32 = arith.constant 0 : i32
    %c0_i32_0 = arith.constant 0 : i32
    %c0_i32_1 = arith.constant 0 : i32
    return %c0_i32, %c0_i32_0 : i32, i32
  }
  func.func @transform_3(%arg0: i32) -> (i32, i32) {
    %c0_i32 = arith.constant 0 : i32
    %c0_i32_0 = arith.constant 0 : i32
    %c0_i32_1 = arith.constant 0 : i32
    return %c0_i32, %c0_i32_0 : i32, i32
  }
  func.func @transform_4(%arg0: i32) -> (i32, i32) {
    %c0_i32 = arith.constant 0 : i32
    %c0_i32_0 = arith.constant 0 : i32
    %c0_i32_1 = arith.constant 0 : i32
    return %c0_i32, %c0_i32_0 : i32, i32
  }
  func.func @transform_5(%arg0: i32) -> (i32, i32) {
    %c0_i32 = arith.constant 0 : i32
    %c0_i32_0 = arith.constant 0 : i32
    return %arg0, %c0_i32 : i32, i32
  }
}

</mosaic_0001>

<bundles_post_ra>
// kernel: tpu_custom_call.1
= control target key start
LH: loop header
LB: loop body
LE: loop exit
PB: predicated region body
PF: predicated region fallthrough
CT: control target
= control target key end

     0   :  { %vm59_vm0 = vcmask 130048   ;;  %s8976_s0 = inlined_call_operand.vmem [shape: f32[128,16], index: 0, kind: input, shape index: {}]   ;;  %s8977_s1 = inlined_call_operand.vmem [shape: f32[128,128], index: 1, kind: input, shape index: {}]   ;;  %s8978_s2 = inlined_call_operand.vmem [shape: f32[16,256], index: 2, kind: input, shape index: {}]   ;;  %s8979_s3 = inlined_call_operand.vmem [shape: f32[64,16], index: 3, kind: input, shape index: {}]   ;;  %s8980_s4 = inlined_call_operand.vmem [shape: f32[16,128], index: 4, kind: input, shape index: {}]   ;;  %s8981_s5 = inlined_call_operand.hbm [shape: f32[128,128], index: 5, kind: output, shape index: {}]  }
   0x1   :  { %v21_v0 = vld [vmem:[%s8976_s0] sm:$0xff]  ;;  %v23_v1 = vld [vmem:[%s8976_s0 + $0x10] sm:$0xff]  ;;  %v22_v2 = vld [vmem:[%s8976_s0 + $0x8] sm:$0xff] }
   0x2   :  { %v60_v3 = vsel %vm59_vm0, %v21_v0, 0.0  ;;  %v66_v4 = vsel %vm59_vm0, %v23_v1, 0.0  ;;  %v24_v5 = vld [vmem:[%s8976_s0 + $0x18] sm:$0xff]  ;;  %v63_v6 = vsel %vm59_vm0, %v22_v2, 0.0  ;;  %v25_v8 = vld [vmem:[%s8976_s0 + $0x20] sm:$0xff]  ;;  %v26_v9 = vld [vmem:[%s8976_s0 + $0x28] sm:$0xff] }
   0x3   :  { %61 = vadd.xlane.f32.xlu0 %v60_v3  ;;  %67 = vadd.xlane.f32.xlu1 %v66_v4  ;;  %v69_v7 = vsel %vm59_vm0, %v24_v5, 0.0 }
   0x4   :  { %10 = vsyncpa [#allocation3], 0  ;;  %v72_v10 = vsel %vm59_vm0, %v25_v8, 0.0  ;;  %v75_v11 = vsel %vm59_vm0, %v26_v9, 0.0  ;;  %v6347_v12 = vld [vmem:[%s8976_s0 + $0x30] sm:$0xff]  ;;  %v6352_v13 = vld [vmem:[%s8976_s0 + $0x38] sm:$0xff] }
   0x5   :  { %v78_v14 = vsel %vm59_vm0, %v6347_v12, 0.0  ;;  %v81_v15 = vsel %vm59_vm0, %v6352_v13, 0.0  ;;  %v6361_v16 = vld [vmem:[%s8976_s0 + $0x40] sm:$0xff]  ;;  %v6366_v17 = vld [vmem:[%s8976_s0 + $0x48] sm:$0xff]  ;;  %v6375_v20 = vld [vmem:[%s8976_s0 + $0x50] sm:$0xff]  ;;  %vm550_vm1 = vcmask 31744  }
   0x6   :  { %v84_v18 = vsel %vm59_vm0, %v6361_v16, 0.0  ;;  %v87_v19 = vsel %vm59_vm0, %v6366_v17, 0.0  ;;  %v6380_v21 = vld [vmem:[%s8976_s0 + $0x58] sm:$0xff]  ;;  %v90_v22 = vsel %vm59_vm0, %v6375_v20, 0.0  ;;  %v6389_v24 = vld [vmem:[%s8976_s0 + $0x60] sm:$0xff]  ;;  %v6394_v25 = vld [vmem:[%s8976_s0 + $0x68] sm:$0xff] }
   0x7   :  { %64 = vadd.xlane.f32.xlu0 %v63_v6  ;;  %70 = vadd.xlane.f32.xlu1 %v69_v7  ;;  %v93_v23 = vsel %vm59_vm0, %v6380_v21, 0.0  ;;  %v96_v26 = vsel %vm59_vm0, %v6389_v24, 0.0  ;;  %v99_v27 = vsel %vm59_vm0, %v6394_v25, 0.0  ;;  %v6403_v28 = vld [vmem:[%s8976_s0 + $0x70] sm:$0xff]  ;;  %v6408_v29 = vld [vmem:[%s8976_s0 + $0x78] sm:$0xff]  ;;  %s6272_s6 = smov 112  }
   0x8   :  { %v102_v30 = vsel %vm59_vm0, %v6403_v28, 0.0  ;;  %v105_v31 = vsel %vm59_vm0, %v6408_v29, 0.0  ;;  %s6273_s7 = smov 96   ;;  %s6274_s8 = smov 108   ;;  %vm3263_vm2 = vcmask 64512   ;;  %vm3280_vm3 = vcmask 97280  }
   0x9   :  { %s6275_s17 = smov 124   ;;  %s6277_s18 = smov 104   ;;  %vm3997_vm4 = vcmask 523264  }
   0xa   :  { %s6278_s19 = smov 120   ;;  %s6279_s20 = smov 88  }
   0xb   :  { %73 = vadd.xlane.f32.xlu0 %v72_v10  ;;  %76 = vadd.xlane.f32.xlu1 %v75_v11  ;;  %s6280_s21 = smov 100   ;;  %s6284_s9 = smov 4  }
   0xc   :  { %s6285_s10 = smov 8   ;;  %s6286_s13 = smov 12  }
   0xf   :  { %79 = vadd.xlane.f32.xlu0 %v78_v14  ;;  %82 = vadd.xlane.f32.xlu1 %v81_v15 }
  0x13   :  { %85 = vadd.xlane.f32.xlu0 %v84_v18  ;;  %88 = vadd.xlane.f32.xlu1 %v87_v19 }
  0x17   :  { %91 = vadd.xlane.f32.xlu0 %v90_v22  ;;  %94 = vadd.xlane.f32.xlu1 %v93_v23 }
  0x1b   :  { %97 = vadd.xlane.f32.xlu0 %v96_v26  ;;  %100 = vadd.xlane.f32.xlu1 %v99_v27 }
  0x1f   :  { %103 = vadd.xlane.f32.xlu0 %v102_v30  ;;  %106 = vadd.xlane.f32.xlu1 %v105_v31 }
  0x8c   :  { %v62_v32 = vpop.xlane.xlu0 %61  ;;  %v68_v33 = vpop.xlane.xlu1 %67 }
  0x8d   :  { %v109_v34 = vmul.f32 0.0625, %v62_v32  ;;  %v111_v35 = vmul.f32 0.0625, %v68_v33 }
  0x8f   :  { %v6414_v36 = vsub.f32 %v21_v0, %v109_v34  ;;  %v6416_v37 = vsub.f32 %v23_v1, %v111_v35 }
  0x90   :  { %v65_v38 = vpop.xlane.xlu0 %64  ;;  %v71_v39 = vpop.xlane.xlu1 %70 }
  0x91   :  { %v110_v40 = vmul.f32 0.0625, %v65_v38  ;;  %v112_v41 = vmul.f32 0.0625, %v71_v39  ;;  %v141_v42 = vmul.f32 %v6414_v36, %v6414_v36  ;;  %v143_v43 = vmul.f32 %v6416_v37, %v6416_v37 }
  0x93   :  { %v6422_v44 = vsub.f32 %v22_v2, %v110_v40  ;;  %v6424_v45 = vsub.f32 %v24_v5, %v112_v41  ;;  %v157_v46 = vsel %vm59_vm0, %v141_v42, 0.0  ;;  %v163_v49 = vsel %vm59_vm0, %v143_v43, 0.0 }
  0x94   :  { %158 = vadd.xlane.f32.xlu0 %v157_v46  ;;  %v74_v47 = vpop.xlane.xlu0 %73  ;;  %v77_v48 = vpop.xlane.xlu1 %76 }
  0x95   :  { %v113_v50 = vmul.f32 0.0625, %v74_v47  ;;  %v114_v51 = vmul.f32 0.0625, %v77_v48  ;;  %v142_v52 = vmul.f32 %v6422_v44, %v6422_v44  ;;  %v144_v53 = vmul.f32 %v6424_v45, %v6424_v45 }
  0x97   :  { %v6432_v54 = vsub.f32 %v25_v8, %v113_v50  ;;  %v6434_v55 = vsub.f32 %v26_v9, %v114_v51  ;;  %v160_v56 = vsel %vm59_vm0, %v142_v52, 0.0  ;;  %v166_v59 = vsel %vm59_vm0, %v144_v53, 0.0  ;;  %v39_v53 = vld [vmem:[%s8978_s2] sm:$0xff] }
  0x98   :  { %164 = vadd.xlane.f32.xlu0 %v163_v49  ;;  %161 = vadd.xlane.f32.xlu1 %v160_v56  ;;  %v80_v57 = vpop.xlane.xlu0 %79  ;;  %v83_v58 = vpop.xlane.xlu1 %82 }
  0x99   :  { %v115_v60 = vmul.f32 0.0625, %v80_v57  ;;  %v116_v61 = vmul.f32 0.0625, %v83_v58  ;;  %v145_v62 = vmul.f32 %v6432_v54, %v6432_v54  ;;  %v146_v63 = vmul.f32 %v6434_v55, %v6434_v55 }
  0x9b   :  { %v6443_v0 = vsub.f32 %v6347_v12, %v115_v60  ;;  %v6446_v1 = vsub.f32 %v6352_v13, %v116_v61  ;;  %v169_v2 = vsel %vm59_vm0, %v145_v62, 0.0  ;;  %v172_v5 = vsel %vm59_vm0, %v146_v63, 0.0 }
  0x9c   :  { %167 = vadd.xlane.f32.xlu1 %v166_v59  ;;  %170 = vadd.xlane.f32.xlu0 %v169_v2  ;;  %v86_v3 = vpop.xlane.xlu0 %85  ;;  %v89_v4 = vpop.xlane.xlu1 %88  ;;  %v269_v63 = vlaneseq }
  0x9d   :  { %v117_v6 = vmul.f32 0.0625, %v86_v3  ;;  %v118_v7 = vmul.f32 0.0625, %v89_v4  ;;  %v147_v8 = vmul.f32 %v6443_v0, %v6443_v0  ;;  %v148_v9 = vmul.f32 %v6446_v1, %v6446_v1 }
  0x9f   :  { %v6455_v10 = vsub.f32 %v6361_v16, %v117_v6  ;;  %v6458_v11 = vsub.f32 %v6366_v17, %v118_v7  ;;  %v175_v12 = vsel %vm59_vm0, %v147_v8, 0.0  ;;  %v178_v15 = vsel %vm59_vm0, %v148_v9, 0.0 }
  0xa0   :  { %173 = vadd.xlane.f32.xlu1 %v172_v5  ;;  %176 = vadd.xlane.f32.xlu0 %v175_v12  ;;  %v92_v13 = vpop.xlane.xlu0 %91  ;;  %v95_v14 = vpop.xlane.xlu1 %94  ;;  %v6510_v8 = vshrl.u32 %v269_v63, 7 }
  0xa1   :  { %v119_v18 = vmul.f32 0.0625, %v92_v13  ;;  %v120_v19 = vmul.f32 0.0625, %v95_v14  ;;  %v149_v22 = vmul.f32 %v6455_v10, %v6455_v10  ;;  %v150_v16 = vmul.f32 %v6458_v11, %v6458_v11 }
  0xa2   :  { %9003 = vst [vmem:[#allocation5_spill] sm:$0xff] %v6510_v8 }
  0xa3   :  { %v6467_v23 = vsub.f32 %v6375_v20, %v119_v18  ;;  %v6470_v17 = vsub.f32 %v6380_v21, %v120_v19  ;;  %v181_v26 = vsel %vm59_vm0, %v149_v22, 0.0  ;;  %v184_v31 = vsel %vm59_vm0, %v150_v16, 0.0  ;;  %v37_v22 = vld [vmem:[%s8980_s4] sm:$0xff] }
  0xa4   :  { %179 = vadd.xlane.f32.xlu1 %v178_v15  ;;  %182 = vadd.xlane.f32.xlu0 %v181_v26  ;;  %v98_v27 = vpop.xlane.xlu0 %97  ;;  %v101_v30 = vpop.xlane.xlu1 %100  ;;  %v8983_v19 = vsub.s32 0, %v6510_v8 }
  0xa5   :  { %v121_v32 = vmul.f32 0.0625, %v98_v27  ;;  %v122_v33 = vmul.f32 0.0625, %v101_v30  ;;  %v151_v34 = vmul.f32 %v6467_v23, %v6467_v23  ;;  %v152_v20 = vmul.f32 %v6470_v17, %v6470_v17 }
  0xa6   :  { %v8982_v27 = vsub.s32 1, %v6510_v8 }
  0xa7   :  { %v6479_v35 = vsub.f32 %v6389_v24, %v121_v32  ;;  %v6482_v21 = vsub.f32 %v6394_v25, %v122_v33  ;;  %v187_v38 = vsel %vm59_vm0, %v151_v34, 0.0  ;;  %v190_v41 = vsel %vm59_vm0, %v152_v20, 0.0 }
  0xa8   :  { %185 = vadd.xlane.f32.xlu1 %v184_v31  ;;  %188 = vadd.xlane.f32.xlu0 %v187_v38  ;;  %v104_v39 = vpop.xlane.xlu0 %103  ;;  %v107_v40 = vpop.xlane.xlu1 %106  ;;  %v6519_v34 = vrot.slane %v37_v22, %v8983_v19 }
  0xa9   :  { %v123_v42 = vmul.f32 0.0625, %v104_v39  ;;  %v124_v43 = vmul.f32 0.0625, %v107_v40  ;;  %v153_v46 = vmul.f32 %v6479_v35, %v6479_v35  ;;  %v154_v24 = vmul.f32 %v6482_v21, %v6482_v21 }
  0xab   :  { %v6491_v47 = vsub.f32 %v6403_v28, %v123_v42  ;;  %v6494_v25 = vsub.f32 %v6408_v29, %v124_v43  ;;  %v193_v48 = vsel %vm59_vm0, %v153_v46, 0.0  ;;  %v196_v49 = vsel %vm59_vm0, %v154_v24, 0.0  ;;  %v41_v29 = vld [vmem:[%s8978_s2 + $0x10] sm:$0xff] }
  0xac   :  { %191 = vadd.xlane.f32.xlu1 %v190_v41  ;;  %194 = vadd.xlane.f32.xlu0 %v193_v48  ;;  %v6524_v41 = vrot.slane %v37_v22, %v8982_v27 }
  0xad   :  { %v155_v50 = vmul.f32 %v6491_v47, %v6491_v47  ;;  %v156_v51 = vmul.f32 %v6494_v25, %v6494_v25  ;;  %5244 = vmatprep.subr.mxu0 %v41_v29 }
  0xae   :  { %5245 = vmatpush3.msra.mxu0 %v41_v29 }
  0xaf   :  { %v199_v52 = vsel %vm59_vm0, %v155_v50, 0.0  ;;  %v202_v28 = vsel %vm59_vm0, %v156_v51, 0.0  ;;  %5246 = vmatprep.subr.mxu0 %v39_v53 }
  0xb0   :  { %197 = vadd.xlane.f32.xlu1 %v196_v49  ;;  %200 = vadd.xlane.f32.xlu0 %v199_v52 }
  0xb1   :  { %5247 = vmatpush3.msra.mxu0 %v39_v53 }
  0xb4   :  { %203 = vadd.xlane.f32.xlu1 %v202_v28 }
 0x11d   :  { %v159_v56 = vpop.xlane.xlu0 %158 }
 0x11e   :  { %v205_v57 = vmul.f32 0.0625, %v159_v56 }
 0x120   :  { %v221_v58 = vadd.f32 1e-05, %v205_v57 }
 0x121   :  { %v162_v59 = vpop.xlane.xlu1 %161  ;;  %v165_v60 = vpop.xlane.xlu0 %164 }
 0x122   :  { %5862 = vrsqrt.f32 %v221_v58  ;;  %v206_v61 = vmul.f32 0.0625, %v162_v59  ;;  %v207_v62 = vmul.f32 0.0625, %v165_v60 }
 0x124   :  { %v222_v2 = vadd.f32 1e-05, %v206_v61  ;;  %v223_v3 = vadd.f32 1e-05, %v207_v62 }
 0x125   :  { %v168_v4 = vpop.xlane.xlu1 %167  ;;  %v171_v5 = vpop.xlane.xlu0 %170 }
 0x126   :  { %5864 = vrsqrt.f32 %v222_v2  ;;  %v208_v6 = vmul.f32 0.0625, %v168_v4  ;;  %v209_v7 = vmul.f32 0.0625, %v171_v5 }
 0x127   :  { %5866 = vrsqrt.f32 %v223_v3 }
 0x128   :  { %v224_v9 = vadd.f32 1e-05, %v208_v6  ;;  %v225_v12 = vadd.f32 1e-05, %v209_v7 }
 0x129   :  { %v174_v13 = vpop.xlane.xlu1 %173  ;;  %v177_v14 = vpop.xlane.xlu0 %176 }
 0x12a   :  { %5868 = vrsqrt.f32 %v224_v9  ;;  %v210_v15 = vmul.f32 0.0625, %v174_v13  ;;  %v211_v18 = vmul.f32 0.0625, %v177_v14 }
 0x12b   :  { %5870 = vrsqrt.f32 %v225_v12 }
 0x12c   :  { %v226_v16 = vadd.f32 1e-05, %v210_v15  ;;  %v227_v26 = vadd.f32 1e-05, %v211_v18 }
 0x12d   :  { %v180_v30 = vpop.xlane.xlu1 %179  ;;  %v183_v31 = vpop.xlane.xlu0 %182 }
 0x12e   :  { %5872 = vrsqrt.f32 %v226_v16  ;;  %v212_v32 = vmul.f32 0.0625, %v180_v30  ;;  %v213_v33 = vmul.f32 0.0625, %v183_v31 }
 0x12f   :  { %v5863_v20 = vpop.eup %5862  ;;  %5874 = vrsqrt.f32 %v227_v26 }
 0x130   :  { %v228_v38 = vadd.f32 1e-05, %v212_v32  ;;  %v229_v39 = vadd.f32 1e-05, %v213_v33  ;;  %v253_v40 = vmul.f32 %v5863_v20, %v6414_v36 }
 0x131   :  { %v186_v42 = vpop.xlane.xlu1 %185  ;;  %v189_v43 = vpop.xlane.xlu0 %188 }
 0x132   :  { %5876 = vrsqrt.f32 %v228_v38  ;;  %v214_v46 = vmul.f32 0.0625, %v186_v42  ;;  %v215_v24 = vmul.f32 0.0625, %v189_v43  ;;  %v273_v48 = vmul.f32 %v6519_v34, %v253_v40 }
 0x133   :  { %v5865_v49 = vpop.eup %5864  ;;  %5878 = vrsqrt.f32 %v229_v39 }
 0x134   :  { %v5867_v50 = vpop.eup %5866  ;;  %v230_v51 = vadd.f32 1e-05, %v214_v46  ;;  %v231_v52 = vadd.f32 1e-05, %v215_v24  ;;  %v293_v28 = vadd.f32 %v6524_v41, %v273_v48  ;;  %v254_v36 = vmul.f32 %v5865_v49, %v6422_v44 }
 0x135   :  { %v192_v29 = vpop.xlane.xlu1 %191  ;;  %v195_v53 = vpop.xlane.xlu0 %194  ;;  %v255_v56 = vmul.f32 %v5867_v50, %v6416_v37 }
 0x136   :  { %5880 = vrsqrt.f32 %v230_v51  ;;  %v216_v57 = vmul.f32 0.0625, %v192_v29  ;;  %v217_v58 = vmul.f32 0.0625, %v195_v53  ;;  %5248 = vmatprep.mubr.msk.f32.mxu0 %vm59_vm0, %v293_v28  ;;  %v274_v59 = vmul.f32 %v6519_v34, %v254_v36 }
 0x137   :  { %v5869_v60 = vpop.eup %5868  ;;  %5882 = vrsqrt.f32 %v231_v52  ;;  %v275_v61 = vmul.f32 %v6519_v34, %v255_v56 }
 0x138   :  { %v5871_v62 = vpop.eup %5870  ;;  %v232_v63 = vadd.f32 1e-05, %v216_v57  ;;  %v233_v2 = vadd.f32 1e-05, %v217_v58  ;;  %v294_v44 = vadd.f32 %v6524_v41, %v274_v59  ;;  %v256_v3 = vmul.f32 %v5869_v60, %v6424_v45 }
 0x139   :  { %v198_v4 = vpop.xlane.xlu1 %197  ;;  %v201_v37 = vpop.xlane.xlu0 %200  ;;  %v295_v5 = vadd.f32 %v6524_v41, %v275_v61  ;;  %v257_v6 = vmul.f32 %v5871_v62, %v6432_v54 }
 0x13a   :  { %5884 = vrsqrt.f32 %v232_v63  ;;  %v218_v7 = vmul.f32 0.0625, %v198_v4  ;;  %v219_v9 = vmul.f32 0.0625, %v201_v37  ;;  %5249 = vmatmul.mubr.msk.f32.vlgmr.msra.gmra.mxu0 %vm59_vm0, %v294_v44  ;;  %v276_v12 = vmul.f32 %v6519_v34, %v256_v3 }
 0x13b   :  { %v5873_v13 = vpop.eup %5872  ;;  %5886 = vrsqrt.f32 %v233_v2  ;;  %5251 = vmatprep.mubr.msk.f32.mxu0 %vm59_vm0, %v295_v5  ;;  %v277_v14 = vmul.f32 %v6519_v34, %v257_v6 }
 0x13c   :  { %v5875_v45 = vpop.eup %5874  ;;  %v234_v15 = vadd.f32 1e-05, %v218_v7  ;;  %v235_v18 = vadd.f32 1e-05, %v219_v9  ;;  %v296_v22 = vadd.f32 %v6524_v41, %v276_v12  ;;  %v258_v54 = vmul.f32 %v5873_v13, %v6434_v55 }
 0x13d   :  { %v204_v16 = vpop.xlane.xlu1 %203  ;;  %v297_v26 = vadd.f32 %v6524_v41, %v277_v14  ;;  %v259_v30 = vmul.f32 %v5875_v45, %v6443_v0 }
 0x13e   :  { %5888 = vrsqrt.f32 %v234_v15  ;;  %v220_v31 = vmul.f32 0.0625, %v204_v16  ;;  %5252 = vmatmul.mubr.msk.f32.gmra.mxu0 %vm59_vm0, %v296_v22  ;;  %v278_v32 = vmul.f32 %v6519_v34, %v258_v54 }
 0x13f   :  { %v5877_v33 = vpop.eup %5876  ;;  %5890 = vrsqrt.f32 %v235_v18  ;;  %5254 = vmatprep.mubr.msk.f32.mxu0 %vm59_vm0, %v297_v26  ;;  %v279_v20 = vmul.f32 %v6519_v34, %v259_v30 }
 0x140   :  { %v5879_v38 = vpop.eup %5878  ;;  %v236_v39 = vadd.f32 1e-05, %v220_v31  ;;  %v298_v55 = vadd.f32 %v6524_v41, %v278_v32  ;;  %v260_v40 = vmul.f32 %v5877_v33, %v6446_v1 }
 0x141   :  { %v299_v0 = vadd.f32 %v6524_v41, %v279_v20  ;;  %v261_v42 = vmul.f32 %v5879_v38, %v6455_v10 }
 0x142   :  { %5892 = vrsqrt.f32 %v236_v39  ;;  %5255 = vmatmul.mubr.msk.f32.gmra.mxu0 %vm59_vm0, %v298_v55  ;;  %v280_v43 = vmul.f32 %v6519_v34, %v260_v40 }
 0x143   :  { %v5881_v46 = vpop.eup %5880  ;;  %5257 = vmatprep.mubr.msk.f32.mxu0 %vm59_vm0, %v299_v0  ;;  %v281_v24 = vmul.f32 %v6519_v34, %v261_v42 }
 0x144   :  { %v5883_v48 = vpop.eup %5882  ;;  %v300_v49 = vadd.f32 %v6524_v41, %v280_v43  ;;  %v262_v50 = vmul.f32 %v5881_v46, %v6458_v11 }
 0x145   :  { %v301_v1 = vadd.f32 %v6524_v41, %v281_v24  ;;  %v263_v51 = vmul.f32 %v5883_v48, %v6467_v23 }
 0x146   :  { %5258 = vmatmul.mubr.msk.f32.gmra.mxu0 %vm59_vm0, %v300_v49  ;;  %v282_v10 = vmul.f32 %v6519_v34, %v262_v50 }
 0x147   :  { %v5885_v52 = vpop.eup %5884  ;;  %5260 = vmatprep.mubr.msk.f32.mxu0 %vm59_vm0, %v301_v1  ;;  %v283_v28 = vmul.f32 %v6519_v34, %v263_v51 }
 0x148   :  { %v5887_v36 = vpop.eup %5886  ;;  %v302_v29 = vadd.f32 %v6524_v41, %v282_v10  ;;  %v264_v53 = vmul.f32 %v5885_v52, %v6470_v17 }
 0x149   :  { %v303_v11 = vadd.f32 %v6524_v41, %v283_v28  ;;  %v265_v56 = vmul.f32 %v5887_v36, %v6479_v35 }
 0x14a   :  { %5261 = vmatmul.mubr.msk.f32.gmra.mxu0 %vm59_vm0, %v302_v29  ;;  %v284_v23 = vmul.f32 %v6519_v34, %v264_v53 }
 0x14b   :  { %v5889_v57 = vpop.eup %5888  ;;  %5263 = vmatprep.mubr.msk.f32.mxu0 %vm59_vm0, %v303_v11  ;;  %v285_v58 = vmul.f32 %v6519_v34, %v265_v56 }
 0x14c   :  { %v5891_v59 = vpop.eup %5890  ;;  %v304_v60 = vadd.f32 %v6524_v41, %v284_v23  ;;  %v266_v61 = vmul.f32 %v5889_v57, %v6482_v21 }
 0x14d   :  { %v305_v17 = vadd.f32 %v6524_v41, %v285_v58  ;;  %v267_v62 = vmul.f32 %v5891_v59, %v6491_v47 }
 0x14e   :  { %5264 = vmatmul.mubr.msk.f32.gmra.mxu0 %vm59_vm0, %v304_v60  ;;  %v286_v35 = vmul.f32 %v6519_v34, %v266_v61 }
 0x14f   :  { %v5893_v63 = vpop.eup %5892  ;;  %5266 = vmatprep.mubr.msk.f32.mxu0 %vm59_vm0, %v305_v17  ;;  %v287_v2 = vmul.f32 %v6519_v34, %v267_v62  ;;  %v6736_v17 = vld [vmem:[%s8977_s1 + $0x8] sm:$0xff] }
 0x150   :  { %v306_v44 = vadd.f32 %v6524_v41, %v286_v35  ;;  %v268_v3 = vmul.f32 %v5893_v63, %v6494_v25  ;;  %v6741_v63 = vld [vmem:[%s8977_s1] sm:$0xff] }
 0x151   :  { %v307_v4 = vadd.f32 %v6524_v41, %v287_v2 }
 0x152   :  { %5267 = vmatmul.mubr.msk.f32.gmra.mxu0 %vm59_vm0, %v306_v44  ;;  %v288_v21 = vmul.f32 %v6519_v34, %v268_v3 }
 0x153   :  { %5269 = vmatprep.mubr.msk.f32.mxu0 %vm59_vm0, %v307_v4 }
 0x154   :  { %v308_v47 = vadd.f32 %v6524_v41, %v288_v21 }
 0x156   :  { %5270 = vmatmul.mubr.msk.f32.gmra.mxu0 %vm59_vm0, %v308_v47 }
 0x1fa   :  { %v6589_v37 = vpop.f32.mrf.mxu0 }
 0x1fc   :  { %v6591_v5 = vpop.f32.mrf.mxu0 }
 0x1fd   :  { %5304 = vmatprep.mubr.msk.f32.mxu1 %vm550_vm1, %v6591_v5 }
 0x1fe   :  { %v6595_v25 = vpop.f32.mrf.mxu0 }
 0x200   :  { %v6597_v6 = vpop.f32.mrf.mxu0 }
 0x202   :  { %v6599_v7 = vpop.f32.mrf.mxu0 }
 0x204   :  { %v6601_v34 = vpop.f32.mrf.mxu0 }
 0x206   :  { %v6603_v9 = vpop.f32.mrf.mxu0 }
 0x208   :  { %v6605_v41 = vpop.f32.mrf.mxu0 }
 0x20a   :  { %v6607_v12 = vpop.f32.mrf.mxu0 }
 0x20c   :  { %v6609_v13 = vpop.f32.mrf.mxu0 }
 0x20e   :  { %v6611_v14 = vpop.f32.mrf.mxu0 }
 0x210   :  { %v6613_v45 = vpop.f32.mrf.mxu0 }
 0x212   :  { %v6615_v15 = vpop.f32.mrf.mxu0 }
 0x214   :  { %v6617_v18 = vpop.f32.mrf.mxu0 }
 0x216   :  { %v6619_v22 = vpop.f32.mrf.mxu0 }
 0x217   :  { %548 = vrot.lane.b32.xlu0 %v6619_v22, %s6272_s6 }
 0x218   :  { %v6622_v54 = vpop.f32.mrf.mxu0 }
 0x219   :  { %546 = vrot.lane.b32.xlu1 %v6622_v54, %s6272_s6 }
 0x21b   :  { %540 = vrot.lane.b32.xlu0 %v6611_v14, %s6272_s6 }
 0x21d   :  { %544 = vrot.lane.b32.xlu1 %v6615_v15, %s6272_s6 }
 0x21f   :  { %536 = vrot.lane.b32.xlu0 %v6607_v12, %s6272_s6 }
 0x221   :  { %542 = vrot.lane.b32.xlu1 %v6617_v18, %s6272_s6 }
 0x223   :  { %532 = vrot.lane.b32.xlu0 %v6603_v9, %s6272_s6 }
 0x225   :  { %538 = vrot.lane.b32.xlu1 %v6613_v45, %s6272_s6 }
 0x227   :  { %528 = vrot.lane.b32.xlu0 %v6599_v7, %s6272_s6 }
 0x229   :  { %534 = vrot.lane.b32.xlu1 %v6609_v13, %s6272_s6 }
 0x22b   :  { %524 = vrot.lane.b32.xlu0 %v6595_v25, %s6272_s6 }
 0x22d   :  { %530 = vrot.lane.b32.xlu1 %v6605_v41, %s6272_s6 }
 0x22f   :  { %520 = vrot.lane.b32.xlu0 %v6589_v37, %s6272_s6 }
 0x231   :  { %526 = vrot.lane.b32.xlu1 %v6601_v34, %s6272_s6 }
 0x233   :  { %966 = vrot.lane.b32.xlu0 %v6619_v22, %s6273_s7 }
 0x235   :  { %522 = vrot.lane.b32.xlu1 %v6597_v6, %s6272_s6 }
 0x237   :  { %962 = vrot.lane.b32.xlu0 %v6615_v15, %s6273_s7 }
 0x239   :  { %518 = vrot.lane.b32.xlu1 %v6591_v5, %s6272_s6 }
 0x23b   :  { %958 = vrot.lane.b32.xlu0 %v6611_v14, %s6273_s7 }
 0x23d   :  { %960 = vrot.lane.b32.xlu1 %v6617_v18, %s6273_s7 }
 0x23f   :  { %950 = vrot.lane.b32.xlu0 %v6603_v9, %s6273_s7 }
 0x241   :  { %956 = vrot.lane.b32.xlu1 %v6613_v45, %s6273_s7 }
 0x243   :  { %946 = vrot.lane.b32.xlu0 %v6599_v7, %s6273_s7 }
 0x245   :  { %954 = vrot.lane.b32.xlu1 %v6607_v12, %s6273_s7 }
 0x247   :  { %942 = vrot.lane.b32.xlu0 %v6595_v25, %s6273_s7 }
 0x249   :  { %952 = vrot.lane.b32.xlu1 %v6609_v13, %s6273_s7 }
 0x24b   :  { %938 = vrot.lane.b32.xlu0 %v6589_v37, %s6273_s7 }
 0x24d   :  { %948 = vrot.lane.b32.xlu1 %v6605_v41, %s6273_s7 }
 0x24f   :  { %1191 = vrot.lane.b32.xlu0 %v6619_v22, %s6274_s8 }
 0x251   :  { %944 = vrot.lane.b32.xlu1 %v6601_v34, %s6273_s7 }
 0x253   :  { %1187 = vrot.lane.b32.xlu0 %v6615_v15, %s6274_s8 }
 0x255   :  { %940 = vrot.lane.b32.xlu1 %v6597_v6, %s6273_s7 }
 0x257   :  { %1183 = vrot.lane.b32.xlu0 %v6611_v14, %s6274_s8 }
 0x259   :  { %936 = vrot.lane.b32.xlu1 %v6591_v5, %s6273_s7 }
 0x25d   :  { %1185 = vrot.lane.b32.xlu1 %v6617_v18, %s6274_s8 }
 0x261   :  { %964 = vrot.lane.b32.xlu1 %v6622_v54, %s6273_s7  ;;  %s6283_s7 = smov 80  }
 0x265   :  { %1189 = vrot.lane.b32.xlu1 %v6622_v54, %s6274_s8 }
 0x289   :  { %v549_v16 = vpop.permute.xlu0 %548 }
 0x28a   :  { %5272 = vmatprep.subr.msk.mxu1 %vm550_vm1, %v549_v16 }
 0x28b   :  { %5273 = vmatpush3.xpose.msk.msra.mxu1 %vm550_vm1, %v549_v16  ;;  %v547_v26 = vpop.permute.xlu1 %546  ;;  %v6753_v16 = vld [vmem:[%s8977_s1 + $0x18] sm:$0xff] }
 0x28c   :  { %5274 = vmatprep.subr.msk.mxu1 %vm550_vm1, %v547_v26 }
 0x28d   :  { %v541_v30 = vpop.permute.xlu0 %540 }
 0x28f   :  { %5275 = vmatpush3.xpose.msk.msra.mxu1 %vm550_vm1, %v547_v26  ;;  %v545_v31 = vpop.permute.xlu1 %544 }
 0x290   :  { %5276 = vmatprep.subr.msk.mxu1 %vm550_vm1, %v545_v31 }
 0x291   :  { %v537_v32 = vpop.permute.xlu0 %536 }
 0x293   :  { %5277 = vmatpush3.xpose.msk.msra.mxu1 %vm550_vm1, %v545_v31  ;;  %v543_v33 = vpop.permute.xlu1 %542 }
 0x294   :  { %5278 = vmatprep.subr.msk.mxu1 %vm550_vm1, %v543_v33 }
 0x295   :  { %v533_v20 = vpop.permute.xlu0 %532 }
 0x297   :  { %5279 = vmatpush3.xpose.msk.msra.mxu1 %vm550_vm1, %v543_v33  ;;  %v539_v38 = vpop.permute.xlu1 %538 }
 0x298   :  { %5280 = vmatprep.subr.msk.mxu1 %vm550_vm1, %v541_v30 }
 0x299   :  { %v529_v39 = vpop.permute.xlu0 %528 }
 0x29b   :  { %5281 = vmatpush3.xpose.msk.msra.mxu1 %vm550_vm1, %v541_v30  ;;  %v535_v55 = vpop.permute.xlu1 %534  ;;  %v6759_v30 = vld [vmem:[%s8977_s1 + $0x28] sm:$0xff] }
 0x29c   :  { %5282 = vmatprep.subr.msk.mxu1 %vm550_vm1, %v539_v38 }
 0x29d   :  { %v525_v40 = vpop.permute.xlu0 %524 }
 0x29f   :  { %5283 = vmatpush3.xpose.msk.msra.mxu1 %vm550_vm1, %v539_v38  ;;  %v531_v0 = vpop.permute.xlu1 %530  ;;  %v6767_v38 = vld [vmem:[%s8977_s1 + $0x10] sm:$0xff] }
 0x2a0   :  { %5284 = vmatprep.subr.msk.mxu1 %vm550_vm1, %v537_v32 }
 0x2a1   :  { %v521_v42 = vpop.permute.xlu0 %520 }
 0x2a3   :  { %5285 = vmatpush3.xpose.msk.msra.mxu1 %vm550_vm1, %v537_v32  ;;  %v527_v43 = vpop.permute.xlu1 %526 }
 0x2a4   :  { %5286 = vmatprep.subr.msk.mxu1 %vm550_vm1, %v535_v55 }
 0x2a5   :  { %v967_v46 = vpop.permute.xlu0 %966 }
 0x2a6   :  { %5328 = vmatprep.subr.mxu0 %v967_v46 }
 0x2a7   :  { %5287 = vmatpush3.xpose.msk.msra.mxu1 %vm550_vm1, %v535_v55  ;;  %5329 = vmatpush3.msra.mxu0 %v967_v46  ;;  %v523_v24 = vpop.permute.xlu1 %522 }
 0x2a8   :  { %5288 = vmatprep.subr.msk.mxu1 %vm550_vm1, %v533_v20 }
 0x2a9   :  { %v963_v29 = vpop.permute.xlu0 %962 }
 0x2ab   :  { %5289 = vmatpush3.xpose.msk.msra.mxu1 %vm550_vm1, %v533_v20  ;;  %v519_v48 = vpop.permute.xlu1 %518 }
 0x2ac   :  { %5290 = vmatprep.subr.msk.mxu1 %vm550_vm1, %v531_v0 }
 0x2ad   :  { %v959_v11 = vpop.permute.xlu0 %958 }
 0x2af   :  { %5291 = vmatpush3.xpose.msk.msra.mxu1 %vm550_vm1, %v531_v0  ;;  %v961_v49 = vpop.permute.xlu1 %960 }
 0x2b0   :  { %5292 = vmatprep.subr.msk.mxu1 %vm550_vm1, %v529_v39 }
 0x2b1   :  { %v951_v23 = vpop.permute.xlu0 %950 }
 0x2b3   :  { %5293 = vmatpush3.xpose.msk.msra.mxu1 %vm550_vm1, %v529_v39  ;;  %v957_v50 = vpop.permute.xlu1 %956 }
 0x2b4   :  { %5294 = vmatprep.subr.msk.mxu1 %vm550_vm1, %v527_v43 }
 0x2b5   :  { %v947_v57 = vpop.permute.xlu0 %946 }
 0x2b7   :  { %5295 = vmatpush3.xpose.msk.msra.mxu1 %vm550_vm1, %v527_v43  ;;  %v955_v1 = vpop.permute.xlu1 %954 }
 0x2b8   :  { %5296 = vmatprep.subr.msk.mxu1 %vm550_vm1, %v525_v40 }
 0x2b9   :  { %v943_v58 = vpop.permute.xlu0 %942 }
 0x2bb   :  { %5297 = vmatpush3.xpose.msk.msra.mxu1 %vm550_vm1, %v525_v40  ;;  %v953_v51 = vpop.permute.xlu1 %952  ;;  %v6776_v40 = vld [vmem:[%s8977_s1 + $0x38] sm:$0xff] }
 0x2bc   :  { %5298 = vmatprep.subr.msk.mxu1 %vm550_vm1, %v523_v24 }
 0x2bd   :  { %v939_v59 = vpop.permute.xlu0 %938 }
 0x2bf   :  { %5299 = vmatpush3.xpose.msk.msra.mxu1 %vm550_vm1, %v523_v24  ;;  %v949_v10 = vpop.permute.xlu1 %948  ;;  %v6785_v24 = vld [vmem:[%s8977_s1 + $0x20] sm:$0xff] }
 0x2c0   :  { %5300 = vmatprep.subr.msk.mxu1 %vm550_vm1, %v521_v42 }
 0x2c1   :  { %v6729_v60 = vpop.permute.xlu0 %1191 }
 0x2c3   :  { %5301 = vmatpush3.xpose.msk.msra.mxu1 %vm550_vm1, %v521_v42  ;;  %v945_v52 = vpop.permute.xlu1 %944 }
 0x2c4   :  { %5302 = vmatprep.subr.msk.mxu1 %vm550_vm1, %v519_v48 }
 0x2c7   :  { %5303 = vmatpush3.xpose.msk.msra.mxu1 %vm550_vm1, %v519_v48  ;;  %v941_v28 = vpop.permute.xlu1 %940 }
 0x2ca   :  { %5305 = vmatmul.mubr.msk.f32.vlgmr.msra.gmra.mxu1 %vm550_vm1, %v6589_v37 }
 0x2cb   :  { %5307 = vmatprep.mubr.msk.f32.mxu1 %vm550_vm1, %v6597_v6  ;;  %v937_v36 = vpop.permute.xlu1 %936 }
 0x2ce   :  { %5308 = vmatmul.mubr.msk.f32.gmra.mxu1 %vm550_vm1, %v6595_v25 }
 0x2cf   :  { %5310 = vmatprep.mubr.msk.f32.mxu1 %vm550_vm1, %v6601_v34  ;;  %v6705_v53 = vpop.permute.xlu1 %1185 }
 0x2d2   :  { %5311 = vmatmul.mubr.msk.f32.gmra.mxu1 %vm550_vm1, %v6599_v7 }
 0x2d3   :  { %5313 = vmatprep.mubr.msk.f32.mxu1 %vm550_vm1, %v6605_v41  ;;  %v965_v56 = vpop.permute.xlu1 %964 }
 0x2d4   :  { %5330 = vmatprep.subr.mxu0 %v965_v56 }
 0x2d5   :  { %5331 = vmatpush3.msra.mxu0 %v965_v56 }
 0x2d6   :  { %5314 = vmatmul.mubr.msk.f32.gmra.mxu1 %vm550_vm1, %v6603_v9  ;;  %5332 = vmatprep.subr.mxu0 %v963_v29 }
 0x2d7   :  { %5316 = vmatprep.mubr.msk.f32.mxu1 %vm550_vm1, %v6609_v13  ;;  %5333 = vmatpush3.msra.mxu0 %v963_v29 }
 0x2d8   :  { %5334 = vmatprep.subr.mxu0 %v961_v49 }
 0x2d9   :  { %5335 = vmatpush3.msra.mxu0 %v961_v49 }
 0x2da   :  { %5317 = vmatmul.mubr.msk.f32.gmra.mxu1 %vm550_vm1, %v6607_v12  ;;  %5336 = vmatprep.subr.mxu0 %v959_v11 }
 0x2db   :  { %5319 = vmatprep.mubr.msk.f32.mxu1 %vm550_vm1, %v6613_v45  ;;  %5337 = vmatpush3.msra.mxu0 %v959_v11  ;;  %v6812_v11 = vld [vmem:[%s8977_s1 + $0x58] sm:$0xff] }
 0x2dc   :  { %5338 = vmatprep.subr.mxu0 %v957_v50 }
 0x2dd   :  { %5339 = vmatpush3.msra.mxu0 %v957_v50  ;;  %v6794_v50 = vld [vmem:[%s8977_s1 + $0x48] sm:$0xff] }
 0x2de   :  { %5320 = vmatmul.mubr.msk.f32.gmra.mxu1 %vm550_vm1, %v6611_v14  ;;  %5340 = vmatprep.subr.mxu0 %v955_v1 }
 0x2df   :  { %5322 = vmatprep.mubr.msk.f32.mxu1 %vm550_vm1, %v6617_v18  ;;  %5341 = vmatpush3.msra.mxu0 %v955_v1 }
 0x2e0   :  { %5342 = vmatprep.subr.mxu0 %v953_v51 }
 0x2e1   :  { %5343 = vmatpush3.msra.mxu0 %v953_v51 }
 0x2e2   :  { %5323 = vmatmul.mubr.msk.f32.gmra.mxu1 %vm550_vm1, %v6615_v15  ;;  %5344 = vmatprep.subr.mxu0 %v951_v23 }
 0x2e3   :  { %5325 = vmatprep.mubr.msk.f32.mxu1 %vm550_vm1, %v6622_v54  ;;  %5345 = vmatpush3.msra.mxu0 %v951_v23 }
 0x2e4   :  { %5346 = vmatprep.subr.mxu0 %v949_v10 }
 0x2e5   :  { %5347 = vmatpush3.msra.mxu0 %v949_v10 }
 0x2e6   :  { %5326 = vmatmul.mubr.msk.f32.gmra.mxu1 %vm550_vm1, %v6619_v22  ;;  %5348 = vmatprep.subr.mxu0 %v947_v57 }
 0x2e7   :  { %5349 = vmatpush3.msra.mxu0 %v947_v57 }
 0x2e8   :  { %5350 = vmatprep.subr.mxu0 %v945_v52 }
 0x2e9   :  { %5351 = vmatpush3.msra.mxu0 %v945_v52 }
 0x2ea   :  { %5352 = vmatprep.subr.mxu0 %v943_v58 }
 0x2eb   :  { %5353 = vmatpush3.msra.mxu0 %v943_v58 }
 0x2ec   :  { %5354 = vmatprep.subr.mxu0 %v941_v28 }
 0x2ed   :  { %5355 = vmatpush3.msra.mxu0 %v941_v28  ;;  %v6803_v28 = vld [vmem:[%s8977_s1 + $0x30] sm:$0xff] }
 0x2ee   :  { %5356 = vmatprep.subr.mxu0 %v939_v59 }
 0x2ef   :  { %5357 = vmatpush3.msra.mxu0 %v939_v59  ;;  %v6821_v59 = vld [vmem:[%s8977_s1 + $0x40] sm:$0xff] }
 0x2f0   :  { %5358 = vmatprep.subr.mxu0 %v937_v36 }
 0x2f1   :  { %5359 = vmatpush3.msra.mxu0 %v937_v36 }
 0x2f2   :  { %5384 = vmatprep.subr.msk.mxu0 %vm550_vm1, %v6729_v60 }
 0x38a   :  { %v5306_v61 = vpop.f32.mrf.mxu1 }
 0x38b   :  { %v761_v62 = vmul.f32 4.0, %v5306_v61 }
 0x38c   :  { %v681_v35 = vpop.f32.mrf.mxu1 }
 0x38d   :  { %v760_v2 = vmul.f32 4.0, %v681_v35  ;;  %v6744_v44 = vadd.f32 %v761_v62, %v6736_v17  ;;  %v6830_v35 = vld [vmem:[%s8977_s1 + $0x68] sm:$0xff] }
 0x38e   :  { %v5309_v3 = vpop.f32.mrf.mxu1  ;;  %9004 = vst [vmem:[#allocation6_spill] sm:$0xff] %v6830_v35 }
 0x38f   :  { %v763_v4 = vmul.f32 4.0, %v5309_v3  ;;  %794 = vmax.xlane.f32.xlu1 %v6744_v44  ;;  %v6748_v21 = vadd.f32 %v760_v2, %v6741_v63 }
 0x390   :  { %v691_v47 = vpop.f32.mrf.mxu1 }
 0x391   :  { %792 = vmax.xlane.f32.xlu0 %v6748_v21  ;;  %v762_v31 = vmul.f32 4.0, %v691_v47  ;;  %v6762_v33 = vadd.f32 %v763_v4, %v6753_v16 }
 0x392   :  { %v5312_v26 = vpop.f32.mrf.mxu1 }
 0x393   :  { %v765_v32 = vmul.f32 4.0, %v5312_v26  ;;  %v6780_v43 = vadd.f32 %v762_v31, %v6767_v38  ;;  %v6839_v26 = vld [vmem:[%s8977_s1 + $0x50] sm:$0xff] }
 0x394   :  { %v701_v20 = vpop.f32.mrf.mxu1 }
 0x395   :  { %798 = vmax.xlane.f32.xlu0 %v6762_v33  ;;  %v6771_v39 = vadd.f32 %v765_v32, %v6759_v30  ;;  %v764_v0 = vmul.f32 4.0, %v701_v20  ;;  %v6848_v20 = vld [vmem:[%s8977_s1 + $0x78] sm:$0xff] }
 0x396   :  { %v5315_v55 = vpop.f32.mrf.mxu1  ;;  %9005 = vst [vmem:[#allocation7_spill] sm:$0xff] %v6848_v20 }
 0x397   :  { %v767_v42 = vmul.f32 4.0, %v5315_v55  ;;  %802 = vmax.xlane.f32.xlu1 %v6771_v39  ;;  %v6798_v10 = vadd.f32 %v764_v0, %v6785_v24 }
 0x398   :  { %v711_v46 = vpop.f32.mrf.mxu1 }
 0x399   :  { %796 = vmax.xlane.f32.xlu0 %v6780_v43  ;;  %v6789_v48 = vadd.f32 %v767_v42, %v6776_v40  ;;  %v766_v1 = vmul.f32 4.0, %v711_v46 }
 0x39a   :  { %v5318_v49 = vpop.f32.mrf.mxu1 }
 0x39b   :  { %v769_v51 = vmul.f32 4.0, %v5318_v49  ;;  %806 = vmax.xlane.f32.xlu1 %v6789_v48  ;;  %v6816_v57 = vadd.f32 %v766_v1, %v6803_v28  ;;  %v6857_v49 = vld [vmem:[%s8977_s1 + $0x60] sm:$0xff] }
 0x39c   :  { %v721_v52 = vpop.f32.mrf.mxu1  ;;  %9006 = vst [vmem:[#allocation8_spill] sm:$0xff] %v6857_v49 }
 0x39d   :  { %800 = vmax.xlane.f32.xlu0 %v6798_v10  ;;  %v6807_v36 = vadd.f32 %v769_v51, %v6794_v50  ;;  %v768_v56 = vmul.f32 4.0, %v721_v52 }
 0x39e   :  { %v5321_v29 = vpop.f32.mrf.mxu1 }
 0x39f   :  { %v771_v23 = vmul.f32 4.0, %v5321_v29  ;;  %810 = vmax.xlane.f32.xlu1 %v6807_v36  ;;  %v6834_v4 = vadd.f32 %v768_v56, %v6821_v59  ;;  %v6870_v29 = vld [vmem:[%s8977_s1 + $0x70] sm:$0xff] }
 0x3a0   :  { %v731_v58 = vpop.f32.mrf.mxu1  ;;  %9007 = vst [vmem:[#allocation9_spill] sm:$0xff] %v6870_v29 }
 0x3a1   :  { %804 = vmax.xlane.f32.xlu0 %v6816_v57  ;;  %v6825_v61 = vadd.f32 %v771_v23, %v6812_v11  ;;  %v770_v2 = vmul.f32 4.0, %v731_v58  ;;  %v6889_v23 = vpop.permute.xlu0 %1187  ;;  %v6891_v58 = vpop.permute.xlu1 %1189 }
 0x3a2   :  { %v5324_v62 = vpop.f32.mrf.mxu1 }
 0x3a3   :  { %v773_v3 = vmul.f32 4.0, %v5324_v62  ;;  %814 = vmax.xlane.f32.xlu1 %v6825_v61  ;;  %v6852_v42 = vadd.f32 %v770_v2, %v6839_v26 }
 0x3a4   :  { %v741_v47 = vpop.f32.mrf.mxu1 }
 0x3a5   :  { %808 = vmax.xlane.f32.xlu0 %v6834_v4  ;;  %v6843_v31 = vadd.f32 %v773_v3, %v6830_v35  ;;  %v772_v55 = vmul.f32 4.0, %v741_v47  ;;  %v6893_v62 = vpop.permute.xlu0 %1183 }
 0x3a6   :  { %v5327_v32 = vpop.f32.mrf.mxu1 }
 0x3a7   :  { %v775_v0 = vmul.f32 4.0, %v5327_v32  ;;  %818 = vmax.xlane.f32.xlu1 %v6843_v31  ;;  %v6865_v52 = vadd.f32 %v772_v55, %v6857_v49 }
 0x3a8   :  { %v751_v46 = vpop.f32.mrf.mxu1 }
 0x3a9   :  { %812 = vmax.xlane.f32.xlu0 %v6852_v42  ;;  %v6861_v1 = vadd.f32 %v775_v0, %v6848_v20  ;;  %v774_v51 = vmul.f32 4.0, %v751_v46 }
 0x3ab   :  { %822 = vmax.xlane.f32.xlu1 %v6861_v1  ;;  %v6874_v56 = vadd.f32 %v774_v51, %v6870_v29 }
 0x3ad   :  { %816 = vmax.xlane.f32.xlu0 %v6865_v52 }
 0x3b1   :  { %820 = vmax.xlane.f32.xlu0 %v6874_v56 }
 0x3bc   :  { %1179 = vrot.lane.b32.xlu1 %v6607_v12, %s6274_s8 }
 0x3c0   :  { %1175 = vrot.lane.b32.xlu1 %v6603_v9, %s6274_s8 }
 0x3c4   :  { %1173 = vrot.lane.b32.xlu1 %v6605_v41, %s6274_s8 }
 0x3c7   :  { %1181 = vrot.lane.b32.xlu0 %v6613_v45, %s6274_s8 }
 0x3c8   :  { %1171 = vrot.lane.b32.xlu1 %v6599_v7, %s6274_s8 }
 0x3cc   :  { %1169 = vrot.lane.b32.xlu1 %v6601_v34, %s6274_s8 }
 0x418   :  { %v795_v2 = vpop.xlane.xlu1 %794 }
 0x419   :  { %v825_v3 = vsub.f32 %v6744_v44, %v795_v2 }
 0x41a   :  { %v793_v47 = vpop.xlane.xlu0 %792 }
 0x41b   :  { %v842_v32 = vmul.f32 1.442695, %v825_v3  ;;  %v824_v55 = vsub.f32 %v6748_v21, %v793_v47 }
 0x41d   :  { %5894 = vpow2.f32 %v842_v32  ;;  %v840_v0 = vmul.f32 1.442695, %v824_v55 }
 0x41e   :  { %v799_v46 = vpop.xlane.xlu0 %798 }
 0x41f   :  { %5896 = vpow2.f32 %v840_v0  ;;  %v827_v51 = vsub.f32 %v6762_v33, %v799_v46 }
 0x420   :  { %v803_v27 = vpop.xlane.xlu1 %802 }
 0x421   :  { %v846_v19 = vmul.f32 1.442695, %v827_v51  ;;  %v829_v8 = vsub.f32 %v6771_v39, %v803_v27 }
 0x422   :  { %v797_v29 = vpop.xlane.xlu0 %796 }
 0x423   :  { %5898 = vpow2.f32 %v846_v19  ;;  %v850_v20 = vmul.f32 1.442695, %v829_v8 }
 0x424   :  { %v807_v49 = vpop.xlane.xlu1 %806 }
 0x425   :  { %5900 = vpow2.f32 %v850_v20  ;;  %v831_v44 = vsub.f32 %v6789_v48, %v807_v49 }
 0x426   :  { %v801_v35 = vpop.xlane.xlu0 %800 }
 0x427   :  { %v828_v21 = vsub.f32 %v6798_v10, %v801_v35  ;;  %v854_v33 = vmul.f32 1.442695, %v831_v44 }
 0x428   :  { %v811_v2 = vpop.xlane.xlu1 %810 }
 0x429   :  { %v848_v3 = vmul.f32 1.442695, %v828_v21  ;;  %v833_v55 = vsub.f32 %v6807_v36, %v811_v2  ;;  %v826_v2 = vsub.f32 %v6780_v43, %v797_v29 }
 0x42a   :  { %v6901_v47 = vpop.eup %5894  ;;  %v805_v32 = vpop.xlane.xlu0 %804 }
 0x42b   :  { %5902 = vpow2.f32 %v848_v3  ;;  %874 = vadd.xlane.f32.xlu0 %v6901_v47  ;;  %v858_v27 = vmul.f32 1.442695, %v833_v55  ;;  %v844_v55 = vmul.f32 1.442695, %v826_v2 }
 0x42c   :  { %v6905_v19 = vpop.eup %5896  ;;  %5904 = vpow2.f32 %v854_v33  ;;  %v815_v3 = vpop.xlane.xlu1 %814 }
 0x42d   :  { %872 = vadd.xlane.f32.xlu1 %v6905_v19  ;;  %5906 = vpow2.f32 %v858_v27 }
 0x42e   :  { %v809_v8 = vpop.xlane.xlu0 %808 }
 0x42f   :  { %v832_v39 = vsub.f32 %v6834_v4, %v809_v8  ;;  %v830_v8 = vsub.f32 %v6816_v57, %v805_v32 }
 0x430   :  { %v6909_v48 = vpop.eup %5898  ;;  %v819_v27 = vpop.xlane.xlu1 %818 }
 0x431   :  { %878 = vadd.xlane.f32.xlu1 %v6909_v48  ;;  %v856_v35 = vmul.f32 1.442695, %v832_v39  ;;  %v852_v39 = vmul.f32 1.442695, %v830_v8 }
 0x432   :  { %v813_v10 = vpop.xlane.xlu0 %812  ;;  %v6913_v20 = vpop.eup %5900 }
 0x433   :  { %v834_v36 = vsub.f32 %v6852_v42, %v813_v10  ;;  %5908 = vpow2.f32 %v856_v35  ;;  %v835_v10 = vsub.f32 %v6825_v61, %v815_v3 }
 0x435   :  { %882 = vadd.xlane.f32.xlu1 %v6913_v20  ;;  %v860_v0 = vmul.f32 1.442695, %v834_v36  ;;  %v862_v35 = vmul.f32 1.442695, %v835_v10  ;;  %v837_v36 = vsub.f32 %v6843_v31, %v819_v27 }
 0x436   :  { %v817_v49 = vpop.xlane.xlu0 %816 }
 0x437   :  { %v836_v46 = vsub.f32 %v6865_v52, %v817_v49  ;;  %5910 = vpow2.f32 %v860_v0  ;;  %v823_v49 = vpop.xlane.xlu1 %822  ;;  %v866_v43 = vmul.f32 1.442695, %v837_v36 }
 0x438   :  { %v6917_v51 = vpop.eup %5902  ;;  %v839_v29 = vsub.f32 %v6861_v1, %v823_v49 }
 0x439   :  { %880 = vadd.xlane.f32.xlu1 %v6917_v51  ;;  %v864_v4 = vmul.f32 1.442695, %v836_v46  ;;  %v6920_v44 = vpop.eup %5904 }
 0x43a   :  { %v6923_v42 = vpop.eup %5906  ;;  %v870_v0 = vmul.f32 1.442695, %v839_v29  ;;  %v821_v46 = vpop.xlane.xlu0 %820 }
 0x43b   :  { %5912 = vpow2.f32 %v864_v4  ;;  %v838_v4 = vsub.f32 %v6874_v56, %v821_v46  ;;  %v6979_v56 = vpop.permute.xlu1 %1179 }
 0x43c   :  { %5914 = vpow2.f32 %v844_v55 }
 0x43d   :  { %886 = vadd.xlane.f32.xlu1 %v6920_v44  ;;  %5916 = vpow2.f32 %v852_v39  ;;  %v868_v2 = vmul.f32 1.442695, %v838_v4 }
 0x43e   :  { %5918 = vpow2.f32 %v862_v35  ;;  %v1182_v39 = vpop.permute.xlu0 %1181 }
 0x43f   :  { %5920 = vpow2.f32 %v866_v43  ;;  %v6987_v55 = vpop.permute.xlu1 %1175 }
 0x440   :  { %v6928_v21 = vpop.eup %5908  ;;  %5922 = vpow2.f32 %v870_v0 }
 0x441   :  { %1177 = vrot.lane.b32.xlu0 %v6609_v13, %s6274_s8  ;;  %890 = vadd.xlane.f32.xlu1 %v6923_v42  ;;  %5924 = vpow2.f32 %v868_v2 }
 0x443   :  { %v6993_v8 = vpop.permute.xlu1 %1173 }
 0x444   :  { %v6931_v52 = vpop.eup %5910 }
 0x445   :  { %888 = vadd.xlane.f32.xlu1 %v6928_v21 }
 0x447   :  { %v7003_v27 = vpop.permute.xlu1 %1171 }
 0x448   :  { %v6935_v33 = vpop.eup %5912 }
 0x449   :  { %892 = vadd.xlane.f32.xlu1 %v6931_v52  ;;  %v6944_v57 = vpop.eup %5914 }
 0x44a   :  { %v6949_v61 = vpop.eup %5916 }
 0x44b   :  { %v6954_v31 = vpop.eup %5918  ;;  %v7009_v10 = vpop.permute.xlu1 %1169 }
 0x44c   :  { %v6959_v1 = vpop.eup %5920 }
 0x44d   :  { %896 = vadd.xlane.f32.xlu1 %v6935_v33  ;;  %v6962_v32 = vpop.eup %5922 }
 0x44e   :  { %v6970_v3 = vpop.eup %5924 }
 0x45e   :  { %1165 = vrot.lane.b32.xlu1 %v6597_v6, %s6274_s8 }
 0x460   :  { %876 = vadd.xlane.f32.xlu0 %v6944_v57 }
 0x462   :  { %1163 = vrot.lane.b32.xlu1 %v6589_v37, %s6274_s8 }
 0x464   :  { %884 = vadd.xlane.f32.xlu0 %v6949_v61 }
 0x466   :  { %1161 = vrot.lane.b32.xlu1 %v6591_v5, %s6274_s8 }
 0x468   :  { %894 = vadd.xlane.f32.xlu0 %v6954_v31 }
 0x46a   :  { %1129 = vrot.lane.b32.xlu1 %v6591_v5, %s6275_s17 }
 0x46c   :  { %898 = vadd.xlane.f32.xlu0 %v6959_v1 }
 0x470   :  { %902 = vadd.xlane.f32.xlu0 %v6962_v32 }
 0x486   :  { %1167 = vrot.lane.b32.xlu0 %v6595_v25, %s6274_s8  ;;  %s6276_s8 = smov 92  }
 0x48a   :  { %1135 = vrot.lane.b32.xlu0 %v6595_v25, %s6275_s17 }
 0x48e   :  { %900 = vadd.xlane.f32.xlu1 %v6970_v3  ;;  %1139 = vrot.lane.b32.xlu0 %v6599_v7, %s6275_s17 }
 0x492   :  { %1143 = vrot.lane.b32.xlu0 %v6603_v9, %s6275_s17 }
 0x496   :  { %1147 = vrot.lane.b32.xlu0 %v6607_v12, %s6275_s17 }
 0x49a   :  { %1151 = vrot.lane.b32.xlu0 %v6611_v14, %s6275_s17 }
 0x49e   :  { %1155 = vrot.lane.b32.xlu0 %v6615_v15, %s6275_s17 }
 0x49f   :  { %1131 = vrot.lane.b32.xlu1 %v6589_v37, %s6275_s17 }
 0x4a2   :  { %1159 = vrot.lane.b32.xlu0 %v6619_v22, %s6275_s17 }
 0x4a3   :  { %1133 = vrot.lane.b32.xlu1 %v6597_v6, %s6275_s17 }
 0x4a6   :  { %1608 = vrot.lane.b32.xlu0 %v6619_v22, %s6276_s8 }
 0x4a7   :  { %1137 = vrot.lane.b32.xlu1 %v6601_v34, %s6275_s17 }
 0x4aa   :  { %1604 = vrot.lane.b32.xlu0 %v6615_v15, %s6276_s8 }
 0x4ab   :  { %1141 = vrot.lane.b32.xlu1 %v6605_v41, %s6275_s17 }
 0x4ae   :  { %1600 = vrot.lane.b32.xlu0 %v6611_v14, %s6276_s8 }
 0x4af   :  { %1145 = vrot.lane.b32.xlu1 %v6609_v13, %s6275_s17 }
 0x4b2   :  { %1594 = vrot.lane.b32.xlu0 %v6609_v13, %s6276_s8 }
 0x4b3   :  { %1149 = vrot.lane.b32.xlu1 %v6613_v45, %s6275_s17 }
 0x4b4   :  { %v875_v35 = vpop.xlane.xlu0 %874 }
 0x4b5   :  { %5926 = vrcp.f32 %v875_v35 }
 0x4b6   :  { %1590 = vrot.lane.b32.xlu0 %v6605_v41, %s6276_s8  ;;  %v873_v36 = vpop.xlane.xlu1 %872 }
 0x4b7   :  { %5928 = vrcp.f32 %v873_v36  ;;  %1153 = vrot.lane.b32.xlu1 %v6617_v18, %s6275_s17 }
 0x4ba   :  { %1586 = vrot.lane.b32.xlu0 %v6601_v34, %s6276_s8 }
 0x4bb   :  { %1157 = vrot.lane.b32.xlu1 %v6622_v54, %s6275_s17 }
 0x4be   :  { %1582 = vrot.lane.b32.xlu0 %v6597_v6, %s6276_s8 }
 0x4bf   :  { %1606 = vrot.lane.b32.xlu1 %v6622_v54, %s6276_s8 }
 0x4c2   :  { %1578 = vrot.lane.b32.xlu0 %v6591_v5, %s6276_s8  ;;  %v5927_v49 = vpop.eup %5926 }
 0x4c3   :  { %1602 = vrot.lane.b32.xlu1 %v6617_v18, %s6276_s8  ;;  %v921_v0 = vmul.f32 %v5927_v49, %v6901_v47 }
 0x4c4   :  { %v5929_v43 = vpop.eup %5928 }
 0x4c5   :  { %v920_v29 = vmul.f32 %v5929_v43, %v6905_v19  ;;  %v879_v19 = vpop.xlane.xlu1 %878 }
 0x4c6   :  { %1831 = vrot.lane.b32.xlu0 %v6622_v54, %s6277_s18  ;;  %5930 = vrcp.f32 %v879_v19 }
 0x4c7   :  { %1598 = vrot.lane.b32.xlu1 %v6613_v45, %s6276_s8  ;;  %5360 = vmatprep.mubr.f32.mxu0 %v920_v29 }
 0x4c8   :  { %5361 = vmatmul.mubr.f32.vlgmr.msra.gmra.mxu0 %v921_v0 }
 0x4c9   :  { %5385 = vmatpush3.xpose.msk.msra.mxu0 %vm550_vm1, %v6729_v60  ;;  %v883_v60 = vpop.xlane.xlu1 %882 }
 0x4ca   :  { %5386 = vmatprep.subr.msk.mxu0 %vm550_vm1, %v6891_v58  ;;  %1829 = vrot.lane.b32.xlu0 %v6615_v15, %s6277_s18 }
 0x4cb   :  { %1596 = vrot.lane.b32.xlu1 %v6607_v12, %s6276_s8 }
 0x4cd   :  { %5387 = vmatpush3.xpose.msk.msra.mxu0 %vm550_vm1, %v6891_v58  ;;  %v1178_v58 = vpop.permute.xlu0 %1177 }
 0x4ce   :  { %5388 = vmatprep.subr.msk.mxu0 %vm550_vm1, %v6889_v23  ;;  %1825 = vrot.lane.b32.xlu0 %v6611_v14, %s6277_s18 }
 0x4cf   :  { %1592 = vrot.lane.b32.xlu1 %v6603_v9, %s6276_s8 }
 0x4d1   :  { %5389 = vmatpush3.xpose.msk.msra.mxu0 %vm550_vm1, %v6889_v23  ;;  %v881_v23 = vpop.xlane.xlu1 %880 }
 0x4d2   :  { %5390 = vmatprep.subr.msk.mxu0 %vm550_vm1, %v6705_v53  ;;  %1821 = vrot.lane.b32.xlu0 %v6607_v12, %s6277_s18  ;;  %5932 = vrcp.f32 %v881_v23 }
 0x4d3   :  { %1588 = vrot.lane.b32.xlu1 %v6599_v7, %s6276_s8 }
 0x4d5   :  { %5391 = vmatpush3.xpose.msk.msra.mxu0 %vm550_vm1, %v6705_v53  ;;  %v887_v53 = vpop.xlane.xlu1 %886 }
 0x4d6   :  { %5392 = vmatprep.subr.msk.mxu0 %vm550_vm1, %v6893_v62  ;;  %1817 = vrot.lane.b32.xlu0 %v6603_v9, %s6277_s18 }
 0x4d7   :  { %1584 = vrot.lane.b32.xlu1 %v6595_v25, %s6276_s8 }
 0x4d9   :  { %5393 = vmatpush3.xpose.msk.msra.mxu0 %vm550_vm1, %v6893_v62  ;;  %v891_v62 = vpop.xlane.xlu1 %890 }
 0x4da   :  { %5394 = vmatprep.subr.msk.mxu0 %vm550_vm1, %v1182_v39 }
 0x4db   :  { %1580 = vrot.lane.b32.xlu1 %v6589_v37, %s6276_s8 }
 0x4dd   :  { %5395 = vmatpush3.xpose.msk.msra.mxu0 %vm550_vm1, %v1182_v39  ;;  %v889_v46 = vpop.xlane.xlu1 %888 }
 0x4de   :  { %5396 = vmatprep.subr.msk.mxu0 %vm550_vm1, %v6979_v56 }
 0x4df   :  { %1833 = vrot.lane.b32.xlu1 %v6619_v22, %s6277_s18 }
 0x4e1   :  { %5397 = vmatpush3.xpose.msk.msra.mxu0 %vm550_vm1, %v6979_v56  ;;  %v893_v2 = vpop.xlane.xlu1 %892 }
 0x4e2   :  { %5398 = vmatprep.subr.msk.mxu0 %vm550_vm1, %v1178_v58 }
 0x4e3   :  { %1827 = vrot.lane.b32.xlu1 %v6617_v18, %s6277_s18 }
 0x4e5   :  { %5399 = vmatpush3.xpose.msk.msra.mxu0 %vm550_vm1, %v1178_v58  ;;  %v897_v35 = vpop.xlane.xlu1 %896 }
 0x4e6   :  { %5400 = vmatprep.subr.msk.mxu0 %vm550_vm1, %v6987_v55 }
 0x4e7   :  { %1823 = vrot.lane.b32.xlu1 %v6613_v45, %s6277_s18 }
 0x4e9   :  { %5401 = vmatpush3.xpose.msk.msra.mxu0 %vm550_vm1, %v6987_v55  ;;  %v877_v47 = vpop.xlane.xlu0 %876  ;;  %v5931_v55 = vpop.eup %5930 }
 0x4ea   :  { %5934 = vrcp.f32 %v877_v47  ;;  %5402 = vmatprep.subr.msk.mxu0 %vm550_vm1, %v6993_v8  ;;  %v5933_v39 = vpop.eup %5932 }
 0x4eb   :  { %1819 = vrot.lane.b32.xlu1 %v6609_v13, %s6277_s18  ;;  %5936 = vrcp.f32 %v883_v60  ;;  %v924_v0 = vmul.f32 %v5933_v39, %v6917_v51  ;;  %v1166_v60 = vpop.permute.xlu1 %1165 }
 0x4ed   :  { %5403 = vmatpush3.xpose.msk.msra.mxu0 %vm550_vm1, %v6993_v8  ;;  %v885_v4 = vpop.xlane.xlu0 %884 }
 0x4ee   :  { %5938 = vrcp.f32 %v885_v4  ;;  %5404 = vmatprep.subr.msk.mxu0 %vm550_vm1, %v7003_v27 }
 0x4ef   :  { %5940 = vrcp.f32 %v887_v53  ;;  %v1164_v47 = vpop.permute.xlu1 %1163 }
 0x4f0   :  { %5942 = vrcp.f32 %v889_v46 }
 0x4f1   :  { %5405 = vmatpush3.xpose.msk.msra.mxu0 %vm550_vm1, %v7003_v27  ;;  %v895_v56 = vpop.xlane.xlu0 %894  ;;  %5944 = vrcp.f32 %v891_v62  ;;  %v923_v27 = vmul.f32 %v5931_v55, %v6909_v48 }
 0x4f2   :  { %5406 = vmatprep.subr.msk.mxu0 %vm550_vm1, %v7009_v10  ;;  %5946 = vrcp.f32 %v893_v2 }
 0x4f3   :  { %5948 = vrcp.f32 %v895_v56 }
 0x4f4   :  { %5950 = vrcp.f32 %v897_v35 }
 0x4f5   :  { %5407 = vmatpush3.xpose.msk.msra.mxu0 %vm550_vm1, %v7009_v10  ;;  %v899_v8 = vpop.xlane.xlu0 %898 }
 0x4f6   :  { %5952 = vrcp.f32 %v899_v8 }
 0x4f7   :  { %v5935_v36 = vpop.eup %5934 }
 0x4f8   :  { %v922_v49 = vmul.f32 %v5935_v36, %v6944_v57  ;;  %v5937_v29 = vpop.eup %5936 }
 0x4f9   :  { %v903_v43 = vpop.xlane.xlu0 %902  ;;  %v925_v23 = vmul.f32 %v5937_v29, %v6913_v20 }
 0x4fa   :  { %5363 = vmatprep.mubr.f32.mxu0 %v922_v49  ;;  %5954 = vrcp.f32 %v903_v43 }
 0x4fb   :  { %v5939_v19 = vpop.eup %5938  ;;  %5364 = vmatmul.mubr.f32.gmra.mxu0 %v923_v27 }
 0x4fc   :  { %5366 = vmatprep.mubr.f32.mxu0 %v924_v0  ;;  %v5941_v53 = vpop.eup %5940  ;;  %v926_v57 = vmul.f32 %v5939_v19, %v6949_v61 }
 0x4fd   :  { %v1168_v10 = vpop.permute.xlu0 %1167  ;;  %v5943_v58 = vpop.eup %5942  ;;  %v927_v51 = vmul.f32 %v5941_v53, %v6920_v44 }
 0x4fe   :  { %5408 = vmatprep.subr.msk.mxu0 %vm550_vm1, %v1168_v10  ;;  %v5945_v62 = vpop.eup %5944  ;;  %v928_v46 = vmul.f32 %v5943_v58, %v6928_v21  ;;  %v1162_v44 = vpop.permute.xlu1 %1161 }
 0x4ff   :  { %5367 = vmatmul.mubr.f32.gmra.mxu0 %v925_v23  ;;  %v5947_v20 = vpop.eup %5946  ;;  %v929_v4 = vmul.f32 %v5945_v62, %v6923_v42 }
 0x500   :  { %5409 = vmatpush3.xpose.msk.msra.mxu0 %vm550_vm1, %v1168_v10  ;;  %5369 = vmatprep.mubr.f32.mxu0 %v926_v57  ;;  %v5949_v2 = vpop.eup %5948  ;;  %v930_v56 = vmul.f32 %v5947_v20, %v6931_v52 }
 0x501   :  { %5410 = vmatprep.subr.msk.mxu0 %vm550_vm1, %v1166_v60  ;;  %v1136_v48 = vpop.permute.xlu0 %1135  ;;  %v5951_v55 = vpop.eup %5950  ;;  %v931_v8 = vmul.f32 %v5949_v2, %v6954_v31 }
 0x502   :  { %v932_v35 = vmul.f32 %v5951_v55, %v6935_v33  ;;  %v1130_v49 = vpop.permute.xlu1 %1129 }
 0x503   :  { %5370 = vmatmul.mubr.f32.gmra.mxu0 %v927_v51  ;;  %v5953_v39 = vpop.eup %5952 }
 0x504   :  { %5411 = vmatpush3.xpose.msk.msra.mxu0 %vm550_vm1, %v1166_v60  ;;  %5372 = vmatprep.mubr.f32.mxu0 %v928_v46  ;;  %v933_v52 = vmul.f32 %v5953_v39, %v6959_v1 }
 0x505   :  { %5412 = vmatprep.subr.msk.mxu0 %vm550_vm1, %v1164_v47  ;;  %v1140_v61 = vpop.permute.xlu0 %1139 }
 0x507   :  { %5373 = vmatmul.mubr.f32.gmra.mxu0 %v929_v4  ;;  %v5955_v10 = vpop.eup %5954 }
 0x508   :  { %5413 = vmatpush3.xpose.msk.msra.mxu0 %vm550_vm1, %v1164_v47  ;;  %5375 = vmatprep.mubr.f32.mxu0 %v930_v56  ;;  %v935_v1 = vmul.f32 %v5955_v10, %v6962_v32 }
 0x509   :  { %5414 = vmatprep.subr.msk.mxu0 %vm550_vm1, %v1162_v44  ;;  %v1144_v21 = vpop.permute.xlu0 %1143 }
 0x50b   :  { %5376 = vmatmul.mubr.f32.gmra.mxu0 %v931_v8 }
 0x50c   :  { %5415 = vmatpush3.xpose.msk.msra.mxu0 %vm550_vm1, %v1162_v44  ;;  %5378 = vmatprep.mubr.f32.mxu0 %v932_v35 }
 0x50d   :  { %v1148_v42 = vpop.permute.xlu0 %1147 }
 0x50f   :  { %5379 = vmatmul.mubr.f32.gmra.mxu0 %v933_v52 }
 0x511   :  { %v1152_v36 = vpop.permute.xlu0 %1151 }
 0x515   :  { %v1156_v27 = vpop.permute.xlu0 %1155 }
 0x517   :  { %v901_v29 = vpop.xlane.xlu1 %900 }
 0x518   :  { %5956 = vrcp.f32 %v901_v29 }
 0x519   :  { %v1160_v0 = vpop.permute.xlu0 %1159 }
 0x51b   :  { %v1132_v19 = vpop.permute.xlu1 %1131 }
 0x51d   :  { %v1609_v31 = vpop.permute.xlu0 %1608 }
 0x51e   :  { %5440 = vmatprep.subr.mxu1 %v1609_v31 }
 0x51f   :  { %5441 = vmatpush3.msra.mxu1 %v1609_v31  ;;  %v1134_v33 = vpop.permute.xlu1 %1133 }
 0x521   :  { %v1605_v62 = vpop.permute.xlu0 %1604 }
 0x523   :  { %v1138_v60 = vpop.permute.xlu1 %1137 }
 0x525   :  { %v5957_v23 = vpop.eup %5956 }
 0x526   :  { %v934_v53 = vmul.f32 %v5957_v23, %v6970_v3  ;;  %v1601_v3 = vpop.permute.xlu0 %1600 }
 0x527   :  { %v1142_v57 = vpop.permute.xlu1 %1141 }
 0x528   :  { %5381 = vmatprep.mubr.f32.mxu0 %v934_v53 }
 0x529   :  { %5382 = vmatmul.mubr.f32.gmra.mxu0 %v935_v1 }
 0x52a   :  { %5416 = vmatprep.mubr.msk.f32.mxu0 %vm550_vm1, %v1130_v49  ;;  %v1595_v46 = vpop.permute.xlu0 %1594 }
 0x52b   :  { %v1146_v43 = vpop.permute.xlu1 %1145 }
 0x52d   :  { %5417 = vmatmul.mubr.msk.f32.vlgmr.msra.gmra.mxu0 %vm550_vm1, %v1132_v19 }
 0x52e   :  { %5419 = vmatprep.mubr.msk.f32.mxu0 %vm550_vm1, %v1134_v33 }
 0x52f   :  { %v1150_v58 = vpop.permute.xlu1 %1149 }
 0x531   :  { %5420 = vmatmul.mubr.msk.f32.gmra.mxu0 %vm550_vm1, %v1136_v48 }
 0x532   :  { %5422 = vmatprep.mubr.msk.f32.mxu0 %vm550_vm1, %v1138_v60 }
 0x533   :  { %v1154_v51 = vpop.permute.xlu1 %1153 }
 0x535   :  { %5423 = vmatmul.mubr.msk.f32.gmra.mxu0 %vm550_vm1, %v1140_v61  ;;  %v1591_v61 = vpop.permute.xlu0 %1590 }
 0x536   :  { %5425 = vmatprep.mubr.msk.f32.mxu0 %vm550_vm1, %v1142_v57 }
 0x537   :  { %v1158_v32 = vpop.permute.xlu1 %1157 }
 0x539   :  { %5426 = vmatmul.mubr.msk.f32.gmra.mxu0 %vm550_vm1, %v1144_v21  ;;  %v1587_v56 = vpop.permute.xlu0 %1586 }
 0x53a   :  { %5428 = vmatprep.mubr.msk.f32.mxu0 %vm550_vm1, %v1146_v43 }
 0x53b   :  { %v1607_v47 = vpop.permute.xlu1 %1606 }
 0x53c   :  { %5442 = vmatprep.subr.mxu1 %v1607_v47 }
 0x53d   :  { %5429 = vmatmul.mubr.msk.f32.gmra.mxu0 %vm550_vm1, %v1148_v42  ;;  %5443 = vmatpush3.msra.mxu1 %v1607_v47  ;;  %v1583_v44 = vpop.permute.xlu0 %1582 }
 0x53e   :  { %5431 = vmatprep.mubr.msk.f32.mxu0 %vm550_vm1, %v1150_v58  ;;  %5444 = vmatprep.subr.mxu1 %v1605_v62 }
 0x53f   :  { %5445 = vmatpush3.msra.mxu1 %v1605_v62  ;;  %v1603_v48 = vpop.permute.xlu1 %1602 }
 0x540   :  { %5446 = vmatprep.subr.mxu1 %v1603_v48 }
 0x541   :  { %5432 = vmatmul.mubr.msk.f32.gmra.mxu0 %vm550_vm1, %v1152_v36  ;;  %5447 = vmatpush3.msra.mxu1 %v1603_v48  ;;  %v1579_v39 = vpop.permute.xlu0 %1578 }
 0x542   :  { %5434 = vmatprep.mubr.msk.f32.mxu0 %vm550_vm1, %v1154_v51  ;;  %5448 = vmatprep.subr.mxu1 %v1601_v3 }
 0x543   :  { %5449 = vmatpush3.msra.mxu1 %v1601_v3  ;;  %v1599_v20 = vpop.permute.xlu1 %1598 }
 0x544   :  { %5450 = vmatprep.subr.mxu1 %v1599_v20 }
 0x545   :  { %5435 = vmatmul.mubr.msk.f32.gmra.mxu0 %vm550_vm1, %v1156_v27  ;;  %5451 = vmatpush3.msra.mxu1 %v1599_v20 }
 0x546   :  { %5437 = vmatprep.mubr.msk.f32.mxu0 %vm550_vm1, %v1158_v32 }
 0x547   :  { %v1597_v4 = vpop.permute.xlu1 %1596 }
 0x548   :  { %5452 = vmatprep.subr.mxu1 %v1597_v4 }
 0x549   :  { %5438 = vmatmul.mubr.msk.f32.gmra.mxu0 %vm550_vm1, %v1160_v0  ;;  %5453 = vmatpush3.msra.mxu1 %v1597_v4 }
 0x54a   :  { %5454 = vmatprep.subr.mxu1 %v1595_v46 }
 0x54b   :  { %5455 = vmatpush3.msra.mxu1 %v1595_v46  ;;  %v1593_v2 = vpop.permute.xlu1 %1592 }
 0x54c   :  { %5456 = vmatprep.subr.mxu1 %v1593_v2 }
 0x54d   :  { %5457 = vmatpush3.msra.mxu1 %v1593_v2 }
 0x54e   :  { %5458 = vmatprep.subr.mxu1 %v1591_v61 }
 0x54f   :  { %5459 = vmatpush3.msra.mxu1 %v1591_v61  ;;  %v1589_v55 = vpop.permute.xlu1 %1588 }
 0x550   :  { %5460 = vmatprep.subr.mxu1 %v1589_v55 }
 0x551   :  { %5461 = vmatpush3.msra.mxu1 %v1589_v55 }
 0x552   :  { %5462 = vmatprep.subr.mxu1 %v1587_v56 }
 0x553   :  { %5463 = vmatpush3.msra.mxu1 %v1587_v56  ;;  %v1585_v21 = vpop.permute.xlu1 %1584 }
 0x554   :  { %5464 = vmatprep.subr.mxu1 %v1585_v21 }
 0x555   :  { %5465 = vmatpush3.msra.mxu1 %v1585_v21 }
 0x556   :  { %5466 = vmatprep.subr.mxu1 %v1583_v44 }
 0x557   :  { %5467 = vmatpush3.msra.mxu1 %v1583_v44  ;;  %v1581_v8 = vpop.permute.xlu1 %1580 }
 0x558   :  { %5468 = vmatprep.subr.mxu1 %v1581_v8 }
 0x559   :  { %5469 = vmatpush3.msra.mxu1 %v1581_v8 }
 0x55a   :  { %5470 = vmatprep.subr.mxu1 %v1579_v39 }
 0x55b   :  { %5471 = vmatpush3.msra.mxu1 %v1579_v39  ;;  %v7143_v35 = vpop.permute.xlu1 %1833 }
 0x55c   :  { %5496 = vmatprep.subr.msk.mxu1 %vm550_vm1, %v7143_v35 }
 0x588   :  { %v7147_v42 = vpop.f32.mrf.mxu0 }
 0x589   :  { %9008 = vst [vmem:[#allocation10_spill] sm:$0xff] %v7147_v42 }
 0x58a   :  { %v7149_v52 = vpop.f32.mrf.mxu0 }
 0x58b   :  { %9009 = vst [vmem:[#allocation11_spill] sm:$0xff] %v7149_v52 }
 0x5bb   :  { %v7151_v36 = vpop.f32.mrf.mxu0 }
 0x5bc   :  { %9010 = vst [vmem:[#allocation12_spill] sm:$0xff] %v7151_v36 }
 0x5bd   :  { %v7153_v49 = vpop.f32.mrf.mxu0 }
 0x5be   :  { %9011 = vst [vmem:[#allocation13_spill] sm:$0xff] %v7153_v49 }
 0x5bf   :  { %v7155_v27 = vpop.f32.mrf.mxu0 }
 0x5c0   :  { %9012 = vst [vmem:[#allocation14_spill] sm:$0xff] %v7155_v27 }
 0x5c1   :  { %v7157_v29 = vpop.f32.mrf.mxu0 }
 0x5c2   :  { %9013 = vst [vmem:[#allocation15_spill] sm:$0xff] %v7157_v29 }
 0x5c3   :  { %v7159_v0 = vpop.f32.mrf.mxu0 }
 0x5c4   :  { %9014 = vst [vmem:[#allocation16_spill] sm:$0xff] %v7159_v0 }
 0x5c5   :  { %v7161_v19 = vpop.f32.mrf.mxu0 }
 0x5c6   :  { %9015 = vst [vmem:[#allocation17_spill] sm:$0xff] %v7161_v19 }
 0x5c7   :  { %v7163_v31 = vpop.f32.mrf.mxu0 }
 0x5c8   :  { %9016 = vst [vmem:[#allocation18_spill] sm:$0xff] %v7163_v31 }
 0x5c9   :  { %v7165_v33 = vpop.f32.mrf.mxu0 }
 0x5ca   :  { %9017 = vst [vmem:[#allocation19_spill] sm:$0xff] %v7165_v33 }
 0x5cb   :  { %v7167_v60 = vpop.f32.mrf.mxu0 }
 0x5cc   :  { %9018 = vst [vmem:[#allocation20_spill] sm:$0xff] %v7167_v60 }
 0x5cd   :  { %v7169_v10 = vpop.f32.mrf.mxu0 }
 0x5ce   :  { %9019 = vst [vmem:[#allocation21_spill] sm:$0xff] %v7169_v10 }
 0x5cf   :  { %v7171_v23 = vpop.f32.mrf.mxu0 }
 0x5d0   :  { %9020 = vst [vmem:[#allocation22_spill] sm:$0xff] %v7171_v23 }
 0x5d1   :  { %v7173_v53 = vpop.f32.mrf.mxu0 }
 0x5d2   :  { %9021 = vst [vmem:[#allocation23_spill] sm:$0xff] %v7173_v53 }
 0x5e9   :  { %v7175_v57 = vpop.f32.mrf.mxu0 }
 0x5ea   :  { %9022 = vst [vmem:[#allocation24_spill] sm:$0xff] %v7175_v57 }
 0x5eb   :  { %v7177_v1 = vpop.f32.mrf.mxu0 }
 0x5ec   :  { %9023 = vst [vmem:[#allocation25_spill] sm:$0xff] %v7177_v1 }
 0x5ed   :  { %v5418_v43 = vpop.f32.mrf.mxu0 }
 0x5ee   :  { %v1403_v58 = vmul.f32 4.0, %v5418_v43 }
 0x5ef   :  { %v1323_v51 = vpop.f32.mrf.mxu0 }
 0x5f0   :  { %v7180_v62 = vadd.f32 %v1403_v58, %v6736_v17  ;;  %v1402_v32 = vmul.f32 4.0, %v1323_v51 }
 0x5f1   :  { %v5421_v47 = vpop.f32.mrf.mxu0 }
 0x5f2   :  { %v7183_v3 = vadd.f32 %v1402_v32, %v6741_v63  ;;  %1436 = vmax.xlane.f32.xlu0 %v7180_v62  ;;  %v1405_v2 = vmul.f32 4.0, %v5421_v47 }
 0x5f3   :  { %v1333_v48 = vpop.f32.mrf.mxu0 }
 0x5f4   :  { %1434 = vmax.xlane.f32.xlu1 %v7183_v3  ;;  %v1404_v56 = vmul.f32 4.0, %v1333_v48  ;;  %v7194_v44 = vadd.f32 %v1405_v2, %v6753_v16 }
 0x5f5   :  { %v5424_v17 = vpop.f32.mrf.mxu0 }
 0x5f6   :  { %v1407_v21 = vmul.f32 4.0, %v5424_v17  ;;  %v7197_v8 = vadd.f32 %v1404_v56, %v6767_v38 }
 0x5f7   :  { %v1343_v46 = vpop.f32.mrf.mxu0 }
 0x5f8   :  { %v1406_v39 = vmul.f32 4.0, %v1343_v46  ;;  %v7201_v58 = vadd.f32 %v1407_v21, %v6759_v30 }
 0x5f9   :  { %v5427_v20 = vpop.f32.mrf.mxu0 }
 0x5fa   :  { %v1409_v51 = vmul.f32 4.0, %v5427_v20  ;;  %v7205_v32 = vadd.f32 %v1406_v39, %v6785_v24  ;;  %v9025_v39 = vld [vmem:[#allocation8_spill] sm:$0xff] }
 0x5fb   :  { %v1353_v63 = vpop.f32.mrf.mxu0 }
 0x5fc   :  { %v1408_v47 = vmul.f32 4.0, %v1353_v63  ;;  %v7209_v38 = vadd.f32 %v1409_v51, %v6776_v40  ;;  %v9026_v51 = vld [vmem:[#allocation7_spill] sm:$0xff] }
 0x5fd   :  { %v5430_v61 = vpop.f32.mrf.mxu0 }
 0x5fe   :  { %v1411_v48 = vmul.f32 4.0, %v5430_v61  ;;  %v7213_v17 = vadd.f32 %v1408_v47, %v6803_v28 }
 0x5ff   :  { %v1363_v4 = vpop.f32.mrf.mxu0 }
 0x600   :  { %v1410_v30 = vmul.f32 4.0, %v1363_v4  ;;  %v7217_v24 = vadd.f32 %v1411_v48, %v6794_v50  ;;  %v7251_v48 = vpop.permute.xlu0 %1831 }
 0x601   :  { %v5433_v55 = vpop.f32.mrf.mxu0 }
 0x602   :  { %v1413_v20 = vmul.f32 4.0, %v5433_v55  ;;  %v7221_v63 = vadd.f32 %v1410_v30, %v6821_v59  ;;  %v9024_v55 = vld [vmem:[#allocation6_spill] sm:$0xff] }
 0x603   :  { %v1373_v43 = vpop.f32.mrf.mxu0 }
 0x604   :  { %v1412_v40 = vmul.f32 4.0, %v1373_v43  ;;  %v7225_v28 = vadd.f32 %v1413_v20, %v6812_v11  ;;  %v7253_v30 = vpop.permute.xlu0 %1829  ;;  %v7257_v20 = vpop.permute.xlu1 %1827 }
 0x605   :  { %1815 = vrot.lane.b32.xlu1 %v6605_v41, %s6277_s18  ;;  %v5436_v16 = vpop.f32.mrf.mxu0 }
 0x606   :  { %v1415_v4 = vmul.f32 4.0, %v5436_v16  ;;  %v7229_v2 = vadd.f32 %v1412_v40, %v6839_v26  ;;  %v9027_v26 = vld [vmem:[#allocation9_spill] sm:$0xff] }
 0x607   :  { %v1383_v46 = vpop.f32.mrf.mxu0 }
 0x608   :  { %1813 = vrot.lane.b32.xlu0 %v6599_v7, %s6277_s18  ;;  %v1414_v50 = vmul.f32 4.0, %v1383_v46  ;;  %v7233_v59 = vadd.f32 %v1415_v4, %v9024_v55  ;;  %v7255_v46 = vpop.permute.xlu0 %1825 }
 0x609   :  { %v5439_v61 = vpop.f32.mrf.mxu0 }
 0x60a   :  { %v1417_v21 = vmul.f32 4.0, %v5439_v61  ;;  %v7237_v43 = vadd.f32 %v1414_v50, %v9025_v39  ;;  %v7261_v61 = vpop.permute.xlu1 %1823 }
 0x60b   :  { %v1393_v56 = vpop.f32.mrf.mxu0 }
 0x60c   :  { %1811 = vrot.lane.b32.xlu0 %v6601_v34, %s6277_s18  ;;  %v1416_v11 = vmul.f32 4.0, %v1393_v56  ;;  %v7241_v47 = vadd.f32 %v1417_v21, %v9026_v51  ;;  %v7259_v40 = vpop.permute.xlu0 %1821 }
 0x60e   :  { %v7245_v16 = vadd.f32 %v1416_v11, %v9027_v26  ;;  %v7265_v50 = vpop.permute.xlu1 %1819 }
 0x610   :  { %v7263_v4 = vpop.permute.xlu0 %1817 }
 0x629   :  { %1440 = vmax.xlane.f32.xlu1 %v7194_v44 }
 0x62b   :  { %1438 = vmax.xlane.f32.xlu0 %v7197_v8 }
 0x62d   :  { %1444 = vmax.xlane.f32.xlu1 %v7201_v58 }
 0x62f   :  { %1442 = vmax.xlane.f32.xlu0 %v7205_v32 }
 0x631   :  { %1448 = vmax.xlane.f32.xlu1 %v7209_v38 }
 0x633   :  { %1446 = vmax.xlane.f32.xlu0 %v7213_v17 }
 0x635   :  { %1452 = vmax.xlane.f32.xlu1 %v7217_v24 }
 0x637   :  { %1450 = vmax.xlane.f32.xlu0 %v7221_v63 }
 0x639   :  { %1456 = vmax.xlane.f32.xlu1 %v7225_v28 }
 0x63b   :  { %1454 = vmax.xlane.f32.xlu0 %v7229_v2 }
 0x63d   :  { %1460 = vmax.xlane.f32.xlu1 %v7233_v59 }
 0x63f   :  { %1458 = vmax.xlane.f32.xlu0 %v7237_v43 }
 0x641   :  { %1464 = vmax.xlane.f32.xlu1 %v7241_v47 }
 0x643   :  { %1462 = vmax.xlane.f32.xlu0 %v7245_v16 }
 0x659   :  { %1809 = vrot.lane.b32.xlu0 %v6595_v25, %s6277_s18 }
 0x67b   :  { %v1437_v56 = vpop.xlane.xlu0 %1436 }
 0x67c   :  { %v1467_v55 = vsub.f32 %v7180_v62, %v1437_v56 }
 0x67d   :  { %v1435_v21 = vpop.xlane.xlu1 %1434 }
 0x67e   :  { %v1484_v39 = vmul.f32 1.442695, %v1467_v55  ;;  %v1466_v11 = vsub.f32 %v7183_v3, %v1435_v21 }
 0x67f   :  { %v7275_v1 = vpop.permute.xlu0 %1813 }
 0x680   :  { %5958 = vpow2.f32 %v1484_v39  ;;  %v1482_v51 = vmul.f32 1.442695, %v1466_v11 }
 0x681   :  { %v7277_v23 = vpop.permute.xlu1 %1815 }
 0x682   :  { %5960 = vpow2.f32 %v1482_v51 }
 0x683   :  { %v7279_v62 = vpop.permute.xlu0 %1811 }
 0x68d   :  { %v7269_v26 = vpop.eup %5958 }
 0x68e   :  { %1516 = vadd.xlane.f32.xlu0 %v7269_v26 }
 0x68f   :  { %v7272_v57 = vpop.eup %5960 }
 0x690   :  { %1514 = vadd.xlane.f32.xlu1 %v7272_v57 }
 0x6b2   :  { %v1441_v56 = vpop.xlane.xlu1 %1440 }
 0x6b3   :  { %v1469_v3 = vsub.f32 %v7194_v44, %v1441_v56 }
 0x6b4   :  { %v1439_v55 = vpop.xlane.xlu0 %1438 }
 0x6b5   :  { %v1488_v21 = vmul.f32 1.442695, %v1469_v3  ;;  %v1468_v39 = vsub.f32 %v7197_v8, %v1439_v55 }
 0x6b6   :  { %v1445_v11 = vpop.xlane.xlu1 %1444 }
 0x6b7   :  { %5962 = vpow2.f32 %v1488_v21  ;;  %v1486_v51 = vmul.f32 1.442695, %v1468_v39  ;;  %v1471_v53 = vsub.f32 %v7201_v58, %v1445_v11 }
 0x6b8   :  { %v1443_v60 = vpop.xlane.xlu0 %1442 }
 0x6b9   :  { %5964 = vpow2.f32 %v1486_v51  ;;  %v1492_v10 = vmul.f32 1.442695, %v1471_v53  ;;  %v1470_v31 = vsub.f32 %v7205_v32, %v1443_v60 }
 0x6ba   :  { %v1449_v33 = vpop.xlane.xlu1 %1448 }
 0x6bb   :  { %v1490_v0 = vmul.f32 1.442695, %v1470_v31  ;;  %5966 = vpow2.f32 %v1492_v10  ;;  %v1473_v44 = vsub.f32 %v7209_v38, %v1449_v33 }
 0x6bc   :  { %v1447_v19 = vpop.xlane.xlu0 %1446 }
 0x6bd   :  { %v1472_v56 = vsub.f32 %v7213_v17, %v1447_v19  ;;  %5968 = vpow2.f32 %v1490_v0  ;;  %v1496_v8 = vmul.f32 1.442695, %v1473_v44 }
 0x6be   :  { %v1453_v60 = vpop.xlane.xlu1 %1452 }
 0x6bf   :  { %v1494_v3 = vmul.f32 1.442695, %v1472_v56  ;;  %v1475_v21 = vsub.f32 %v7217_v24, %v1453_v60 }
 0x6c0   :  { %v1451_v10 = vpop.xlane.xlu0 %1450 }
 0x6c1   :  { %5970 = vpow2.f32 %v1494_v3  ;;  %v1500_v44 = vmul.f32 1.442695, %v1475_v21  ;;  %v1474_v56 = vsub.f32 %v7221_v63, %v1451_v10 }
 0x6c2   :  { %5972 = vpow2.f32 %v1496_v8  ;;  %v1457_v58 = vpop.xlane.xlu1 %1456 }
 0x6c3   :  { %v1498_v27 = vmul.f32 1.442695, %v1474_v56  ;;  %v1477_v36 = vsub.f32 %v7225_v28, %v1457_v58 }
 0x6c4   :  { %v7287_v55 = vpop.eup %5962  ;;  %v1455_v32 = vpop.xlane.xlu0 %1454 }
 0x6c5   :  { %1520 = vadd.xlane.f32.xlu0 %v7287_v55  ;;  %v1476_v17 = vsub.f32 %v7229_v2, %v1455_v32  ;;  %v1504_v24 = vmul.f32 1.442695, %v1477_v36 }
 0x6c6   :  { %v7290_v53 = vpop.eup %5964  ;;  %v1461_v38 = vpop.xlane.xlu1 %1460 }
 0x6c7   :  { %1518 = vadd.xlane.f32.xlu1 %v7290_v53  ;;  %v1502_v39 = vmul.f32 1.442695, %v1476_v17  ;;  %v1479_v11 = vsub.f32 %v7233_v59, %v1461_v38 }
 0x6c8   :  { %v7293_v31 = vpop.eup %5966  ;;  %v1459_v29 = vpop.xlane.xlu0 %1458 }
 0x6c9   :  { %5974 = vpow2.f32 %v1502_v39  ;;  %v1508_v3 = vmul.f32 1.442695, %v1479_v11  ;;  %v1478_v60 = vsub.f32 %v7237_v43, %v1459_v29 }
 0x6ca   :  { %v7296_v33 = vpop.eup %5968  ;;  %v1465_v51 = vpop.xlane.xlu1 %1464  ;;  %5976 = vpow2.f32 %v1500_v44 }
 0x6cb   :  { %1524 = vadd.xlane.f32.xlu1 %v7293_v31  ;;  %v1481_v8 = vsub.f32 %v7241_v47, %v1465_v51  ;;  %5978 = vpow2.f32 %v1508_v3  ;;  %v1506_v32 = vmul.f32 1.442695, %v1478_v60 }
 0x6cc   :  { %5980 = vpow2.f32 %v1498_v27  ;;  %v1463_v59 = vpop.xlane.xlu0 %1462 }
 0x6cd   :  { %v1512_v2 = vmul.f32 1.442695, %v1481_v8  ;;  %v1480_v63 = vsub.f32 %v7245_v16, %v1463_v59 }
 0x6ce   :  { %v7298_v19 = vpop.eup %5970 }
 0x6cf   :  { %1526 = vadd.xlane.f32.xlu0 %v7298_v19  ;;  %1522 = vadd.xlane.f32.xlu1 %v7296_v33  ;;  %v7302_v0 = vpop.eup %5972  ;;  %5982 = vpow2.f32 %v1512_v2  ;;  %v1510_v28 = vmul.f32 1.442695, %v1480_v63 }
 0x6d0   :  { %5984 = vpow2.f32 %v1504_v24  ;;  %v7337_v16 = vpop.permute.xlu0 %1809 }
 0x6d1   :  { %5986 = vpow2.f32 %v1506_v32 }
 0x6d2   :  { %5988 = vpow2.f32 %v1510_v28 }
 0x6d3   :  { %1528 = vadd.xlane.f32.xlu1 %v7302_v0 }
 0x6d6   :  { %v7317_v10 = vpop.eup %5974 }
 0x6d7   :  { %v7320_v47 = vpop.eup %5976 }
 0x6d8   :  { %v7322_v58 = vpop.eup %5978 }
 0x6d9   :  { %v7326_v36 = vpop.eup %5980 }
 0x6dc   :  { %v7328_v27 = vpop.eup %5982 }
 0x6dd   :  { %v7332_v29 = vpop.eup %5984 }
 0x6de   :  { %v7335_v43 = vpop.eup %5986 }
 0x6df   :  { %v7340_v38 = vpop.eup %5988 }
 0x6e4   :  { %1805 = vrot.lane.b32.xlu1 %v6589_v37, %s6277_s18 }
 0x6e5   :  { %1807 = vrot.lane.b32.xlu0 %v6597_v6, %s6277_s18 }
 0x704   :  { %1534 = vadd.xlane.f32.xlu0 %v7317_v10 }
 0x708   :  { %1532 = vadd.xlane.f32.xlu1 %v7320_v47  ;;  %1540 = vadd.xlane.f32.xlu0 %v7322_v58 }
 0x70c   :  { %1530 = vadd.xlane.f32.xlu1 %v7326_v36  ;;  %1544 = vadd.xlane.f32.xlu0 %v7328_v27 }
 0x710   :  { %1536 = vadd.xlane.f32.xlu1 %v7332_v29 }
 0x714   :  { %1538 = vadd.xlane.f32.xlu1 %v7335_v43 }
 0x717   :  { %v1517_v17 = vpop.xlane.xlu0 %1516 }
 0x718   :  { %1542 = vadd.xlane.f32.xlu1 %v7340_v38  ;;  %5990 = vrcp.f32 %v1517_v17 }
 0x719   :  { %v1515_v21 = vpop.xlane.xlu1 %1514 }
 0x71a   :  { %5992 = vrcp.f32 %v1515_v21 }
 0x722   :  { %1803 = vrot.lane.b32.xlu0 %v6591_v5, %s6277_s18 }
 0x725   :  { %v5991_v39 = vpop.eup %5990 }
 0x726   :  { %1773 = vrot.lane.b32.xlu0 %v6589_v37, %s6278_s19  ;;  %v1563_v44 = vmul.f32 %v5991_v39, %v7269_v26 }
 0x727   :  { %v5993_v11 = vpop.eup %5992 }
 0x728   :  { %v1562_v51 = vmul.f32 %v5993_v11, %v7272_v57 }
 0x729   :  { %1771 = vrot.lane.b32.xlu1 %v6591_v5, %s6278_s19 }
 0x72a   :  { %1777 = vrot.lane.b32.xlu0 %v6595_v25, %s6278_s19  ;;  %5472 = vmatprep.mubr.f32.mxu1 %v1562_v51 }
 0x72b   :  { %5473 = vmatmul.mubr.f32.vlgmr.msra.gmra.mxu1 %v1563_v44 }
 0x72c   :  { %5497 = vmatpush3.xpose.msk.msra.mxu1 %vm550_vm1, %v7143_v35 }
 0x72d   :  { %5498 = vmatprep.subr.msk.mxu1 %vm550_vm1, %v7251_v48  ;;  %1775 = vrot.lane.b32.xlu1 %v6597_v6, %s6278_s19 }
 0x72e   :  { %1781 = vrot.lane.b32.xlu0 %v6599_v7, %s6278_s19 }
 0x730   :  { %5499 = vmatpush3.xpose.msk.msra.mxu1 %vm550_vm1, %v7251_v48 }
 0x731   :  { %5500 = vmatprep.subr.msk.mxu1 %vm550_vm1, %v7253_v30  ;;  %1779 = vrot.lane.b32.xlu1 %v6601_v34, %s6278_s19 }
 0x732   :  { %1785 = vrot.lane.b32.xlu0 %v6603_v9, %s6278_s19 }
 0x734   :  { %5501 = vmatpush3.xpose.msk.msra.mxu1 %vm550_vm1, %v7253_v30 }
 0x735   :  { %5502 = vmatprep.subr.msk.mxu1 %vm550_vm1, %v7257_v20  ;;  %1783 = vrot.lane.b32.xlu1 %v6605_v41, %s6278_s19 }
 0x736   :  { %1789 = vrot.lane.b32.xlu0 %v6607_v12, %s6278_s19 }
 0x738   :  { %5503 = vmatpush3.xpose.msk.msra.mxu1 %vm550_vm1, %v7257_v20 }
 0x739   :  { %5504 = vmatprep.subr.msk.mxu1 %vm550_vm1, %v7255_v46  ;;  %1787 = vrot.lane.b32.xlu1 %v6609_v13, %s6278_s19 }
 0x73a   :  { %1793 = vrot.lane.b32.xlu0 %v6611_v14, %s6278_s19 }
 0x73c   :  { %5505 = vmatpush3.xpose.msk.msra.mxu1 %vm550_vm1, %v7255_v46 }
 0x73d   :  { %5506 = vmatprep.subr.msk.mxu1 %vm550_vm1, %v7261_v61  ;;  %1791 = vrot.lane.b32.xlu1 %v6613_v45, %s6278_s19 }
 0x73e   :  { %1797 = vrot.lane.b32.xlu0 %v6615_v15, %s6278_s19 }
 0x740   :  { %5507 = vmatpush3.xpose.msk.msra.mxu1 %vm550_vm1, %v7261_v61 }
 0x741   :  { %5508 = vmatprep.subr.msk.mxu1 %vm550_vm1, %v7259_v40  ;;  %1795 = vrot.lane.b32.xlu1 %v6617_v18, %s6278_s19 }
 0x742   :  { %1801 = vrot.lane.b32.xlu0 %v6619_v22, %s6278_s19 }
 0x744   :  { %5509 = vmatpush3.xpose.msk.msra.mxu1 %vm550_vm1, %v7259_v40 }
 0x745   :  { %5510 = vmatprep.subr.msk.mxu1 %vm550_vm1, %v7265_v50  ;;  %1799 = vrot.lane.b32.xlu1 %v6622_v54, %s6278_s19 }
 0x746   :  { %2250 = vrot.lane.b32.xlu0 %v6619_v22, %s6279_s20 }
 0x748   :  { %5511 = vmatpush3.xpose.msk.msra.mxu1 %vm550_vm1, %v7265_v50 }
 0x749   :  { %5512 = vmatprep.subr.msk.mxu1 %vm550_vm1, %v7263_v4  ;;  %2248 = vrot.lane.b32.xlu1 %v6622_v54, %s6279_s20 }
 0x74a   :  { %2246 = vrot.lane.b32.xlu0 %v6615_v15, %s6279_s20 }
 0x74c   :  { %5513 = vmatpush3.xpose.msk.msra.mxu1 %vm550_vm1, %v7263_v4 }
 0x74d   :  { %5514 = vmatprep.subr.msk.mxu1 %vm550_vm1, %v7277_v23  ;;  %2244 = vrot.lane.b32.xlu1 %v6617_v18, %s6279_s20 }
 0x74e   :  { %v1521_v35 = vpop.xlane.xlu0 %1520  ;;  %2242 = vrot.lane.b32.xlu0 %v6611_v14, %s6279_s20 }
 0x74f   :  { %5994 = vrcp.f32 %v1521_v35 }
 0x750   :  { %5515 = vmatpush3.xpose.msk.msra.mxu1 %vm550_vm1, %v7277_v23  ;;  %v1519_v57 = vpop.xlane.xlu1 %1518 }
 0x751   :  { %5516 = vmatprep.subr.msk.mxu1 %vm550_vm1, %v7275_v1  ;;  %5996 = vrcp.f32 %v1519_v57  ;;  %2240 = vrot.lane.b32.xlu1 %v6613_v45, %s6279_s20 }
 0x752   :  { %2236 = vrot.lane.b32.xlu0 %v6609_v13, %s6279_s20 }
 0x754   :  { %5517 = vmatpush3.xpose.msk.msra.mxu1 %vm550_vm1, %v7275_v1  ;;  %v1525_v48 = vpop.xlane.xlu1 %1524 }
 0x755   :  { %5518 = vmatprep.subr.msk.mxu1 %vm550_vm1, %v7279_v62  ;;  %2238 = vrot.lane.b32.xlu1 %v6607_v12, %s6279_s20  ;;  %5998 = vrcp.f32 %v1525_v48 }
 0x756   :  { %2232 = vrot.lane.b32.xlu0 %v6605_v41, %s6279_s20 }
 0x758   :  { %5519 = vmatpush3.xpose.msk.msra.mxu1 %vm550_vm1, %v7279_v62  ;;  %v1527_v23 = vpop.xlane.xlu0 %1526  ;;  %v1523_v30 = vpop.xlane.xlu1 %1522 }
 0x759   :  { %6000 = vrcp.f32 %v1527_v23  ;;  %5520 = vmatprep.subr.msk.mxu1 %vm550_vm1, %v7337_v16  ;;  %2234 = vrot.lane.b32.xlu1 %v6603_v9, %s6279_s20 }
 0x75a   :  { %6002 = vrcp.f32 %v1523_v30  ;;  %2228 = vrot.lane.b32.xlu0 %v6601_v34, %s6279_s20 }
 0x75c   :  { %5521 = vmatpush3.xpose.msk.msra.mxu1 %vm550_vm1, %v7337_v16  ;;  %v1808_v1 = vpop.permute.xlu0 %1807  ;;  %v1529_v46 = vpop.xlane.xlu1 %1528 }
 0x75d   :  { %v5995_v20 = vpop.eup %5994  ;;  %6004 = vrcp.f32 %v1529_v46  ;;  %2230 = vrot.lane.b32.xlu1 %v6599_v7, %s6279_s20  ;;  %5522 = vmatprep.subr.msk.mxu1 %vm550_vm1, %v1808_v1 }
 0x75e   :  { %v5997_v40 = vpop.eup %5996  ;;  %2224 = vrot.lane.b32.xlu0 %v6597_v6, %s6279_s20  ;;  %v1565_v50 = vmul.f32 %v5995_v20, %v7287_v55 }
 0x75f   :  { %v1564_v61 = vmul.f32 %v5997_v40, %v7290_v53 }
 0x760   :  { %5523 = vmatpush3.xpose.msk.msra.mxu1 %vm550_vm1, %v1808_v1  ;;  %v1806_v4 = vpop.permute.xlu1 %1805 }
 0x761   :  { %2226 = vrot.lane.b32.xlu1 %v6595_v25, %s6279_s20  ;;  %5475 = vmatprep.mubr.f32.mxu1 %v1564_v61 }
 0x762   :  { %5524 = vmatprep.subr.msk.mxu1 %vm550_vm1, %v1806_v4  ;;  %2220 = vrot.lane.b32.xlu0 %v6591_v5, %s6279_s20  ;;  %v5999_v26 = vpop.eup %5998 }
 0x763   :  { %5476 = vmatmul.mubr.f32.gmra.mxu1 %v1565_v50  ;;  %v1567_v56 = vmul.f32 %v5999_v26, %v7293_v31 }
 0x764   :  { %5525 = vmatpush3.xpose.msk.msra.mxu1 %vm550_vm1, %v1806_v4 }
 0x765   :  { %2222 = vrot.lane.b32.xlu1 %v6589_v37, %s6279_s20 }
 0x766   :  { %v6001_v62 = vpop.eup %6000  ;;  %2473 = vrot.lane.b32.xlu0 %v6622_v54, %s6280_s21 }
 0x767   :  { %v6003_v53 = vpop.eup %6002  ;;  %v1568_v8 = vmul.f32 %v6001_v62, %v7298_v19 }
 0x768   :  { %v1566_v55 = vmul.f32 %v6003_v53, %v7296_v33 }
 0x769   :  { %2475 = vrot.lane.b32.xlu1 %v6619_v22, %s6280_s21 }
 0x76a   :  { %v6005_v3 = vpop.eup %6004  ;;  %5478 = vmatprep.mubr.f32.mxu1 %v1566_v55  ;;  %2471 = vrot.lane.b32.xlu0 %v6615_v15, %s6280_s21 }
 0x76b   :  { %5479 = vmatmul.mubr.f32.gmra.mxu1 %v1567_v56  ;;  %v1569_v2 = vmul.f32 %v6005_v3, %v7302_v0 }
 0x76c   :  { %5481 = vmatprep.mubr.f32.mxu1 %v1568_v8 }
 0x76d   :  { %2469 = vrot.lane.b32.xlu1 %v6617_v18, %s6280_s21 }
 0x76e   :  { %2467 = vrot.lane.b32.xlu0 %v6611_v14, %s6280_s21 }
 0x76f   :  { %5482 = vmatmul.mubr.f32.gmra.mxu1 %v1569_v2 }
 0x771   :  { %2465 = vrot.lane.b32.xlu1 %v6613_v45, %s6280_s21 }
 0x772   :  { %2463 = vrot.lane.b32.xlu0 %v6607_v12, %s6280_s21 }
 0x775   :  { %2461 = vrot.lane.b32.xlu1 %v6609_v13, %s6280_s21 }
 0x776   :  { %2459 = vrot.lane.b32.xlu0 %v6603_v9, %s6280_s21 }
 0x779   :  { %2457 = vrot.lane.b32.xlu1 %v6605_v41, %s6280_s21 }
 0x77a   :  { %2455 = vrot.lane.b32.xlu0 %v6599_v7, %s6280_s21 }
 0x77e   :  { %2453 = vrot.lane.b32.xlu0 %v6601_v34, %s6280_s21 }
 0x78d   :  { %v1535_v31 = vpop.xlane.xlu0 %1534 }
 0x78e   :  { %6006 = vrcp.f32 %v1535_v31 }
 0x791   :  { %v1541_v33 = vpop.xlane.xlu0 %1540  ;;  %v1533_v19 = vpop.xlane.xlu1 %1532 }
 0x792   :  { %6008 = vrcp.f32 %v1533_v19 }
 0x795   :  { %v1545_v0 = vpop.xlane.xlu0 %1544  ;;  %v1531_v24 = vpop.xlane.xlu1 %1530 }
 0x796   :  { %6010 = vrcp.f32 %v1531_v24 }
 0x799   :  { %v1804_v60 = vpop.permute.xlu0 %1803  ;;  %v1537_v59 = vpop.xlane.xlu1 %1536 }
 0x79a   :  { %6012 = vrcp.f32 %v1537_v59  ;;  %5526 = vmatprep.subr.msk.mxu1 %vm550_vm1, %v1804_v60 }
 0x79b   :  { %5527 = vmatpush3.xpose.msk.msra.mxu1 %vm550_vm1, %v1804_v60  ;;  %6014 = vrcp.f32 %v1541_v33  ;;  %v6007_v17 = vpop.eup %6006 }
 0x79c   :  { %v1572_v48 = vmul.f32 %v6007_v17, %v7317_v10 }
 0x79d   :  { %v1774_v32 = vpop.permute.xlu0 %1773  ;;  %v1539_v63 = vpop.xlane.xlu1 %1538 }
 0x79e   :  { %6016 = vrcp.f32 %v1539_v63 }
 0x79f   :  { %6018 = vrcp.f32 %v1545_v0  ;;  %v6009_v21 = vpop.eup %6008 }
 0x7a0   :  { %v1571_v35 = vmul.f32 %v6009_v21, %v7320_v47 }
 0x7a1   :  { %v1778_v28 = vpop.permute.xlu0 %1777  ;;  %v1543_v16 = vpop.xlane.xlu1 %1542 }
 0x7a2   :  { %6020 = vrcp.f32 %v1543_v16 }
 0x7a3   :  { %v6011_v39 = vpop.eup %6010 }
 0x7a4   :  { %v1570_v44 = vmul.f32 %v6011_v39, %v7326_v36 }
 0x7a5   :  { %v1782_v11 = vpop.permute.xlu0 %1781  ;;  %v1772_v51 = vpop.permute.xlu1 %1771 }
 0x7a6   :  { %5484 = vmatprep.mubr.f32.mxu1 %v1570_v44 }
 0x7a7   :  { %v6013_v57 = vpop.eup %6012  ;;  %5485 = vmatmul.mubr.f32.gmra.mxu1 %v1571_v35 }
 0x7a8   :  { %v1573_v23 = vmul.f32 %v6013_v57, %v7332_v29  ;;  %5487 = vmatprep.mubr.f32.mxu1 %v1572_v48  ;;  %v6015_v46 = vpop.eup %6014 }
 0x7a9   :  { %v1786_v30 = vpop.permute.xlu0 %1785  ;;  %v1776_v1 = vpop.permute.xlu1 %1775  ;;  %v1575_v47 = vmul.f32 %v6015_v46, %v7322_v58 }
 0x7ab   :  { %v6017_v20 = vpop.eup %6016  ;;  %5488 = vmatmul.mubr.f32.gmra.mxu1 %v1573_v23 }
 0x7ac   :  { %v1574_v40 = vmul.f32 %v6017_v20, %v7335_v43  ;;  %v6019_v36 = vpop.eup %6018 }
 0x7ad   :  { %v1790_v61 = vpop.permute.xlu0 %1789  ;;  %v1780_v4 = vpop.permute.xlu1 %1779  ;;  %v1577_v62 = vmul.f32 %v6019_v36, %v7328_v27 }
 0x7ae   :  { %5490 = vmatprep.mubr.f32.mxu1 %v1574_v40 }
 0x7af   :  { %v6021_v50 = vpop.eup %6020  ;;  %5491 = vmatmul.mubr.f32.gmra.mxu1 %v1575_v47 }
 0x7b0   :  { %v1576_v10 = vmul.f32 %v6021_v50, %v7340_v38 }
 0x7b1   :  { %v1794_v26 = vpop.permute.xlu0 %1793  ;;  %v1784_v29 = vpop.permute.xlu1 %1783 }
 0x7b2   :  { %5493 = vmatprep.mubr.f32.mxu1 %v1576_v10 }
 0x7b3   :  { %5494 = vmatmul.mubr.f32.gmra.mxu1 %v1577_v62 }
 0x7b4   :  { %5528 = vmatprep.mubr.msk.f32.mxu1 %vm550_vm1, %v1772_v51 }
 0x7b5   :  { %v1798_v53 = vpop.permute.xlu0 %1797  ;;  %v1788_v43 = vpop.permute.xlu1 %1787 }
 0x7b7   :  { %5529 = vmatmul.mubr.msk.f32.vlgmr.msra.gmra.mxu1 %vm550_vm1, %v1774_v32 }
 0x7b8   :  { %5531 = vmatprep.mubr.msk.f32.mxu1 %vm550_vm1, %v1776_v1 }
 0x7b9   :  { %v1802_v55 = vpop.permute.xlu0 %1801  ;;  %v1792_v58 = vpop.permute.xlu1 %1791 }
 0x7bb   :  { %5532 = vmatmul.mubr.msk.f32.gmra.mxu1 %vm550_vm1, %v1778_v28 }
 0x7bc   :  { %5534 = vmatprep.mubr.msk.f32.mxu1 %vm550_vm1, %v1780_v4 }
 0x7bd   :  { %v2251_v38 = vpop.permute.xlu0 %2250  ;;  %v1796_v56 = vpop.permute.xlu1 %1795 }
 0x7be   :  { %5552 = vmatprep.subr.mxu0 %v2251_v38 }
 0x7bf   :  { %5553 = vmatpush3.msra.mxu0 %v2251_v38  ;;  %5535 = vmatmul.mubr.msk.f32.gmra.mxu1 %vm550_vm1, %v1782_v11 }
 0x7c0   :  { %5537 = vmatprep.mubr.msk.f32.mxu1 %vm550_vm1, %v1784_v29 }
 0x7c1   :  { %v2247_v27 = vpop.permute.xlu0 %2246  ;;  %v1800_v3 = vpop.permute.xlu1 %1799 }
 0x7c3   :  { %5538 = vmatmul.mubr.msk.f32.gmra.mxu1 %vm550_vm1, %v1786_v30 }
 0x7c4   :  { %5540 = vmatprep.mubr.msk.f32.mxu1 %vm550_vm1, %v1788_v43  ;;  %v7568_v43 = vld [vmem:[%s8977_s1] sm:$0xff] }
 0x7c5   :  { %v2243_v8 = vpop.permute.xlu0 %2242  ;;  %v2249_v2 = vpop.permute.xlu1 %2248 }
 0x7c6   :  { %5554 = vmatprep.subr.mxu0 %v2249_v2 }
 0x7c7   :  { %5555 = vmatpush3.msra.mxu0 %v2249_v2  ;;  %5541 = vmatmul.mubr.msk.f32.gmra.mxu1 %vm550_vm1, %v1790_v61  ;;  %v7586_v2 = vld [vmem:[%s8977_s1 + $0x10] sm:$0xff] }
 0x7c8   :  { %5556 = vmatprep.subr.mxu0 %v2247_v27  ;;  %5543 = vmatprep.mubr.msk.f32.mxu1 %vm550_vm1, %v1792_v58  ;;  %9044 = vst [vmem:[#allocation38_spill] sm:$0xff] %v7586_v2 }
 0x7c9   :  { %5557 = vmatpush3.msra.mxu0 %v2247_v27  ;;  %v2245_v31 = vpop.permute.xlu1 %2244  ;;  %v2237_v33 = vpop.permute.xlu0 %2236 }
 0x7ca   :  { %5558 = vmatprep.subr.mxu0 %v2245_v31 }
 0x7cb   :  { %5559 = vmatpush3.msra.mxu0 %v2245_v31  ;;  %5544 = vmatmul.mubr.msk.f32.gmra.mxu1 %vm550_vm1, %v1794_v26  ;;  %v7560_v26 = vld [vmem:[%s8977_s1 + $0x8] sm:$0xff] }
 0x7cc   :  { %5560 = vmatprep.subr.mxu0 %v2243_v8  ;;  %5546 = vmatprep.mubr.msk.f32.mxu1 %vm550_vm1, %v1796_v56 }
 0x7cd   :  { %5561 = vmatpush3.msra.mxu0 %v2243_v8  ;;  %v2241_v19 = vpop.permute.xlu1 %2240  ;;  %v2233_v0 = vpop.permute.xlu0 %2232 }
 0x7ce   :  { %5562 = vmatprep.subr.mxu0 %v2241_v19 }
 0x7cf   :  { %5563 = vmatpush3.msra.mxu0 %v2241_v19  ;;  %5547 = vmatmul.mubr.msk.f32.gmra.mxu1 %vm550_vm1, %v1798_v53 }
 0x7d0   :  { %5549 = vmatprep.mubr.msk.f32.mxu1 %vm550_vm1, %v1800_v3  ;;  %v7578_v3 = vld [vmem:[%s8977_s1 + $0x18] sm:$0xff] }
 0x7d1   :  { %v2239_v24 = vpop.permute.xlu1 %2238  ;;  %v2229_v59 = vpop.permute.xlu0 %2228 }
 0x7d2   :  { %5564 = vmatprep.subr.mxu0 %v2239_v24 }
 0x7d3   :  { %5565 = vmatpush3.msra.mxu0 %v2239_v24  ;;  %5550 = vmatmul.mubr.msk.f32.gmra.mxu1 %vm550_vm1, %v1802_v55 }
 0x7d4   :  { %5566 = vmatprep.subr.mxu0 %v2237_v33 }
 0x7d5   :  { %5567 = vmatpush3.msra.mxu0 %v2237_v33  ;;  %v2235_v60 = vpop.permute.xlu1 %2234  ;;  %v2225_v63 = vpop.permute.xlu0 %2224 }
 0x7d6   :  { %5568 = vmatprep.subr.mxu0 %v2235_v60 }
 0x7d7   :  { %5569 = vmatpush3.msra.mxu0 %v2235_v60  ;;  %v7596_v60 = vld [vmem:[%s8977_s1 + $0x28] sm:$0xff] }
 0x7d8   :  { %5570 = vmatprep.subr.mxu0 %v2233_v0  ;;  %9045 = vst [vmem:[#allocation39_spill] sm:$0xff] %v7596_v60 }
 0x7d9   :  { %5571 = vmatpush3.msra.mxu0 %v2233_v0  ;;  %v2231_v32 = vpop.permute.xlu1 %2230  ;;  %v2221_v17 = vpop.permute.xlu0 %2220 }
 0x7da   :  { %5572 = vmatprep.subr.mxu0 %v2231_v32 }
 0x7db   :  { %5573 = vmatpush3.msra.mxu0 %v2231_v32  ;;  %v7604_v32 = vld [vmem:[%s8977_s1 + $0x20] sm:$0xff] }
 0x7dc   :  { %5574 = vmatprep.subr.mxu0 %v2229_v59  ;;  %9046 = vst [vmem:[#allocation40_spill] sm:$0xff] %v7604_v32 }
 0x7dd   :  { %5575 = vmatpush3.msra.mxu0 %v2229_v59  ;;  %v2227_v28 = vpop.permute.xlu1 %2226 }
 0x7de   :  { %5576 = vmatprep.subr.mxu0 %v2227_v28 }
 0x7df   :  { %5577 = vmatpush3.msra.mxu0 %v2227_v28 }
 0x7e0   :  { %5578 = vmatprep.subr.mxu0 %v2225_v63 }
 0x7e1   :  { %5579 = vmatpush3.msra.mxu0 %v2225_v63  ;;  %v2223_v16 = vpop.permute.xlu1 %2222 }
 0x7e2   :  { %5580 = vmatprep.subr.mxu0 %v2223_v16 }
 0x7e3   :  { %5581 = vmatpush3.msra.mxu0 %v2223_v16 }
 0x7e4   :  { %5582 = vmatprep.subr.mxu0 %v2221_v17 }
 0x7e5   :  { %5583 = vmatpush3.msra.mxu0 %v2221_v17  ;;  %v7521_v21 = vpop.permute.xlu1 %2475 }
 0x7e6   :  { %5608 = vmatprep.subr.msk.mxu0 %vm550_vm1, %v7521_v21 }
 0x7eb   :  { %v7525_v39 = vpop.f32.mrf.mxu1 }
 0x7ec   :  { %9028 = vst [vmem:[#allocation6_spill] sm:$0xff] %v7525_v39 }
 0x7ed   :  { %v7527_v11 = vpop.f32.mrf.mxu1 }
 0x7ee   :  { %9029 = vst [vmem:[#allocation8_spill] sm:$0xff] %v7527_v11 }
 0x823   :  { %v7529_v51 = vpop.f32.mrf.mxu1 }
 0x824   :  { %9030 = vst [vmem:[#allocation7_spill] sm:$0xff] %v7529_v51 }
 0x825   :  { %v7531_v44 = vpop.f32.mrf.mxu1 }
 0x826   :  { %9031 = vst [vmem:[#allocation9_spill] sm:$0xff] %v7531_v44 }
 0x82b   :  { %v7533_v35 = vpop.f32.mrf.mxu1 }
 0x82c   :  { %9032 = vst [vmem:[#allocation26_spill] sm:$0xff] %v7533_v35 }
 0x82d   :  { %v7535_v57 = vpop.f32.mrf.mxu1 }
 0x82e   :  { %9033 = vst [vmem:[#allocation27_spill] sm:$0xff] %v7535_v57 }
 0x82f   :  { %v7537_v48 = vpop.f32.mrf.mxu1 }
 0x830   :  { %9034 = vst [vmem:[#allocation28_spill] sm:$0xff] %v7537_v48 }
 0x831   :  { %v7539_v23 = vpop.f32.mrf.mxu1 }
 0x832   :  { %9035 = vst [vmem:[#allocation29_spill] sm:$0xff] %v7539_v23 }
 0x867   :  { %v7541_v30 = vpop.f32.mrf.mxu1 }
 0x868   :  { %9036 = vst [vmem:[#allocation30_spill] sm:$0xff] %v7541_v30 }
 0x869   :  { %v7543_v1 = vpop.f32.mrf.mxu1 }
 0x86a   :  { %9037 = vst [vmem:[#allocation31_spill] sm:$0xff] %v7543_v1  ;;  %v7711_v1 = vpop.permute.xlu1 %2469 }
 0x86b   :  { %v7545_v46 = vpop.f32.mrf.mxu1 }
 0x86c   :  { %9038 = vst [vmem:[#allocation32_spill] sm:$0xff] %v7545_v46 }
 0x86d   :  { %v7547_v20 = vpop.f32.mrf.mxu1 }
 0x86e   :  { %9039 = vst [vmem:[#allocation33_spill] sm:$0xff] %v7547_v20 }
 0x86f   :  { %v7549_v40 = vpop.f32.mrf.mxu1 }
 0x870   :  { %9040 = vst [vmem:[#allocation34_spill] sm:$0xff] %v7549_v40 }
 0x871   :  { %v7551_v61 = vpop.f32.mrf.mxu1 }
 0x872   :  { %9041 = vst [vmem:[#allocation35_spill] sm:$0xff] %v7551_v61 }
 0x873   :  { %v7553_v4 = vpop.f32.mrf.mxu1 }
 0x874   :  { %9042 = vst [vmem:[#allocation36_spill] sm:$0xff] %v7553_v4 }
 0x875   :  { %v7555_v36 = vpop.f32.mrf.mxu1 }
 0x876   :  { %9043 = vst [vmem:[#allocation37_spill] sm:$0xff] %v7555_v36 }
 0x877   :  { %v5530_v47 = vpop.f32.mrf.mxu1 }
 0x878   :  { %v2045_v50 = vmul.f32 4.0, %v5530_v47 }
 0x879   :  { %v1965_v10 = vpop.f32.mrf.mxu1 }
 0x87a   :  { %v7563_v29 = vadd.f32 %v7560_v26, %v2045_v50  ;;  %v2044_v62 = vmul.f32 4.0, %v1965_v10  ;;  %v7614_v50 = vld [vmem:[%s8977_s1 + $0x38] sm:$0xff] }
 0x87b   :  { %v5533_v53 = vpop.f32.mrf.mxu1  ;;  %9047 = vst [vmem:[#allocation41_spill] sm:$0xff] %v7614_v50 }
 0x87c   :  { %v7571_v55 = vadd.f32 %v7568_v43, %v2044_v62  ;;  %v2047_v58 = vmul.f32 4.0, %v5533_v53  ;;  %2078 = vmax.xlane.f32.xlu0 %v7563_v29  ;;  %v7622_v62 = vld [vmem:[%s8977_s1 + $0x30] sm:$0xff] }
 0x87d   :  { %v1975_v38 = vpop.f32.mrf.mxu1  ;;  %9048 = vst [vmem:[#allocation42_spill] sm:$0xff] %v7622_v62 }
 0x87e   :  { %v2046_v56 = vmul.f32 4.0, %v1975_v38  ;;  %2076 = vmax.xlane.f32.xlu1 %v7571_v55  ;;  %v7581_v8 = vadd.f32 %v7578_v3, %v2047_v58 }
 0x87f   :  { %v5536_v27 = vpop.f32.mrf.mxu1 }
 0x880   :  { %v7589_v31 = vadd.f32 %v7586_v2, %v2046_v56  ;;  %v2049_v33 = vmul.f32 4.0, %v5536_v27 }
 0x881   :  { %v1985_v19 = vpop.f32.mrf.mxu1 }
 0x882   :  { %v2048_v0 = vmul.f32 4.0, %v1985_v19  ;;  %2082 = vmax.xlane.f32.xlu1 %v7581_v8  ;;  %2080 = vmax.xlane.f32.xlu0 %v7589_v31  ;;  %v7599_v59 = vadd.f32 %v7596_v60, %v2049_v33  ;;  %v7632_v33 = vld [vmem:[%s8977_s1 + $0x48] sm:$0xff] }
 0x883   :  { %v5539_v24 = vpop.f32.mrf.mxu1  ;;  %9049 = vst [vmem:[#allocation43_spill] sm:$0xff] %v7632_v33 }
 0x884   :  { %v7607_v63 = vadd.f32 %v7604_v32, %v2048_v0  ;;  %v2051_v28 = vmul.f32 4.0, %v5539_v24  ;;  %v7640_v0 = vld [vmem:[%s8977_s1 + $0x40] sm:$0xff] }
 0x885   :  { %v1995_v16 = vpop.f32.mrf.mxu1  ;;  %9050 = vst [vmem:[#allocation44_spill] sm:$0xff] %v7640_v0 }
 0x886   :  { %v2050_v17 = vmul.f32 4.0, %v1995_v16  ;;  %2086 = vmax.xlane.f32.xlu1 %v7599_v59  ;;  %2084 = vmax.xlane.f32.xlu0 %v7607_v63  ;;  %v7617_v10 = vadd.f32 %v7614_v50, %v2051_v28 }
 0x887   :  { %v5542_v47 = vpop.f32.mrf.mxu1 }
 0x888   :  { %v7625_v53 = vadd.f32 %v7622_v62, %v2050_v17  ;;  %v2053_v58 = vmul.f32 4.0, %v5542_v47 }
 0x889   :  { %v2005_v38 = vpop.f32.mrf.mxu1 }
 0x88a   :  { %v2052_v56 = vmul.f32 4.0, %v2005_v38  ;;  %2090 = vmax.xlane.f32.xlu1 %v7617_v10  ;;  %2088 = vmax.xlane.f32.xlu0 %v7625_v53  ;;  %v7635_v19 = vadd.f32 %v7632_v33, %v2053_v58  ;;  %v7650_v58 = vld [vmem:[%s8977_s1 + $0x58] sm:$0xff] }
 0x88b   :  { %v5545_v27 = vpop.f32.mrf.mxu1  ;;  %9051 = vst [vmem:[#allocation45_spill] sm:$0xff] %v7650_v58 }
 0x88c   :  { %v7643_v24 = vadd.f32 %v7640_v0, %v2052_v56  ;;  %v2055_v28 = vmul.f32 4.0, %v5545_v27  ;;  %v7658_v56 = vld [vmem:[%s8977_s1 + $0x50] sm:$0xff] }
 0x88d   :  { %v2015_v16 = vpop.f32.mrf.mxu1  ;;  %9052 = vst [vmem:[#allocation46_spill] sm:$0xff] %v7658_v56 }
 0x88e   :  { %v2054_v17 = vmul.f32 4.0, %v2015_v16  ;;  %2094 = vmax.xlane.f32.xlu1 %v7635_v19  ;;  %2092 = vmax.xlane.f32.xlu0 %v7643_v24  ;;  %v7653_v38 = vadd.f32 %v7650_v58, %v2055_v28  ;;  %v7668_v28 = vld [vmem:[%s8977_s1 + $0x68] sm:$0xff] }
 0x88f   :  { %v5548_v47 = vpop.f32.mrf.mxu1  ;;  %9053 = vst [vmem:[#allocation47_spill] sm:$0xff] %v7668_v28 }
 0x890   :  { %v7661_v27 = vadd.f32 %v7658_v56, %v2054_v17  ;;  %v2057_v16 = vmul.f32 4.0, %v5548_v47  ;;  %v7676_v17 = vld [vmem:[%s8977_s1 + $0x60] sm:$0xff] }
 0x891   :  { %v2025_v49 = vpop.f32.mrf.mxu1  ;;  %9054 = vst [vmem:[#allocation48_spill] sm:$0xff] %v7676_v17 }
 0x892   :  { %v2056_v42 = vmul.f32 4.0, %v2025_v49  ;;  %2098 = vmax.xlane.f32.xlu1 %v7653_v38  ;;  %2096 = vmax.xlane.f32.xlu0 %v7661_v27  ;;  %v7671_v36 = vadd.f32 %v7668_v28, %v2057_v16  ;;  %v7686_v16 = vld [vmem:[%s8977_s1 + $0x78] sm:$0xff] }
 0x893   :  { %v5551_v52 = vpop.f32.mrf.mxu1  ;;  %9055 = vst [vmem:[#allocation49_spill] sm:$0xff] %v7686_v16 }
 0x894   :  { %v7679_v49 = vadd.f32 %v7676_v17, %v2056_v42  ;;  %v2059_v47 = vmul.f32 4.0, %v5551_v52  ;;  %v7694_v42 = vld [vmem:[%s8977_s1 + $0x70] sm:$0xff]  ;;  %s6281_s1 = smov 116  }
 0x895   :  { %v2035_v4 = vpop.f32.mrf.mxu1  ;;  %9056 = vst [vmem:[#allocation50_spill] sm:$0xff] %v7694_v42 }
 0x896   :  { %v2058_v61 = vmul.f32 4.0, %v2035_v4  ;;  %2102 = vmax.xlane.f32.xlu1 %v7671_v36  ;;  %2100 = vmax.xlane.f32.xlu0 %v7679_v49  ;;  %v7689_v40 = vadd.f32 %v7686_v16, %v2059_v47  ;;  %v7703_v4 = vpop.permute.xlu0 %2473 }
 0x898   :  { %v7697_v52 = vadd.f32 %v7694_v42, %v2058_v61  ;;  %v7715_v61 = vpop.permute.xlu1 %2465 }
 0x89a   :  { %2106 = vmax.xlane.f32.xlu1 %v7689_v40  ;;  %2104 = vmax.xlane.f32.xlu0 %v7697_v52  ;;  %v7705_v20 = vpop.permute.xlu0 %2471 }
 0x89c   :  { %v7719_v48 = vpop.permute.xlu1 %2461 }
 0x89e   :  { %v7707_v47 = vpop.permute.xlu0 %2467 }
 0x8a0   :  { %v7723_v35 = vpop.permute.xlu1 %2457 }
 0x8a2   :  { %v7709_v46 = vpop.permute.xlu0 %2463 }
 0x8a6   :  { %v7713_v30 = vpop.permute.xlu0 %2459 }
 0x8aa   :  { %v7717_v23 = vpop.permute.xlu0 %2455 }
 0x8ae   :  { %v7721_v57 = vpop.permute.xlu0 %2453 }
 0x8b0   :  { %2451 = vrot.lane.b32.xlu0 %v6595_v25, %s6280_s21 }
 0x905   :  { %v2079_v44 = vpop.xlane.xlu0 %2078 }
 0x906   :  { %v2109_v51 = vsub.f32 %v7563_v29, %v2079_v44 }
 0x907   :  { %v2077_v11 = vpop.xlane.xlu1 %2076 }
 0x908   :  { %v2126_v39 = vmul.f32 1.442695, %v2109_v51  ;;  %v2108_v42 = vsub.f32 %v7571_v55, %v2077_v11 }
 0x90a   :  { %6022 = vpow2.f32 %v2126_v39  ;;  %v2124_v16 = vmul.f32 1.442695, %v2108_v42 }
 0x90b   :  { %v2081_v17 = vpop.xlane.xlu0 %2080  ;;  %v2083_v28 = vpop.xlane.xlu1 %2082 }
 0x90c   :  { %6024 = vpow2.f32 %v2124_v16  ;;  %v2110_v56 = vsub.f32 %v7589_v31, %v2081_v17  ;;  %v2111_v58 = vsub.f32 %v7581_v8, %v2083_v28 }
 0x90e   :  { %v2128_v0 = vmul.f32 1.442695, %v2110_v56  ;;  %v2130_v33 = vmul.f32 1.442695, %v2111_v58 }
 0x90f   :  { %v2085_v62 = vpop.xlane.xlu0 %2084  ;;  %v2087_v50 = vpop.xlane.xlu1 %2086 }
 0x910   :  { %6026 = vpow2.f32 %v2128_v0  ;;  %v2113_v44 = vsub.f32 %v7599_v59, %v2087_v50  ;;  %v2112_v51 = vsub.f32 %v7607_v63, %v2085_v62 }
 0x911   :  { %6028 = vpow2.f32 %v2130_v33 }
 0x912   :  { %v2134_v11 = vmul.f32 1.442695, %v2113_v44  ;;  %v2132_v16 = vmul.f32 1.442695, %v2112_v51 }
 0x913   :  { %v2089_v39 = vpop.xlane.xlu0 %2088  ;;  %v2091_v29 = vpop.xlane.xlu1 %2090 }
 0x914   :  { %v2114_v55 = vsub.f32 %v7625_v53, %v2089_v39  ;;  %6030 = vpow2.f32 %v2134_v11  ;;  %v2115_v31 = vsub.f32 %v7617_v10, %v2091_v29 }
 0x916   :  { %v2136_v8 = vmul.f32 1.442695, %v2114_v55  ;;  %v2138_v59 = vmul.f32 1.442695, %v2115_v31 }
 0x917   :  { %v7733_v56 = vpop.eup %6022  ;;  %v2095_v58 = vpop.xlane.xlu1 %2094 }
 0x918   :  { %6032 = vpow2.f32 %v2136_v8  ;;  %2158 = vadd.xlane.f32.xlu0 %v7733_v56  ;;  %v2093_v28 = vpop.xlane.xlu0 %2092  ;;  %v2117_v29 = vsub.f32 %v7635_v19, %v2095_v58 }
 0x919   :  { %v7736_v0 = vpop.eup %6024  ;;  %6034 = vpow2.f32 %v2132_v16  ;;  %v2116_v8 = vsub.f32 %v7643_v24, %v2093_v28 }
 0x91a   :  { %2156 = vadd.xlane.f32.xlu1 %v7736_v0  ;;  %6036 = vpow2.f32 %v2138_v59  ;;  %v2142_v59 = vmul.f32 1.442695, %v2117_v29 }
 0x91b   :  { %v2099_v17 = vpop.xlane.xlu1 %2098  ;;  %v2140_v60 = vmul.f32 1.442695, %v2116_v8 }
 0x91c   :  { %v2097_v42 = vpop.xlane.xlu0 %2096  ;;  %v2119_v2 = vsub.f32 %v7653_v38, %v2099_v17 }
 0x91d   :  { %v7739_v63 = vpop.eup %6026  ;;  %v2118_v51 = vsub.f32 %v7661_v27, %v2097_v42 }
 0x91e   :  { %v7741_v50 = vpop.eup %6028  ;;  %2160 = vadd.xlane.f32.xlu1 %v7739_v63 }
 0x91f   :  { %2162 = vadd.xlane.f32.xlu0 %v7741_v50  ;;  %v2103_v44 = vpop.xlane.xlu1 %2102  ;;  %v2144_v11 = vmul.f32 1.442695, %v2118_v51 }
 0x920   :  { %v2121_v39 = vsub.f32 %v7671_v36, %v2103_v44  ;;  %v2101_v27 = vpop.xlane.xlu0 %2100  ;;  %v2146_v36 = vmul.f32 1.442695, %v2119_v2 }
 0x921   :  { %v7745_v10 = vpop.eup %6030  ;;  %6038 = vpow2.f32 %v2144_v11  ;;  %v2120_v19 = vsub.f32 %v7679_v49, %v2101_v27 }
 0x922   :  { %2166 = vadd.xlane.f32.xlu1 %v7745_v10  ;;  %v2150_v16 = vmul.f32 1.442695, %v2121_v39 }
 0x923   :  { %v2107_v55 = vpop.xlane.xlu1 %2106  ;;  %v2148_v42 = vmul.f32 1.442695, %v2120_v19 }
 0x924   :  { %v2123_v31 = vsub.f32 %v7689_v40, %v2107_v55  ;;  %6040 = vpow2.f32 %v2150_v16  ;;  %v2105_v49 = vpop.xlane.xlu0 %2104 }
 0x925   :  { %v7748_v62 = vpop.eup %6032  ;;  %6042 = vpow2.f32 %v2142_v59  ;;  %v2122_v28 = vsub.f32 %v7697_v52, %v2105_v49 }
 0x926   :  { %v7750_v53 = vpop.eup %6034  ;;  %2168 = vadd.xlane.f32.xlu0 %v7748_v62  ;;  %v2154_v32 = vmul.f32 1.442695, %v2123_v31 }
 0x927   :  { %2164 = vadd.xlane.f32.xlu1 %v7750_v53  ;;  %v7754_v33 = vpop.eup %6036  ;;  %v2152_v17 = vmul.f32 1.442695, %v2122_v28 }
 0x928   :  { %6044 = vpow2.f32 %v2154_v32  ;;  %v7810_v44 = vpop.permute.xlu0 %2451 }
 0x929   :  { %6046 = vpow2.f32 %v2140_v60 }
 0x92a   :  { %6048 = vpow2.f32 %v2146_v36 }
 0x92b   :  { %2170 = vadd.xlane.f32.xlu1 %v7754_v33  ;;  %6050 = vpow2.f32 %v2148_v42 }
 0x92c   :  { %6052 = vpow2.f32 %v2152_v17 }
 0x92e   :  { %v7768_v58 = vpop.eup %6038 }
 0x931   :  { %v7771_v40 = vpop.eup %6040 }
 0x932   :  { %v7773_v24 = vpop.eup %6042 }
 0x935   :  { %v7777_v32 = vpop.eup %6044 }
 0x936   :  { %v7779_v2 = vpop.eup %6046 }
 0x937   :  { %v7783_v60 = vpop.eup %6048 }
 0x938   :  { %v7786_v38 = vpop.eup %6050 }
 0x939   :  { %v7814_v52 = vpop.eup %6052 }
 0x93c   :  { %2447 = vrot.lane.b32.xlu1 %v6589_v37, %s6280_s21  ;;  %2449 = vrot.lane.b32.xlu0 %v6597_v6, %s6280_s21 }
 0x95b   :  { %2176 = vadd.xlane.f32.xlu0 %v7768_v58 }
 0x95f   :  { %2182 = vadd.xlane.f32.xlu0 %v7771_v40 }
 0x960   :  { %2174 = vadd.xlane.f32.xlu1 %v7773_v24 }
 0x963   :  { %2186 = vadd.xlane.f32.xlu0 %v7777_v32 }
 0x964   :  { %2172 = vadd.xlane.f32.xlu1 %v7779_v2 }
 0x968   :  { %2178 = vadd.xlane.f32.xlu1 %v7783_v60 }
 0x96c   :  { %2180 = vadd.xlane.f32.xlu1 %v7786_v38 }
 0x979   :  { %2445 = vrot.lane.b32.xlu0 %v6591_v5, %s6280_s21  ;;  %s6282_s21 = smov 84  }
 0x97d   :  { %2413 = vrot.lane.b32.xlu1 %v6591_v5, %s6281_s1  ;;  %2415 = vrot.lane.b32.xlu0 %v6589_v37, %s6281_s1 }
 0x981   :  { %2419 = vrot.lane.b32.xlu0 %v6595_v25, %s6281_s1 }
 0x985   :  { %2423 = vrot.lane.b32.xlu0 %v6599_v7, %s6281_s1 }
 0x989   :  { %2427 = vrot.lane.b32.xlu0 %v6603_v9, %s6281_s1 }
 0x98d   :  { %2431 = vrot.lane.b32.xlu0 %v6607_v12, %s6281_s1 }
 0x991   :  { %2435 = vrot.lane.b32.xlu0 %v6611_v14, %s6281_s1 }
 0x995   :  { %2439 = vrot.lane.b32.xlu0 %v6615_v15, %s6281_s1 }
 0x999   :  { %2443 = vrot.lane.b32.xlu0 %v6619_v22, %s6281_s1 }
 0x99d   :  { %2892 = vrot.lane.b32.xlu0 %v6619_v22, %s6282_s21 }
 0x9a1   :  { %2184 = vadd.xlane.f32.xlu1 %v7814_v52  ;;  %v2159_v51 = vpop.xlane.xlu0 %2158  ;;  %2888 = vrot.lane.b32.xlu0 %v6615_v15, %s6282_s21 }
 0x9a2   :  { %6054 = vrcp.f32 %v2159_v51 }
 0x9a3   :  { %v2157_v11 = vpop.xlane.xlu1 %2156 }
 0x9a4   :  { %6056 = vrcp.f32 %v2157_v11 }
 0x9a5   :  { %2884 = vrot.lane.b32.xlu0 %v6611_v14, %s6282_s21 }
 0x9a7   :  { %v2161_v39 = vpop.xlane.xlu1 %2160 }
 0x9a8   :  { %v2163_v29 = vpop.xlane.xlu0 %2162  ;;  %6058 = vrcp.f32 %v2161_v39 }
 0x9a9   :  { %6060 = vrcp.f32 %v2163_v29  ;;  %2880 = vrot.lane.b32.xlu0 %v6607_v12, %s6282_s21 }
 0x9ab   :  { %v2167_v22 = vpop.xlane.xlu1 %2166 }
 0x9ac   :  { %6062 = vrcp.f32 %v2167_v22 }
 0x9ad   :  { %2876 = vrot.lane.b32.xlu0 %v6603_v9, %s6282_s21 }
 0x9af   :  { %v2169_v55 = vpop.xlane.xlu0 %2168  ;;  %v6055_v15 = vpop.eup %6054 }
 0x9b0   :  { %6064 = vrcp.f32 %v2169_v55  ;;  %v2165_v16 = vpop.xlane.xlu1 %2164  ;;  %v2205_v8 = vmul.f32 %v6055_v15, %v7733_v56 }
 0x9b1   :  { %v6057_v31 = vpop.eup %6056  ;;  %6066 = vrcp.f32 %v2165_v16 }
 0x9b2   :  { %2417 = vrot.lane.b32.xlu1 %v6597_v6, %s6281_s1  ;;  %v2204_v14 = vmul.f32 %v6057_v31, %v7736_v0 }
 0x9b4   :  { %v2171_v59 = vpop.xlane.xlu1 %2170  ;;  %5584 = vmatprep.mubr.f32.mxu0 %v2204_v14 }
 0x9b5   :  { %v6059_v12 = vpop.eup %6058  ;;  %6068 = vrcp.f32 %v2171_v59  ;;  %5585 = vmatmul.mubr.f32.vlgmr.msra.gmra.mxu0 %v2205_v8 }
 0x9b6   :  { %v6061_v9 = vpop.eup %6060  ;;  %2421 = vrot.lane.b32.xlu1 %v6601_v34, %s6281_s1  ;;  %5609 = vmatpush3.xpose.msk.msra.mxu0 %vm550_vm1, %v7521_v21  ;;  %v2206_v27 = vmul.f32 %v6059_v12, %v7739_v63 }
 0x9b7   :  { %5610 = vmatprep.subr.msk.mxu0 %vm550_vm1, %v7703_v4  ;;  %v2207_v0 = vmul.f32 %v6061_v9, %v7741_v50 }
 0x9b8   :  { %5587 = vmatprep.mubr.f32.mxu0 %v2206_v27 }
 0x9b9   :  { %5588 = vmatmul.mubr.f32.gmra.mxu0 %v2207_v0  ;;  %v6063_v56 = vpop.eup %6062 }
 0x9ba   :  { %2425 = vrot.lane.b32.xlu1 %v6605_v41, %s6281_s1  ;;  %5611 = vmatpush3.xpose.msk.msra.mxu0 %vm550_vm1, %v7703_v4  ;;  %v2209_v50 = vmul.f32 %v6063_v56, %v7745_v10 }
 0x9bb   :  { %5612 = vmatprep.subr.msk.mxu0 %vm550_vm1, %v7705_v20 }
 0x9bd   :  { %v6065_v21 = vpop.eup %6064 }
 0x9be   :  { %v6067_v36 = vpop.eup %6066  ;;  %2429 = vrot.lane.b32.xlu1 %v6609_v13, %s6281_s1  ;;  %5613 = vmatpush3.xpose.msk.msra.mxu0 %vm550_vm1, %v7705_v20  ;;  %v2210_v4 = vmul.f32 %v6065_v21, %v7748_v62 }
 0x9bf   :  { %5614 = vmatprep.subr.msk.mxu0 %vm550_vm1, %v7711_v1  ;;  %v2208_v63 = vmul.f32 %v6067_v36, %v7750_v53 }
 0x9c1   :  { %5590 = vmatprep.mubr.f32.mxu0 %v2208_v63 }
 0x9c2   :  { %v6069_v19 = vpop.eup %6068  ;;  %2433 = vrot.lane.b32.xlu1 %v6613_v45, %s6281_s1  ;;  %5591 = vmatmul.mubr.f32.gmra.mxu0 %v2209_v50 }
 0x9c3   :  { %5615 = vmatpush3.xpose.msk.msra.mxu0 %vm550_vm1, %v7711_v1  ;;  %5593 = vmatprep.mubr.f32.mxu0 %v2210_v4  ;;  %v2211_v20 = vmul.f32 %v6069_v19, %v7754_v33 }
 0x9c4   :  { %5616 = vmatprep.subr.msk.mxu0 %vm550_vm1, %v7707_v47 }
 0x9c6   :  { %2437 = vrot.lane.b32.xlu1 %v6617_v18, %s6281_s1  ;;  %5594 = vmatmul.mubr.f32.gmra.mxu0 %v2211_v20 }
 0x9c7   :  { %5617 = vmatpush3.xpose.msk.msra.mxu0 %vm550_vm1, %v7707_v47 }
 0x9c8   :  { %5618 = vmatprep.subr.msk.mxu0 %vm550_vm1, %v7715_v61 }
 0x9ca   :  { %2441 = vrot.lane.b32.xlu1 %v6622_v54, %s6281_s1 }
 0x9cb   :  { %5619 = vmatpush3.xpose.msk.msra.mxu0 %vm550_vm1, %v7715_v61 }
 0x9cc   :  { %5620 = vmatprep.subr.msk.mxu0 %vm550_vm1, %v7709_v46 }
 0x9ce   :  { %2890 = vrot.lane.b32.xlu1 %v6622_v54, %s6282_s21 }
 0x9cf   :  { %5621 = vmatpush3.xpose.msk.msra.mxu0 %vm550_vm1, %v7709_v46 }
 0x9d0   :  { %5622 = vmatprep.subr.msk.mxu0 %vm550_vm1, %v7719_v48 }
 0x9d2   :  { %2886 = vrot.lane.b32.xlu1 %v6617_v18, %s6282_s21  ;;  %v2448_v18 = vpop.permute.xlu1 %2447 }
 0x9d3   :  { %5623 = vmatpush3.xpose.msk.msra.mxu0 %vm550_vm1, %v7719_v48 }
 0x9d4   :  { %5624 = vmatprep.subr.msk.mxu0 %vm550_vm1, %v7713_v30 }
 0x9d6   :  { %2882 = vrot.lane.b32.xlu1 %v6613_v45, %s6282_s21  ;;  %v2450_v45 = vpop.permute.xlu0 %2449 }
 0x9d7   :  { %5625 = vmatpush3.xpose.msk.msra.mxu0 %vm550_vm1, %v7713_v30 }
 0x9d8   :  { %5626 = vmatprep.subr.msk.mxu0 %vm550_vm1, %v7723_v35 }
 0x9da   :  { %2878 = vrot.lane.b32.xlu1 %v6609_v13, %s6282_s21 }
 0x9db   :  { %5627 = vmatpush3.xpose.msk.msra.mxu0 %vm550_vm1, %v7723_v35 }
 0x9dc   :  { %5628 = vmatprep.subr.msk.mxu0 %vm550_vm1, %v7717_v23 }
 0x9de   :  { %2874 = vrot.lane.b32.xlu1 %v6605_v41, %s6282_s21 }
 0x9df   :  { %5629 = vmatpush3.xpose.msk.msra.mxu0 %vm550_vm1, %v7717_v23 }
 0x9e0   :  { %5630 = vmatprep.subr.msk.mxu0 %vm550_vm1, %v7721_v57 }
 0x9e3   :  { %5631 = vmatpush3.xpose.msk.msra.mxu0 %vm550_vm1, %v7721_v57 }
 0x9e4   :  { %5632 = vmatprep.subr.msk.mxu0 %vm550_vm1, %v7810_v44  ;;  %v2177_v13 = vpop.xlane.xlu0 %2176 }
 0x9e5   :  { %6070 = vrcp.f32 %v2177_v13 }
 0x9e7   :  { %5633 = vmatpush3.xpose.msk.msra.mxu0 %vm550_vm1, %v7810_v44 }
 0x9e8   :  { %5634 = vmatprep.subr.msk.mxu0 %vm550_vm1, %v2450_v45  ;;  %v2183_v41 = vpop.xlane.xlu0 %2182 }
 0x9e9   :  { %v2175_v54 = vpop.xlane.xlu1 %2174 }
 0x9ea   :  { %6072 = vrcp.f32 %v2175_v54 }
 0x9eb   :  { %5635 = vmatpush3.xpose.msk.msra.mxu0 %vm550_vm1, %v2450_v45 }
 0x9ec   :  { %5636 = vmatprep.subr.msk.mxu0 %vm550_vm1, %v2448_v18  ;;  %v2187_v35 = vpop.xlane.xlu0 %2186 }
 0x9ed   :  { %v2173_v57 = vpop.xlane.xlu1 %2172 }
 0x9ee   :  { %6074 = vrcp.f32 %v2173_v57 }
 0x9ef   :  { %5637 = vmatpush3.xpose.msk.msra.mxu0 %vm550_vm1, %v2448_v18 }
 0x9f0   :  { %v2446_v48 = vpop.permute.xlu0 %2445 }
 0x9f1   :  { %v2179_v23 = vpop.xlane.xlu1 %2178  ;;  %5638 = vmatprep.subr.msk.mxu0 %vm550_vm1, %v2446_v48 }
 0x9f2   :  { %6076 = vrcp.f32 %v2179_v23  ;;  %v6071_v47 = vpop.eup %6070 }
 0x9f3   :  { %5639 = vmatpush3.xpose.msk.msra.mxu0 %vm550_vm1, %v2446_v48  ;;  %6078 = vrcp.f32 %v2183_v41  ;;  %v2214_v42 = vmul.f32 %v6071_v47, %v7768_v58 }
 0x9f4   :  { %v2416_v30 = vpop.permute.xlu0 %2415 }
 0x9f5   :  { %v2181_v1 = vpop.xlane.xlu1 %2180 }
 0x9f6   :  { %6080 = vrcp.f32 %v2181_v1 }
 0x9f7   :  { %v6073_v61 = vpop.eup %6072  ;;  %6082 = vrcp.f32 %v2187_v35 }
 0x9f8   :  { %v2420_v46 = vpop.permute.xlu0 %2419  ;;  %v2213_v33 = vmul.f32 %v6073_v61, %v7773_v24 }
 0x9f9   :  { %v2414_v55 = vpop.permute.xlu1 %2413 }
 0x9fb   :  { %v6075_v10 = vpop.eup %6074 }
 0x9fc   :  { %v2424_v62 = vpop.permute.xlu0 %2423  ;;  %v2212_v53 = vmul.f32 %v6075_v10, %v7779_v2 }
 0x9fe   :  { %5596 = vmatprep.mubr.f32.mxu0 %v2212_v53 }
 0x9ff   :  { %v6077_v49 = vpop.eup %6076  ;;  %5597 = vmatmul.mubr.f32.gmra.mxu0 %v2213_v33 }
 0xa00   :  { %5599 = vmatprep.mubr.f32.mxu0 %v2214_v42  ;;  %v2428_v28 = vpop.permute.xlu0 %2427  ;;  %v2215_v17 = vmul.f32 %v6077_v49, %v7783_v60  ;;  %v6079_v44 = vpop.eup %6078 }
 0xa01   :  { %v2217_v29 = vmul.f32 %v6079_v44, %v7771_v40 }
 0xa03   :  { %v6081_v51 = vpop.eup %6080  ;;  %5600 = vmatmul.mubr.f32.gmra.mxu0 %v2215_v17 }
 0xa04   :  { %v2432_v11 = vpop.permute.xlu0 %2431  ;;  %v2216_v39 = vmul.f32 %v6081_v51, %v7786_v38  ;;  %v6083_v14 = vpop.eup %6082 }
 0xa05   :  { %v2219_v59 = vmul.f32 %v6083_v14, %v7777_v32 }
 0xa06   :  { %5602 = vmatprep.mubr.f32.mxu0 %v2216_v39 }
 0xa07   :  { %5603 = vmatmul.mubr.f32.gmra.mxu0 %v2217_v29  ;;  %v9057_v29 = vld [vmem:[#allocation38_spill] sm:$0xff] }
 0xa08   :  { %v2436_v24 = vpop.permute.xlu0 %2435 }
 0xa0c   :  { %v2440_v2 = vpop.permute.xlu0 %2439 }
 0xa10   :  { %v2444_v22 = vpop.permute.xlu0 %2443 }
 0xa14   :  { %v2893_v58 = vpop.permute.xlu0 %2892 }
 0xa15   :  { %5664 = vmatprep.subr.mxu1 %v2893_v58 }
 0xa16   :  { %5665 = vmatpush3.msra.mxu1 %v2893_v58  ;;  %v9058_v58 = vld [vmem:[#allocation39_spill] sm:$0xff] }
 0xa18   :  { %v2889_v27 = vpop.permute.xlu0 %2888 }
 0xa2a   :  { %v2185_v15 = vpop.xlane.xlu1 %2184 }
 0xa2b   :  { %6084 = vrcp.f32 %v2185_v15  ;;  %v9059_v15 = vld [vmem:[#allocation40_spill] sm:$0xff] }
 0xa2e   :  { %v2418_v60 = vpop.permute.xlu1 %2417 }
 0xa32   :  { %v2422_v16 = vpop.permute.xlu1 %2421 }
 0xa36   :  { %v2426_v31 = vpop.permute.xlu1 %2425 }
 0xa38   :  { %v6085_v8 = vpop.eup %6084 }
 0xa39   :  { %v2218_v38 = vmul.f32 %v6085_v8, %v7814_v52  ;;  %v2885_v52 = vpop.permute.xlu0 %2884  ;;  %v9060_v8 = vld [vmem:[#allocation41_spill] sm:$0xff] }
 0xa3a   :  { %v2430_v40 = vpop.permute.xlu1 %2429 }
 0xa3b   :  { %5605 = vmatprep.mubr.f32.mxu0 %v2218_v38 }
 0xa3c   :  { %5606 = vmatmul.mubr.f32.gmra.mxu0 %v2219_v59 }
 0xa3d   :  { %5640 = vmatprep.mubr.msk.f32.mxu0 %vm550_vm1, %v2414_v55  ;;  %v2881_v21 = vpop.permute.xlu0 %2880 }
 0xa3e   :  { %v2434_v12 = vpop.permute.xlu1 %2433 }
 0xa40   :  { %5641 = vmatmul.mubr.msk.f32.vlgmr.msra.gmra.mxu0 %vm550_vm1, %v2416_v30 }
 0xa41   :  { %5643 = vmatprep.mubr.msk.f32.mxu0 %vm550_vm1, %v2418_v60  ;;  %v2877_v50 = vpop.permute.xlu0 %2876 }
 0xa42   :  { %v2438_v9 = vpop.permute.xlu1 %2437 }
 0xa44   :  { %5644 = vmatmul.mubr.msk.f32.gmra.mxu0 %vm550_vm1, %v2420_v46 }
 0xa45   :  { %5646 = vmatprep.mubr.msk.f32.mxu0 %vm550_vm1, %v2422_v16 }
 0xa46   :  { %v2442_v0 = vpop.permute.xlu1 %2441 }
 0xa48   :  { %5647 = vmatmul.mubr.msk.f32.gmra.mxu0 %vm550_vm1, %v2424_v62 }
 0xa49   :  { %5649 = vmatprep.mubr.msk.f32.mxu0 %vm550_vm1, %v2426_v31 }
 0xa4a   :  { %v2891_v32 = vpop.permute.xlu1 %2890 }
 0xa4b   :  { %5666 = vmatprep.subr.mxu1 %v2891_v32 }
 0xa4c   :  { %5650 = vmatmul.mubr.msk.f32.gmra.mxu0 %vm550_vm1, %v2428_v28  ;;  %5667 = vmatpush3.msra.mxu1 %v2891_v32  ;;  %v9062_v32 = vld [vmem:[#allocation43_spill] sm:$0xff] }
 0xa4d   :  { %5652 = vmatprep.mubr.msk.f32.mxu0 %vm550_vm1, %v2430_v40  ;;  %5668 = vmatprep.subr.mxu1 %v2889_v27  ;;  %v9061_v40 = vld [vmem:[#allocation42_spill] sm:$0xff] }
 0xa4e   :  { %5669 = vmatpush3.msra.mxu1 %v2889_v27  ;;  %v2887_v56 = vpop.permute.xlu1 %2886 }
 0xa4f   :  { %5670 = vmatprep.subr.mxu1 %v2887_v56 }
 0xa50   :  { %5653 = vmatmul.mubr.msk.f32.gmra.mxu0 %vm550_vm1, %v2432_v11  ;;  %5671 = vmatpush3.msra.mxu1 %v2887_v56  ;;  %v9063_v56 = vld [vmem:[#allocation44_spill] sm:$0xff] }
 0xa51   :  { %5655 = vmatprep.mubr.msk.f32.mxu0 %vm550_vm1, %v2434_v12  ;;  %5672 = vmatprep.subr.mxu1 %v2885_v52 }
 0xa52   :  { %5673 = vmatpush3.msra.mxu1 %v2885_v52  ;;  %v2883_v36 = vpop.permute.xlu1 %2882 }
 0xa53   :  { %5674 = vmatprep.subr.mxu1 %v2883_v36 }
 0xa54   :  { %5656 = vmatmul.mubr.msk.f32.gmra.mxu0 %vm550_vm1, %v2436_v24  ;;  %5675 = vmatpush3.msra.mxu1 %v2883_v36 }
 0xa55   :  { %5658 = vmatprep.mubr.msk.f32.mxu0 %vm550_vm1, %v2438_v9  ;;  %5676 = vmatprep.subr.mxu1 %v2881_v21 }
 0xa56   :  { %5677 = vmatpush3.msra.mxu1 %v2881_v21  ;;  %v2879_v63 = vpop.permute.xlu1 %2878 }
 0xa57   :  { %5678 = vmatprep.subr.mxu1 %v2879_v63 }
 0xa58   :  { %5659 = vmatmul.mubr.msk.f32.gmra.mxu0 %vm550_vm1, %v2440_v2  ;;  %5679 = vmatpush3.msra.mxu1 %v2879_v63 }
 0xa59   :  { %5661 = vmatprep.mubr.msk.f32.mxu0 %vm550_vm1, %v2442_v0  ;;  %5680 = vmatprep.subr.mxu1 %v2877_v50 }
 0xa5a   :  { %5681 = vmatpush3.msra.mxu1 %v2877_v50  ;;  %v2875_v4 = vpop.permute.xlu1 %2874 }
 0xa5b   :  { %5682 = vmatprep.subr.mxu1 %v2875_v4 }
 0xa5c   :  { %5662 = vmatmul.mubr.msk.f32.gmra.mxu0 %vm550_vm1, %v2444_v22  ;;  %5683 = vmatpush3.msra.mxu1 %v2875_v4 }
 0xa75   :  { %v7937_v19 = vpop.f32.mrf.mxu0 }
 0xa77   :  { %v7939_v20 = vpop.f32.mrf.mxu0 }
 0xa79   :  { %v7941_v45 = vpop.f32.mrf.mxu0 }
 0xa7b   :  { %v7943_v13 = vpop.f32.mrf.mxu0 }
 0xa82   :  { %v7945_v18 = vpop.f32.mrf.mxu0 }
 0xa84   :  { %v7947_v41 = vpop.f32.mrf.mxu0 }
 0xa86   :  { %v7949_v54 = vpop.f32.mrf.mxu0 }
 0xa88   :  { %v7951_v35 = vpop.f32.mrf.mxu0 }
 0xabf   :  { %v7953_v57 = vpop.f32.mrf.mxu0 }
 0xac1   :  { %v7955_v48 = vpop.f32.mrf.mxu0 }
 0xac3   :  { %v7957_v23 = vpop.f32.mrf.mxu0 }
 0xac5   :  { %v7959_v30 = vpop.f32.mrf.mxu0 }
 0xac7   :  { %v7961_v1 = vpop.f32.mrf.mxu0 }
 0xac9   :  { %v7963_v46 = vpop.f32.mrf.mxu0 }
 0xafc   :  { %v7965_v47 = vpop.f32.mrf.mxu0 }
 0xafe   :  { %v7967_v61 = vpop.f32.mrf.mxu0 }
 0xb00   :  { %v5642_v10 = vpop.f32.mrf.mxu0 }
 0xb01   :  { %v2687_v62 = vmul.f32 4.0, %v5642_v10  ;;  %v9064_v10 = vld [vmem:[#allocation45_spill] sm:$0xff] }
 0xb02   :  { %v2607_v53 = vpop.f32.mrf.mxu0 }
 0xb03   :  { %v7970_v33 = vadd.f32 %v7560_v26, %v2687_v62  ;;  %v2686_v42 = vmul.f32 4.0, %v2607_v53  ;;  %v9065_v53 = vld [vmem:[#allocation46_spill] sm:$0xff] }
 0xb04   :  { %v5645_v49 = vpop.f32.mrf.mxu0 }
 0xb05   :  { %v7973_v28 = vadd.f32 %v7568_v43, %v2686_v42  ;;  %v2689_v17 = vmul.f32 4.0, %v5645_v49  ;;  %2720 = vmax.xlane.f32.xlu0 %v7970_v33 }
 0xb06   :  { %v2617_v44 = vpop.f32.mrf.mxu0 }
 0xb07   :  { %v2688_v51 = vmul.f32 4.0, %v2617_v44  ;;  %2718 = vmax.xlane.f32.xlu1 %v7973_v28  ;;  %v7978_v39 = vadd.f32 %v7578_v3, %v2689_v17 }
 0xb08   :  { %v5648_v11 = vpop.f32.mrf.mxu0 }
 0xb09   :  { %v7981_v24 = vadd.f32 %v9057_v29, %v2688_v51  ;;  %v2691_v26 = vmul.f32 4.0, %v5648_v11  ;;  %v9066_v11 = vld [vmem:[#allocation47_spill] sm:$0xff] }
 0xb0a   :  { %v2627_v2 = vpop.f32.mrf.mxu0 }
 0xb0b   :  { %v2690_v22 = vmul.f32 4.0, %v2627_v2  ;;  %2724 = vmax.xlane.f32.xlu1 %v7978_v39  ;;  %2722 = vmax.xlane.f32.xlu0 %v7981_v24  ;;  %v7986_v55 = vadd.f32 %v9058_v58, %v2691_v26  ;;  %v9067_v26 = vld [vmem:[#allocation48_spill] sm:$0xff] }
 0xb0c   :  { %v5651_v43 = vpop.f32.mrf.mxu0 }
 0xb0d   :  { %v7989_v60 = vadd.f32 %v9059_v15, %v2690_v22  ;;  %v2693_v16 = vmul.f32 4.0, %v5651_v43  ;;  %v9068_v15 = vld [vmem:[#allocation49_spill] sm:$0xff] }
 0xb0e   :  { %v2637_v3 = vpop.f32.mrf.mxu0 }
 0xb0f   :  { %v2692_v31 = vmul.f32 4.0, %v2637_v3  ;;  %2728 = vmax.xlane.f32.xlu1 %v7986_v55  ;;  %2726 = vmax.xlane.f32.xlu0 %v7989_v60  ;;  %v7994_v38 = vadd.f32 %v9060_v8, %v2693_v16  ;;  %v9069_v3 = vld [vmem:[#allocation50_spill] sm:$0xff] }
 0xb10   :  { %v5654_v14 = vpop.f32.mrf.mxu0 }
 0xb11   :  { %v7997_v59 = vadd.f32 %v9061_v40, %v2692_v31  ;;  %v2695_v12 = vmul.f32 4.0, %v5654_v14 }
 0xb12   :  { %v2647_v9 = vpop.f32.mrf.mxu0 }
 0xb13   :  { %v2694_v27 = vmul.f32 4.0, %v2647_v9  ;;  %2732 = vmax.xlane.f32.xlu1 %v7994_v38  ;;  %2730 = vmax.xlane.f32.xlu0 %v7997_v59  ;;  %v8002_v52 = vadd.f32 %v9062_v32, %v2695_v12 }
 0xb14   :  { %v5657_v0 = vpop.f32.mrf.mxu0 }
 0xb15   :  { %v8005_v21 = vadd.f32 %v9063_v56, %v2694_v27  ;;  %v2697_v36 = vmul.f32 4.0, %v5657_v0 }
 0xb16   :  { %v2657_v63 = vpop.f32.mrf.mxu0 }
 0xb17   :  { %v2696_v50 = vmul.f32 4.0, %v2657_v63  ;;  %2736 = vmax.xlane.f32.xlu1 %v8002_v52  ;;  %2734 = vmax.xlane.f32.xlu0 %v8005_v21  ;;  %v8010_v62 = vadd.f32 %v9064_v10, %v2697_v36 }
 0xb18   :  { %v5660_v4 = vpop.f32.mrf.mxu0 }
 0xb19   :  { %v8013_v42 = vadd.f32 %v9065_v53, %v2696_v50  ;;  %v2699_v49 = vmul.f32 4.0, %v5660_v4 }
 0xb1a   :  { %v2667_v17 = vpop.f32.mrf.mxu0 }
 0xb1b   :  { %v2698_v44 = vmul.f32 4.0, %v2667_v17  ;;  %2740 = vmax.xlane.f32.xlu1 %v8010_v62  ;;  %2738 = vmax.xlane.f32.xlu0 %v8013_v42  ;;  %v8018_v29 = vadd.f32 %v9066_v11, %v2699_v49 }
 0xb1c   :  { %v5663_v51 = vpop.f32.mrf.mxu0 }
 0xb1d   :  { %v8021_v2 = vadd.f32 %v9067_v26, %v2698_v44  ;;  %v2701_v22 = vmul.f32 4.0, %v5663_v51 }
 0xb1e   :  { %v2677_v43 = vpop.f32.mrf.mxu0 }
 0xb1f   :  { %v2700_v58 = vmul.f32 4.0, %v2677_v43  ;;  %2744 = vmax.xlane.f32.xlu1 %v8018_v29  ;;  %2742 = vmax.xlane.f32.xlu0 %v8021_v2  ;;  %v8026_v16 = vadd.f32 %v9068_v15, %v2701_v22 }
 0xb21   :  { %v8029_v31 = vadd.f32 %v9069_v3, %v2700_v58 }
 0xb23   :  { %2748 = vmax.xlane.f32.xlu1 %v8026_v16  ;;  %2746 = vmax.xlane.f32.xlu0 %v8029_v31 }
 0xb34   :  { %2870 = vrot.lane.b32.xlu1 %v6601_v34, %s6282_s21 }
 0xb38   :  { %2866 = vrot.lane.b32.xlu1 %v6597_v6, %s6282_s21 }
 0xb39   :  { %2872 = vrot.lane.b32.xlu0 %v6599_v7, %s6282_s21 }
 0xb3c   :  { %2862 = vrot.lane.b32.xlu1 %v6591_v5, %s6282_s21 }
 0xb3d   :  { %2868 = vrot.lane.b32.xlu0 %v6595_v25, %s6282_s21 }
 0xb41   :  { %2864 = vrot.lane.b32.xlu0 %v6589_v37, %s6282_s21 }
 0xb8e   :  { %v2721_v14 = vpop.xlane.xlu0 %2720 }
 0xb8f   :  { %v2751_v8 = vsub.f32 %v7970_v33, %v2721_v14 }
 0xb90   :  { %v2719_v40 = vpop.xlane.xlu1 %2718 }
 0xb91   :  { %v2768_v34 = vmul.f32 1.442695, %v2751_v8  ;;  %v2750_v12 = vsub.f32 %v7973_v28, %v2719_v40 }
 0xb93   :  { %6086 = vpow2.f32 %v2768_v34  ;;  %v2766_v6 = vmul.f32 1.442695, %v2750_v12 }
 0xb94   :  { %v2723_v9 = vpop.xlane.xlu0 %2722  ;;  %v2725_v7 = vpop.xlane.xlu1 %2724 }
 0xb95   :  { %6088 = vpow2.f32 %v2766_v6  ;;  %v2752_v5 = vsub.f32 %v7981_v24, %v2723_v9  ;;  %v2753_v27 = vsub.f32 %v7978_v39, %v2725_v7 }
 0xb97   :  { %v2770_v25 = vmul.f32 1.442695, %v2752_v5  ;;  %v2772_v0 = vmul.f32 1.442695, %v2753_v27 }
 0xb98   :  { %v2727_v32 = vpop.xlane.xlu0 %2726  ;;  %v2729_v37 = vpop.xlane.xlu1 %2728 }
 0xb99   :  { %6090 = vpow2.f32 %v2770_v25  ;;  %v2754_v33 = vsub.f32 %v7989_v60, %v2727_v32  ;;  %v2755_v56 = vsub.f32 %v7986_v55, %v2729_v37 }
 0xb9a   :  { %6092 = vpow2.f32 %v2772_v0 }
 0xb9b   :  { %v2774_v28 = vmul.f32 1.442695, %v2754_v33  ;;  %v2776_v36 = vmul.f32 1.442695, %v2755_v56 }
 0xb9c   :  { %v2731_v63 = vpop.xlane.xlu0 %2730  ;;  %v2733_v50 = vpop.xlane.xlu1 %2732 }
 0xb9d   :  { %6094 = vpow2.f32 %v2774_v28  ;;  %v2756_v4 = vsub.f32 %v7997_v59, %v2731_v63  ;;  %v2757_v24 = vsub.f32 %v7994_v38, %v2733_v50 }
 0xb9e   :  { %6096 = vpow2.f32 %v2776_v36 }
 0xb9f   :  { %v2778_v39 = vmul.f32 1.442695, %v2756_v4  ;;  %v2780_v10 = vmul.f32 1.442695, %v2757_v24 }
 0xba0   :  { %v8053_v53 = vpop.eup %6086  ;;  %v2735_v49 = vpop.xlane.xlu0 %2734 }
 0xba1   :  { %v2737_v17 = vpop.xlane.xlu1 %2736  ;;  %6098 = vpow2.f32 %v2778_v39  ;;  %v2758_v55 = vsub.f32 %v8005_v21, %v2735_v49  ;;  %2800 = vadd.xlane.f32.xlu0 %v8053_v53  ;;  %v8112_v39 = vld [vmem:[%s8978_s2 + $0x10] sm:$0xff]  ;;  %v9071_v49 = vld [vmem:[#allocation8_spill] sm:$0xff] }
 0xba2   :  { %v2759_v60 = vsub.f32 %v8002_v52, %v2737_v17  ;;  %v8058_v44 = vpop.eup %6088  ;;  %6100 = vpow2.f32 %v2780_v10  ;;  %v9070_v10 = vld [vmem:[#allocation6_spill] sm:$0xff]  ;;  %v8126_v17 = vld [vmem:[%s8978_s2] sm:$0xff] }
 0xba3   :  { %v2782_v59 = vmul.f32 1.442695, %v2758_v55  ;;  %2798 = vadd.xlane.f32.xlu1 %v8058_v44  ;;  %v9072_v55 = vld [vmem:[#allocation7_spill] sm:$0xff] }
 0xba4   :  { %v2784_v51 = vmul.f32 1.442695, %v2759_v60  ;;  %v2739_v38 = vpop.xlane.xlu0 %2738  ;;  %v9073_v60 = vld [vmem:[#allocation9_spill] sm:$0xff] }
 0xba5   :  { %v2741_v11 = vpop.xlane.xlu1 %2740  ;;  %6102 = vpow2.f32 %v2782_v59  ;;  %v2760_v26 = vsub.f32 %v8013_v42, %v2739_v38  ;;  %v9076_v59 = vld [vmem:[#allocation28_spill] sm:$0xff] }
 0xba6   :  { %v2761_v22 = vsub.f32 %v8010_v62, %v2741_v11  ;;  %v8063_v43 = vpop.eup %6090  ;;  %6104 = vpow2.f32 %v2784_v51 }
 0xba7   :  { %v8065_v52 = vpop.eup %6092  ;;  %v2786_v21 = vmul.f32 1.442695, %v2760_v26  ;;  %2802 = vadd.xlane.f32.xlu1 %v8063_v43 }
 0xba8   :  { %v2788_v58 = vmul.f32 1.442695, %v2761_v22  ;;  %2804 = vadd.xlane.f32.xlu0 %v8065_v52  ;;  %v2743_v15 = vpop.xlane.xlu0 %2742 }
 0xba9   :  { %v2745_v3 = vpop.xlane.xlu1 %2744  ;;  %6106 = vpow2.f32 %v2786_v21  ;;  %v2762_v14 = vsub.f32 %v8021_v2, %v2743_v15 }
 0xbaa   :  { %v2763_v42 = vsub.f32 %v8018_v29, %v2745_v3  ;;  %v8071_v8 = vpop.eup %6094  ;;  %6108 = vpow2.f32 %v2788_v58 }
 0xbab   :  { %v8073_v62 = vpop.eup %6096  ;;  %v2790_v40 = vmul.f32 1.442695, %v2762_v14  ;;  %2806 = vadd.xlane.f32.xlu1 %v8071_v8 }
 0xbac   :  { %v2792_v34 = vmul.f32 1.442695, %v2763_v42  ;;  %2808 = vadd.xlane.f32.xlu0 %v8073_v62  ;;  %v2747_v12 = vpop.xlane.xlu0 %2746 }
 0xbad   :  { %v2749_v6 = vpop.xlane.xlu1 %2748  ;;  %6110 = vpow2.f32 %v2790_v40  ;;  %v2764_v9 = vsub.f32 %v8029_v31, %v2747_v12 }
 0xbae   :  { %v2765_v2 = vsub.f32 %v8026_v16, %v2749_v6  ;;  %v8079_v7 = vpop.eup %6098  ;;  %6112 = vpow2.f32 %v2792_v34 }
 0xbaf   :  { %v8081_v29 = vpop.eup %6100  ;;  %v2794_v5 = vmul.f32 1.442695, %v2764_v9  ;;  %2810 = vadd.xlane.f32.xlu1 %v8079_v7 }
 0xbb0   :  { %v2796_v27 = vmul.f32 1.442695, %v2765_v2  ;;  %2812 = vadd.xlane.f32.xlu0 %v8081_v29  ;;  %v2873_v25 = vpop.permute.xlu0 %2872 }
 0xbb1   :  { %v2871_v0 = vpop.permute.xlu1 %2870  ;;  %6114 = vpow2.f32 %v2794_v5  ;;  %5684 = vmatprep.subr.mxu1 %v2873_v25 }
 0xbb2   :  { %v8085_v32 = vpop.eup %6102  ;;  %6116 = vpow2.f32 %v2796_v27  ;;  %5685 = vmatpush3.msra.mxu1 %v2873_v25 }
 0xbb3   :  { %v8087_v16 = vpop.eup %6104  ;;  %2814 = vadd.xlane.f32.xlu1 %v8085_v32  ;;  %5686 = vmatprep.subr.mxu1 %v2871_v0 }
 0xbb4   :  { %2816 = vadd.xlane.f32.xlu0 %v8087_v16  ;;  %v2869_v31 = vpop.permute.xlu0 %2868  ;;  %5687 = vmatpush3.msra.mxu1 %v2871_v0 }
 0xbb5   :  { %v2867_v37 = vpop.permute.xlu1 %2866  ;;  %5688 = vmatprep.subr.mxu1 %v2869_v31 }
 0xbb6   :  { %v8091_v33 = vpop.eup %6106  ;;  %5689 = vmatpush3.msra.mxu1 %v2869_v31 }
 0xbb7   :  { %v8093_v56 = vpop.eup %6108  ;;  %2818 = vadd.xlane.f32.xlu1 %v8091_v33  ;;  %5690 = vmatprep.subr.mxu1 %v2867_v37 }
 0xbb8   :  { %2820 = vadd.xlane.f32.xlu0 %v8093_v56  ;;  %v2865_v28 = vpop.permute.xlu0 %2864  ;;  %5691 = vmatpush3.msra.mxu1 %v2867_v37 }
 0xbb9   :  { %5692 = vmatprep.subr.mxu1 %v2865_v28  ;;  %v2863_v63 = vpop.permute.xlu1 %2862 }
 0xbba   :  { %v8097_v36 = vpop.eup %6110  ;;  %5693 = vmatpush3.msra.mxu1 %v2865_v28 }
 0xbbb   :  { %v8099_v50 = vpop.eup %6112  ;;  %2822 = vadd.xlane.f32.xlu1 %v8097_v36  ;;  %5694 = vmatprep.subr.mxu1 %v2863_v63 }
 0xbbc   :  { %2824 = vadd.xlane.f32.xlu0 %v8099_v50  ;;  %5695 = vmatpush3.msra.mxu1 %v2863_v63 }
 0xbbe   :  { %v8103_v4 = vpop.eup %6114 }
 0xbbf   :  { %v8105_v24 = vpop.eup %6116  ;;  %2826 = vadd.xlane.f32.xlu1 %v8103_v4 }
 0xbc0   :  { %2828 = vadd.xlane.f32.xlu0 %v8105_v24 }
 0xbd0   :  { %3305 = vrot.lane.b32.xlu1 %v8112_v39, %s6283_s7 }
 0xbd4   :  { %3073 = vrot.lane.b32.xlu1 %v9070_v10, %s6284_s9 }
 0xbd6   :  { %3071 = vrot.lane.b32.xlu0 %v9071_v49, %s6284_s9 }
 0xbd8   :  { %3137 = vrot.lane.b32.xlu1 %v7937_v19, %s6285_s10  ;;  %v9074_v19 = vld [vmem:[#allocation26_spill] sm:$0xff] }
 0xbda   :  { %3135 = vrot.lane.b32.xlu0 %v7939_v20, %s6285_s10  ;;  %v9075_v20 = vld [vmem:[#allocation27_spill] sm:$0xff] }
 0xbdc   :  { %3303 = vrot.lane.b32.xlu1 %v8126_v17, %s6283_s7 }
 0xbde   :  { %3077 = vrot.lane.b32.xlu0 %v9072_v55, %s6284_s9 }
 0xbe0   :  { %3075 = vrot.lane.b32.xlu1 %v9073_v60, %s6284_s9 }
 0xbe2   :  { %3141 = vrot.lane.b32.xlu0 %v7941_v45, %s6285_s10  ;;  %v9077_v45 = vld [vmem:[#allocation29_spill] sm:$0xff] }
 0xbe4   :  { %3139 = vrot.lane.b32.xlu1 %v7943_v13, %s6285_s10  ;;  %v9078_v13 = vld [vmem:[#allocation30_spill] sm:$0xff] }
 0xbe6   :  { %3081 = vrot.lane.b32.xlu0 %v9074_v19, %s6284_s9 }
 0xbe8   :  { %3079 = vrot.lane.b32.xlu1 %v9075_v20, %s6284_s9 }
 0xbea   :  { %3145 = vrot.lane.b32.xlu0 %v7945_v18, %s6285_s10  ;;  %v9079_v18 = vld [vmem:[#allocation31_spill] sm:$0xff] }
 0xbec   :  { %3143 = vrot.lane.b32.xlu1 %v7947_v41, %s6285_s10  ;;  %v9080_v41 = vld [vmem:[#allocation32_spill] sm:$0xff] }
 0xbee   :  { %3085 = vrot.lane.b32.xlu0 %v9076_v59, %s6284_s9 }
 0xbf0   :  { %3083 = vrot.lane.b32.xlu1 %v9077_v45, %s6284_s9 }
 0xbf2   :  { %3149 = vrot.lane.b32.xlu0 %v7949_v54, %s6285_s10  ;;  %v9081_v54 = vld [vmem:[#allocation33_spill] sm:$0xff] }
 0xbf4   :  { %3147 = vrot.lane.b32.xlu1 %v7951_v35, %s6285_s10  ;;  %v9082_v35 = vld [vmem:[#allocation34_spill] sm:$0xff] }
 0xbf6   :  { %3089 = vrot.lane.b32.xlu0 %v9078_v13, %s6284_s9 }
 0xbf8   :  { %3087 = vrot.lane.b32.xlu1 %v9079_v18, %s6284_s9 }
 0xbfa   :  { %3153 = vrot.lane.b32.xlu0 %v7953_v57, %s6285_s10  ;;  %v9083_v57 = vld [vmem:[#allocation35_spill] sm:$0xff] }
 0xbfc   :  { %3151 = vrot.lane.b32.xlu1 %v7955_v48, %s6285_s10  ;;  %v9084_v48 = vld [vmem:[#allocation36_spill] sm:$0xff] }
 0xbfe   :  { %3093 = vrot.lane.b32.xlu0 %v9080_v41, %s6284_s9 }
 0xc00   :  { %3091 = vrot.lane.b32.xlu1 %v9081_v54, %s6284_s9 }
 0xc02   :  { %3157 = vrot.lane.b32.xlu0 %v7957_v23, %s6285_s10  ;;  %v9085_v23 = vld [vmem:[#allocation37_spill] sm:$0xff] }
 0xc04   :  { %3155 = vrot.lane.b32.xlu1 %v7959_v30, %s6285_s10 }
 0xc06   :  { %3097 = vrot.lane.b32.xlu0 %v9082_v35, %s6284_s9 }
 0xc08   :  { %3095 = vrot.lane.b32.xlu1 %v9083_v57, %s6284_s9 }
 0xc0a   :  { %3161 = vrot.lane.b32.xlu0 %v7961_v1, %s6285_s10 }
 0xc0c   :  { %3159 = vrot.lane.b32.xlu1 %v7963_v46, %s6285_s10 }
 0xc0e   :  { %3101 = vrot.lane.b32.xlu0 %v9084_v48, %s6284_s9 }
 0xc10   :  { %3099 = vrot.lane.b32.xlu1 %v9085_v23, %s6284_s9 }
 0xc14   :  { %3163 = vrot.lane.b32.xlu1 %v7967_v61, %s6285_s10 }
 0xc2a   :  { %v2801_v30 = vpop.xlane.xlu0 %2800 }
 0xc2b   :  { %6118 = vrcp.f32 %v2801_v30 }
 0xc2c   :  { %v2799_v51 = vpop.xlane.xlu1 %2798 }
 0xc2d   :  { %6120 = vrcp.f32 %v2799_v51 }
 0xc30   :  { %v2803_v38 = vpop.xlane.xlu1 %2802 }
 0xc31   :  { %v2805_v11 = vpop.xlane.xlu0 %2804  ;;  %6122 = vrcp.f32 %v2803_v38 }
 0xc32   :  { %6124 = vrcp.f32 %v2805_v11 }
 0xc34   :  { %v2807_v1 = vpop.xlane.xlu1 %2806 }
 0xc35   :  { %v2809_v26 = vpop.xlane.xlu0 %2808  ;;  %6126 = vrcp.f32 %v2807_v1 }
 0xc36   :  { %6128 = vrcp.f32 %v2809_v26 }
 0xc38   :  { %v2811_v46 = vpop.xlane.xlu1 %2810  ;;  %v6119_v22 = vpop.eup %6118 }
 0xc39   :  { %v2813_v21 = vpop.xlane.xlu0 %2812  ;;  %6130 = vrcp.f32 %v2811_v46  ;;  %v2847_v3 = vmul.f32 %v6119_v22, %v8053_v53 }
 0xc3a   :  { %v6121_v58 = vpop.eup %6120  ;;  %6132 = vrcp.f32 %v2813_v21 }
 0xc3b   :  { %v2846_v61 = vmul.f32 %v6121_v58, %v8058_v44 }
 0xc3c   :  { %v2815_v15 = vpop.xlane.xlu1 %2814 }
 0xc3d   :  { %v2817_v14 = vpop.xlane.xlu0 %2816  ;;  %6134 = vrcp.f32 %v2815_v15  ;;  %5696 = vmatprep.mubr.f32.mxu1 %v2846_v61 }
 0xc3e   :  { %v6123_v42 = vpop.eup %6122  ;;  %6136 = vrcp.f32 %v2817_v14  ;;  %5697 = vmatmul.mubr.f32.vlgmr.msra.gmra.mxu1 %v2847_v3 }
 0xc3f   :  { %v6125_v40 = vpop.eup %6124  ;;  %v2848_v34 = vmul.f32 %v6123_v42, %v8063_v43 }
 0xc40   :  { %v2819_v12 = vpop.xlane.xlu1 %2818  ;;  %v2849_v6 = vmul.f32 %v6125_v40, %v8065_v52 }
 0xc41   :  { %v2821_v9 = vpop.xlane.xlu0 %2820  ;;  %6138 = vrcp.f32 %v2819_v12  ;;  %5699 = vmatprep.mubr.f32.mxu1 %v2848_v34 }
 0xc42   :  { %v6127_v2 = vpop.eup %6126  ;;  %6140 = vrcp.f32 %v2821_v9  ;;  %5700 = vmatmul.mubr.f32.gmra.mxu1 %v2849_v6 }
 0xc43   :  { %v6129_v44 = vpop.eup %6128  ;;  %v2850_v53 = vmul.f32 %v6127_v2, %v8071_v8 }
 0xc44   :  { %v2823_v5 = vpop.xlane.xlu1 %2822  ;;  %v2851_v27 = vmul.f32 %v6129_v44, %v8073_v62 }
 0xc45   :  { %v2825_v25 = vpop.xlane.xlu0 %2824  ;;  %6142 = vrcp.f32 %v2823_v5  ;;  %5702 = vmatprep.mubr.f32.mxu1 %v2850_v53 }
 0xc46   :  { %v6131_v0 = vpop.eup %6130  ;;  %6144 = vrcp.f32 %v2825_v25  ;;  %5703 = vmatmul.mubr.f32.gmra.mxu1 %v2851_v27 }
 0xc47   :  { %v6133_v43 = vpop.eup %6132  ;;  %v2852_v52 = vmul.f32 %v6131_v0, %v8079_v7 }
 0xc48   :  { %v2827_v31 = vpop.xlane.xlu1 %2826  ;;  %v2853_v37 = vmul.f32 %v6133_v43, %v8081_v29 }
 0xc49   :  { %v2829_v28 = vpop.xlane.xlu0 %2828  ;;  %6146 = vrcp.f32 %v2827_v31  ;;  %5705 = vmatprep.mubr.f32.mxu1 %v2852_v52 }
 0xc4a   :  { %v6135_v63 = vpop.eup %6134  ;;  %6148 = vrcp.f32 %v2829_v28  ;;  %5706 = vmatmul.mubr.f32.gmra.mxu1 %v2853_v37 }
 0xc4b   :  { %v6137_v8 = vpop.eup %6136  ;;  %v2854_v62 = vmul.f32 %v6135_v63, %v8085_v32 }
 0xc4c   :  { %v3306_v10 = vpop.permute.xlu1 %3305  ;;  %v2855_v49 = vmul.f32 %v6137_v8, %v8087_v16 }
 0xc4d   :  { %5708 = vmatprep.mubr.f32.mxu1 %v2854_v62  ;;  %5720 = vmatprep.subr.mxu1 %v3306_v10  ;;  %v3072_v1 = vpop.permute.xlu0 %3071 }
 0xc4e   :  { %v6139_v55 = vpop.eup %6138  ;;  %5709 = vmatmul.mubr.f32.gmra.mxu1 %v2855_v49  ;;  %v9086_v49 = vld [vmem:[#allocation11_spill] sm:$0xff] }
 0xc4f   :  { %v6141_v7 = vpop.eup %6140  ;;  %v2856_v60 = vmul.f32 %v6139_v55, %v8091_v33  ;;  %5721 = vmatpush3.msra.mxu1 %v3306_v10  ;;  %v3247_v55 = vsel %vm550_vm1, %v9086_v49, %v3072_v1 }
 0xc50   :  { %v8194_v29 = vpop.permute.xlu1 %3073  ;;  %v2857_v19 = vmul.f32 %v6141_v7, %v8093_v56 }
 0xc51   :  { %5711 = vmatprep.mubr.f32.mxu1 %v2856_v60  ;;  %v3136_v22 = vpop.permute.xlu0 %3135  ;;  %v9087_v60 = vld [vmem:[#allocation10_spill] sm:$0xff] }
 0xc52   :  { %v6143_v20 = vpop.eup %6142  ;;  %5712 = vmatmul.mubr.f32.gmra.mxu1 %v2857_v19  ;;  %v3264_v7 = vsel %vm3263_vm2, %v3247_v55, %v3136_v22  ;;  %v3248_v19 = vsel %vm550_vm1, %v9087_v60, %v8194_v29  ;;  %v9095_v55 = vld [vmem:[#allocation18_spill] sm:$0xff] }
 0xc53   :  { %v6145_v59 = vpop.eup %6144  ;;  %v2858_v32 = vmul.f32 %v6143_v20, %v8097_v36 }
 0xc54   :  { %v8198_v45 = vpop.permute.xlu1 %3137  ;;  %v2859_v16 = vmul.f32 %v6145_v59, %v8099_v50 }
 0xc55   :  { %5714 = vmatprep.mubr.f32.mxu1 %v2858_v32  ;;  %v3078_v21 = vpop.permute.xlu0 %3077  ;;  %v3265_v59 = vsel %vm3263_vm2, %v3248_v19, %v8198_v45  ;;  %v9088_v32 = vld [vmem:[#allocation13_spill] sm:$0xff] }
 0xc56   :  { %v6147_v13 = vpop.eup %6146  ;;  %5715 = vmatmul.mubr.f32.gmra.mxu1 %v2859_v16 }
 0xc57   :  { %v6149_v18 = vpop.eup %6148  ;;  %v2860_v33 = vmul.f32 %v6147_v13, %v8103_v4 }
 0xc58   :  { %v3304_v41 = vpop.permute.xlu1 %3303  ;;  %v2861_v54 = vmul.f32 %v6149_v18, %v8105_v24 }
 0xc59   :  { %5717 = vmatprep.mubr.f32.mxu1 %v2860_v33  ;;  %5722 = vmatprep.subr.mxu1 %v3304_v41  ;;  %v3142_v61 = vpop.permute.xlu0 %3141 }
 0xc5a   :  { %5718 = vmatmul.mubr.f32.gmra.mxu1 %v2861_v54 }
 0xc5b   :  { %5723 = vmatpush3.msra.mxu1 %v3304_v41 }
 0xc5c   :  { %v3076_v58 = vpop.permute.xlu1 %3075 }
 0xc5d   :  { %v3082_v3 = vpop.permute.xlu0 %3081  ;;  %v3249_v16 = vsel %vm550_vm1, %v9088_v32, %v3076_v58 }
 0xc60   :  { %v3140_v15 = vpop.permute.xlu1 %3139 }
 0xc61   :  { %v3146_v42 = vpop.permute.xlu0 %3145  ;;  %v3266_v18 = vsel %vm3263_vm2, %v3249_v16, %v3140_v15 }
 0xc64   :  { %v3080_v14 = vpop.permute.xlu1 %3079 }
 0xc65   :  { %v3086_v34 = vpop.permute.xlu0 %3085 }
 0xc68   :  { %v3144_v40 = vpop.permute.xlu1 %3143 }
 0xc69   :  { %v3150_v6 = vpop.permute.xlu0 %3149 }
 0xc6c   :  { %v3084_v12 = vpop.permute.xlu1 %3083 }
 0xc6d   :  { %v8221_v2 = vpop.permute.xlu0 %3089 }
 0xc70   :  { %v3148_v9 = vpop.permute.xlu1 %3147 }
 0xc71   :  { %v8223_v53 = vpop.permute.xlu0 %3153 }
 0xc74   :  { %v3088_v44 = vpop.permute.xlu1 %3087 }
 0xc75   :  { %v8225_v27 = vpop.permute.xlu0 %3093 }
 0xc78   :  { %v3152_v5 = vpop.permute.xlu1 %3151 }
 0xc79   :  { %v8227_v0 = vpop.permute.xlu0 %3157 }
 0xc7c   :  { %v3092_v25 = vpop.permute.xlu1 %3091 }
 0xc7d   :  { %v8229_v52 = vpop.permute.xlu0 %3097 }
 0xc80   :  { %v3156_v43 = vpop.permute.xlu1 %3155 }
 0xc81   :  { %v8233_v37 = vpop.permute.xlu0 %3161 }
 0xc84   :  { %v8231_v31 = vpop.permute.xlu1 %3095 }
 0xc85   :  { %v8237_v63 = vpop.permute.xlu0 %3101 }
 0xc88   :  { %v8235_v28 = vpop.permute.xlu1 %3159 }
 0xc8c   :  { %v8239_v8 = vpop.permute.xlu1 %3099 }
 0xc90   :  { %v8241_v10 = vpop.permute.xlu1 %3163 }
 0xcfe   :  { %v5698_v56 = vpop.f32.mrf.mxu1 }
 0xcff   :  { %3201 = vrot.lane.b32.xlu0 %v5698_v56, %s6286_s13  ;;  %v9089_v56 = vld [vmem:[#allocation12_spill] sm:$0xff] }
 0xd00   :  { %v2976_v36 = vpop.f32.mrf.mxu1 }
 0xd02   :  { %v5701_v35 = vpop.f32.mrf.mxu1 }
 0xd03   :  { %3199 = vrot.lane.b32.xlu0 %v2976_v36, %s6286_s13  ;;  %v3250_v36 = vsel %vm550_vm1, %v9089_v56, %v3078_v21 }
 0xd04   :  { %v2986_v50 = vpop.f32.mrf.mxu1 }
 0xd05   :  { %3203 = vrot.lane.b32.xlu1 %v2986_v50, %s6286_s13  ;;  %v9090_v50 = vld [vmem:[#allocation15_spill] sm:$0xff] }
 0xd06   :  { %v5704_v57 = vpop.f32.mrf.mxu1 }
 0xd07   :  { %3165 = vrot.lane.b32.xlu0 %v7965_v47, %s6285_s10 }
 0xd08   :  { %v2996_v4 = vpop.f32.mrf.mxu1 }
 0xd09   :  { %3207 = vrot.lane.b32.xlu1 %v2996_v4, %s6286_s13 }
 0xd0a   :  { %v5707_v24 = vpop.f32.mrf.mxu1 }
 0xd0b   :  { %3205 = vrot.lane.b32.xlu0 %v5701_v35, %s6286_s13  ;;  %v3267_v35 = vsel %vm3263_vm2, %v3250_v36, %v3142_v61  ;;  %v9093_v61 = vld [vmem:[#allocation16_spill] sm:$0xff] }
 0xd0c   :  { %v3006_v48 = vpop.f32.mrf.mxu1  ;;  %v3254_v15 = vsel %vm550_vm1, %v9093_v61, %v3086_v34  ;;  %v3256_v34 = vsel %vm550_vm1, %v9095_v55, %v8221_v2  ;;  %v9097_v2 = vld [vmem:[#allocation20_spill] sm:$0xff] }
 0xd0d   :  { %3211 = vrot.lane.b32.xlu1 %v3006_v48, %s6286_s13  ;;  %v3258_v32 = vsel %vm550_vm1, %v9097_v2, %v8225_v27  ;;  %v9099_v27 = vld [vmem:[#allocation22_spill] sm:$0xff] }
 0xd0e   :  { %v5710_v23 = vpop.f32.mrf.mxu1 }
 0xd0f   :  { %3209 = vrot.lane.b32.xlu0 %v5704_v57, %s6286_s13  ;;  %v3251_v57 = vsel %vm550_vm1, %v9090_v50, %v3080_v14  ;;  %v9094_v14 = vld [vmem:[#allocation19_spill] sm:$0xff] }
 0xd10   :  { %v3016_v30 = vpop.f32.mrf.mxu1 }
 0xd11   :  { %3215 = vrot.lane.b32.xlu1 %v3016_v30, %s6286_s13 }
 0xd12   :  { %v5713_v51 = vpop.f32.mrf.mxu1 }
 0xd13   :  { %3213 = vrot.lane.b32.xlu0 %v5707_v24, %s6286_s13  ;;  %v3268_v24 = vsel %vm3263_vm2, %v3251_v57, %v3144_v40 }
 0xd14   :  { %v3026_v38 = vpop.f32.mrf.mxu1 }
 0xd15   :  { %3219 = vrot.lane.b32.xlu1 %v3026_v38, %s6286_s13 }
 0xd16   :  { %v5716_v47 = vpop.f32.mrf.mxu1 }
 0xd17   :  { %3217 = vrot.lane.b32.xlu0 %v5710_v23, %s6286_s13 }
 0xd18   :  { %v3036_v11 = vpop.f32.mrf.mxu1 }
 0xd19   :  { %3223 = vrot.lane.b32.xlu1 %v3036_v11, %s6286_s13  ;;  %v9092_v11 = vld [vmem:[#allocation17_spill] sm:$0xff] }
 0xd1a   :  { %v5719_v26 = vpop.f32.mrf.mxu1  ;;  %v3253_v1 = vsel %vm550_vm1, %v9092_v11, %v3084_v12 }
 0xd1b   :  { %3221 = vrot.lane.b32.xlu0 %v5713_v51, %s6286_s13  ;;  %v9091_v51 = vld [vmem:[#allocation14_spill] sm:$0xff] }
 0xd1c   :  { %v3046_v46 = vpop.f32.mrf.mxu1  ;;  %v3252_v38 = vsel %vm550_vm1, %v9091_v51, %v3082_v3  ;;  %v3271_v3 = vsel %vm3263_vm2, %v3254_v15, %v3150_v6  ;;  %v3273_v6 = vsel %vm3263_vm2, %v3256_v34, %v8223_v53  ;;  %v3275_v53 = vsel %vm3263_vm2, %v3258_v32, %v8227_v0 }
 0xd1d   :  { %3227 = vrot.lane.b32.xlu1 %v3046_v46, %s6286_s13  ;;  %v3270_v46 = vsel %vm3263_vm2, %v3253_v1, %v3148_v9 }
 0xd1f   :  { %3225 = vrot.lane.b32.xlu0 %v5716_v47, %s6286_s13  ;;  %v3269_v47 = vsel %vm3263_vm2, %v3252_v38, %v3146_v42  ;;  %v3255_v42 = vsel %vm550_vm1, %v9094_v14, %v3088_v44  ;;  %v9096_v44 = vld [vmem:[#allocation21_spill] sm:$0xff]  ;;  %v6236_v14 = vld [vmem:[%s8976_s0 + $0x10] sm:$0xff] }
 0xd20   :  { %v3272_v12 = vsel %vm3263_vm2, %v3255_v42, %v3152_v5 }
 0xd23   :  { %3229 = vrot.lane.b32.xlu0 %v5719_v26, %s6286_s13 }
 0xd71   :  { %v3202_v62 = vpop.permute.xlu0 %3201 }
 0xd72   :  { %v3282_v33 = vsel %vm3280_vm3, %v3265_v59, %v3202_v62 }
 0xd75   :  { %v3200_v20 = vpop.permute.xlu0 %3199 }
 0xd76   :  { %v3281_v13 = vsel %vm3280_vm3, %v3264_v7, %v3200_v20  ;;  %v3257_v7 = vsel %vm550_vm1, %v9096_v44, %v3092_v25  ;;  %v9098_v25 = vld [vmem:[#allocation23_spill] sm:$0xff]  ;;  %v6238_v44 = vld [vmem:[%s8976_s0 + $0x20] sm:$0xff] }
 0xd77   :  { %5724 = vmatprep.mubr.msk.f32.mxu1 %vm59_vm0, %v3281_v13  ;;  %v3204_v41 = vpop.permute.xlu1 %3203  ;;  %v3274_v60 = vsel %vm3263_vm2, %v3257_v7, %v3156_v43  ;;  %v3259_v43 = vsel %vm550_vm1, %v9098_v25, %v8231_v31  ;;  %v9100_v31 = vld [vmem:[#allocation25_spill] sm:$0xff]  ;;  %v6240_v25 = vld [vmem:[%s8976_s0 + $0x30] sm:$0xff] }
 0xd78   :  { %v3283_v54 = vsel %vm3280_vm3, %v3266_v18, %v3204_v41  ;;  %5725 = vmatmul.mubr.msk.f32.vlgmr.msra.gmra.mxu1 %vm59_vm0, %v3282_v33  ;;  %v3276_v13 = vsel %vm3263_vm2, %v3259_v43, %v8235_v28  ;;  %v3260_v41 = vsel %vm550_vm1, %v9099_v27, %v8229_v52  ;;  %v3261_v28 = vsel %vm550_vm1, %v9100_v31, %v8239_v8  ;;  %v9101_v52 = vld [vmem:[#allocation24_spill] sm:$0xff]  ;;  %v6242_v31 = vld [vmem:[%s8976_s0 + $0x40] sm:$0xff] }
 0xd79   :  { %v8259_v29 = vpop.permute.xlu0 %3165  ;;  %5727 = vmatprep.mubr.msk.f32.mxu1 %vm59_vm0, %v3283_v54  ;;  %v3277_v0 = vsel %vm3263_vm2, %v3260_v41, %v8233_v37  ;;  %v3278_v56 = vsel %vm3263_vm2, %v3261_v28, %v8241_v10  ;;  %v3262_v50 = vsel %vm550_vm1, %v9101_v52, %v8237_v63  ;;  %v9102_v10 = vld [vmem:[#allocation5_spill] sm:$0xff] }
 0xd7a   :  { %v3279_v37 = vsel %vm3263_vm2, %v3262_v50, %v8259_v29  ;;  %v6233_v29 = vld [vmem:[%s8976_s0 + $0x8] sm:$0xff] }
 0xd7b   :  { %v3208_v45 = vpop.permute.xlu1 %3207 }
 0xd7c   :  { %v3285_v23 = vsel %vm3280_vm3, %v3268_v24, %v3208_v45  ;;  %v8343_v24 = vld [vmem:[%s8980_s4] sm:$0xff] }
 0xd7d   :  { %v3206_v4 = vpop.permute.xlu0 %3205 }
 0xd7e   :  { %v3284_v48 = vsel %vm3280_vm3, %v3267_v35, %v3206_v4  ;;  %v3299_v4 = vsub.s32 6, %v9102_v10 }
 0xd7f   :  { %5728 = vmatmul.mubr.msk.f32.gmra.mxu1 %vm59_vm0, %v3284_v48  ;;  %v3212_v30 = vpop.permute.xlu1 %3211 }
 0xd80   :  { %5730 = vmatprep.mubr.msk.f32.mxu1 %vm59_vm0, %v3285_v23  ;;  %v3287_v21 = vsel %vm3280_vm3, %v3270_v46, %v3212_v30  ;;  %v8346_v48 = vrot.slane %v8343_v24, %v3299_v4 }
 0xd81   :  { %v3210_v26 = vpop.permute.xlu0 %3209 }
 0xd82   :  { %v3286_v22 = vsel %vm3280_vm3, %v3269_v47, %v3210_v26  ;;  %v6234_v47 = vld [vmem:[%s8976_s0] sm:$0xff] }
 0xd83   :  { %5731 = vmatmul.mubr.msk.f32.gmra.mxu1 %vm59_vm0, %v3286_v22  ;;  %v3216_v58 = vpop.permute.xlu1 %3215 }
 0xd84   :  { %5733 = vmatprep.mubr.msk.f32.mxu1 %vm59_vm0, %v3287_v21  ;;  %v3289_v62 = vsel %vm3280_vm3, %v3272_v12, %v3216_v58  ;;  %v6235_v58 = vld [vmem:[%s8976_s0 + $0x18] sm:$0xff] }
 0xd85   :  { %v3214_v40 = vpop.permute.xlu0 %3213 }
 0xd86   :  { %v3288_v9 = vsel %vm3280_vm3, %v3271_v3, %v3214_v40 }
 0xd87   :  { %5734 = vmatmul.mubr.msk.f32.gmra.mxu1 %vm59_vm0, %v3288_v9  ;;  %v3220_v49 = vpop.permute.xlu1 %3219 }
 0xd88   :  { %5736 = vmatprep.mubr.msk.f32.mxu1 %vm59_vm0, %v3289_v62  ;;  %v3291_v20 = vsel %vm3280_vm3, %v3274_v60, %v3220_v49  ;;  %v6237_v62 = vld [vmem:[%s8976_s0 + $0x28] sm:$0xff] }
 0xd89   :  { %v3218_v5 = vpop.permute.xlu0 %3217 }
 0xd8a   :  { %v3290_v19 = vsel %vm3280_vm3, %v3273_v6, %v3218_v5 }
 0xd8b   :  { %5737 = vmatmul.mubr.msk.f32.gmra.mxu1 %vm59_vm0, %v3290_v19  ;;  %v3224_v59 = vpop.permute.xlu1 %3223 }
 0xd8c   :  { %5739 = vmatprep.mubr.msk.f32.mxu1 %vm59_vm0, %v3291_v20  ;;  %v3293_v33 = vsel %vm3280_vm3, %v3276_v13, %v3224_v59  ;;  %v6239_v20 = vld [vmem:[%s8976_s0 + $0x38] sm:$0xff] }
 0xd8d   :  { %v3222_v16 = vpop.permute.xlu0 %3221 }
 0xd8e   :  { %v3292_v18 = vsel %vm3280_vm3, %v3275_v53, %v3222_v16 }
 0xd8f   :  { %5740 = vmatmul.mubr.msk.f32.gmra.mxu1 %vm59_vm0, %v3292_v18  ;;  %v3228_v54 = vpop.permute.xlu1 %3227 }
 0xd90   :  { %5742 = vmatprep.mubr.msk.f32.mxu1 %vm59_vm0, %v3293_v33  ;;  %v3295_v35 = vsel %vm3280_vm3, %v3278_v56, %v3228_v54  ;;  %v6241_v33 = vld [vmem:[%s8976_s0 + $0x48] sm:$0xff] }
 0xd91   :  { %v3226_v45 = vpop.permute.xlu0 %3225 }
 0xd92   :  { %v3294_v36 = vsel %vm3280_vm3, %v3277_v0, %v3226_v45 }
 0xd93   :  { %5743 = vmatmul.mubr.msk.f32.gmra.mxu1 %vm59_vm0, %v3294_v36 }
 0xd94   :  { %5745 = vmatprep.mubr.msk.f32.mxu1 %vm59_vm0, %v3295_v35  ;;  %v6243_v35 = vld [vmem:[%s8976_s0 + $0x58] sm:$0xff] }
 0xd95   :  { %v3230_v8 = vpop.permute.xlu0 %3229 }
 0xd96   :  { %v3296_v57 = vsel %vm3280_vm3, %v3279_v37, %v3230_v8 }
 0xd97   :  { %5746 = vmatmul.mubr.msk.f32.gmra.mxu1 %vm59_vm0, %v3296_v57  ;;  %v6244_v57 = vld [vmem:[%s8976_s0 + $0x50] sm:$0xff] }
 0xe38   :  { %v5726_v63 = vpop.f32.mrf.mxu1 }
 0xe39   :  { %v3429_v23 = vadd.f32 %v5726_v63, %v8346_v48 }
 0xe3a   :  { %v3423_v30 = vpop.f32.mrf.mxu1 }
 0xe3b   :  { %v8352_v51 = vadd.f32 %v6233_v29, %v3429_v23  ;;  %v3424_v38 = vadd.f32 %v3423_v30, %v8346_v48  ;;  %v6245_v29 = vld [vmem:[%s8976_s0 + $0x68] sm:$0xff] }
 0xe3d   :  { %v8358_v11 = vadd.f32 %v6234_v47, %v3424_v38  ;;  %v3521_v1 = vsel %vm59_vm0, %v8352_v51, 0.0 }
 0xe3e   :  { %3522 = vadd.xlane.f32.xlu0 %v3521_v1 }
 0xe3f   :  { %v5729_v26 = vpop.f32.mrf.mxu1  ;;  %v3518_v46 = vsel %vm59_vm0, %v8358_v11, 0.0 }
 0xe40   :  { %v3439_v22 = vadd.f32 %v5729_v26, %v8346_v48  ;;  %3519 = vadd.xlane.f32.xlu1 %v3518_v46  ;;  %v6246_v46 = vld [vmem:[%s8976_s0 + $0x60] sm:$0xff] }
 0xe41   :  { %v3433_v21 = vpop.f32.mrf.mxu1 }
 0xe42   :  { %v8368_v61 = vadd.f32 %v6235_v58, %v3439_v22  ;;  %v3434_v15 = vadd.f32 %v3433_v21, %v8346_v48 }
 0xe43   :  { %v5732_v3 = vpop.f32.mrf.mxu1 }
 0xe44   :  { %v8374_v42 = vadd.f32 %v6236_v14, %v3434_v15  ;;  %v3449_v40 = vadd.f32 %v5732_v3, %v8346_v48  ;;  %v3527_v12 = vsel %vm59_vm0, %v8368_v61, 0.0  ;;  %v6247_v3 = vld [vmem:[%s8976_s0 + $0x78] sm:$0xff] }
 0xe45   :  { %3528 = vadd.xlane.f32.xlu1 %v3527_v12  ;;  %v3443_v9 = vpop.f32.mrf.mxu1 }
 0xe46   :  { %v8382_v49 = vadd.f32 %v6237_v62, %v3449_v40  ;;  %v3444_v55 = vadd.f32 %v3443_v9, %v8346_v48  ;;  %v3524_v34 = vsel %vm59_vm0, %v8374_v42, 0.0  ;;  %v6248_v9 = vld [vmem:[%s8976_s0 + $0x70] sm:$0xff]  ;;  %s6287_s0 = smov 64  }
 0xe47   :  { %3525 = vadd.xlane.f32.xlu0 %v3524_v34  ;;  %v5735_v6 = vpop.f32.mrf.mxu1 }
 0xe48   :  { %v8390_v7 = vadd.f32 %v6238_v44, %v3444_v55  ;;  %v3459_v5 = vadd.f32 %v5735_v6, %v8346_v48  ;;  %v3533_v60 = vsel %vm59_vm0, %v8382_v49, 0.0 }
 0xe49   :  { %3534 = vadd.xlane.f32.xlu1 %v3533_v60  ;;  %v3453_v19 = vpop.f32.mrf.mxu1 }
 0xe4a   :  { %v8398_v59 = vadd.f32 %v6239_v20, %v3459_v5  ;;  %v3454_v2 = vadd.f32 %v3453_v19, %v8346_v48  ;;  %v3530_v32 = vsel %vm59_vm0, %v8390_v7, 0.0 }
 0xe4b   :  { %3531 = vadd.xlane.f32.xlu0 %v3530_v32  ;;  %v5738_v53 = vpop.f32.mrf.mxu1 }
 0xe4c   :  { %v8406_v43 = vadd.f32 %v6240_v25, %v3454_v2  ;;  %v3469_v16 = vadd.f32 %v5738_v53, %v8346_v48  ;;  %v3539_v13 = vsel %vm59_vm0, %v8398_v59, 0.0 }
 0xe4d   :  { %3540 = vadd.xlane.f32.xlu1 %v3539_v13  ;;  %v3463_v18 = vpop.f32.mrf.mxu1 }
 0xe4e   :  { %v8414_v27 = vadd.f32 %v6241_v33, %v3469_v16  ;;  %v3464_v41 = vadd.f32 %v3463_v18, %v8346_v48  ;;  %v3536_v54 = vsel %vm59_vm0, %v8406_v43, 0.0 }
 0xe4f   :  { %3537 = vadd.xlane.f32.xlu0 %v3536_v54  ;;  %v5741_v0 = vpop.f32.mrf.mxu1 }
 0xe50   :  { %v8422_v28 = vadd.f32 %v6242_v31, %v3464_v41  ;;  %v3479_v45 = vadd.f32 %v5741_v0, %v8346_v48  ;;  %v3545_v56 = vsel %vm59_vm0, %v8414_v27, 0.0 }
 0xe51   :  { %3546 = vadd.xlane.f32.xlu1 %v3545_v56  ;;  %v3473_v36 = vpop.f32.mrf.mxu1 }
 0xe52   :  { %v8430_v52 = vadd.f32 %v6243_v35, %v3479_v45  ;;  %v3474_v50 = vadd.f32 %v3473_v36, %v8346_v48  ;;  %v3542_v37 = vsel %vm59_vm0, %v8422_v28, 0.0 }
 0xe53   :  { %3543 = vadd.xlane.f32.xlu0 %v3542_v37  ;;  %v5744_v8 = vpop.f32.mrf.mxu1 }
 0xe54   :  { %v8438_v4 = vadd.f32 %v6244_v57, %v3474_v50  ;;  %v3489_v63 = vadd.f32 %v5744_v8, %v8346_v48  ;;  %v3551_v23 = vsel %vm59_vm0, %v8430_v52, 0.0 }
 0xe55   :  { %3552 = vadd.xlane.f32.xlu1 %v3551_v23  ;;  %v3483_v30 = vpop.f32.mrf.mxu1 }
 0xe56   :  { %v8446_v38 = vadd.f32 %v6245_v29, %v3489_v63  ;;  %v3484_v47 = vadd.f32 %v3483_v30, %v8346_v48  ;;  %v3548_v1 = vsel %vm59_vm0, %v8438_v4, 0.0 }
 0xe57   :  { %3549 = vadd.xlane.f32.xlu0 %v3548_v1  ;;  %v5747_v26 = vpop.f32.mrf.mxu1 }
 0xe58   :  { %v8454_v22 = vadd.f32 %v6246_v46, %v3484_v47  ;;  %v3499_v21 = vadd.f32 %v5747_v26, %v8346_v48  ;;  %v3557_v58 = vsel %vm59_vm0, %v8446_v38, 0.0 }
 0xe59   :  { %3558 = vadd.xlane.f32.xlu1 %v3557_v58  ;;  %v3493_v15 = vpop.f32.mrf.mxu1 }
 0xe5a   :  { %v8462_v14 = vadd.f32 %v6247_v3, %v3499_v21  ;;  %v3494_v40 = vadd.f32 %v3493_v15, %v8346_v48  ;;  %v3554_v12 = vsel %vm59_vm0, %v8454_v22, 0.0 }
 0xe5b   :  { %3555 = vadd.xlane.f32.xlu0 %v3554_v12 }
 0xe5c   :  { %v8470_v62 = vadd.f32 %v6248_v9, %v3494_v40  ;;  %v3563_v55 = vsel %vm59_vm0, %v8462_v14, 0.0 }
 0xe5d   :  { %3564 = vadd.xlane.f32.xlu1 %v3563_v55 }
 0xe5e   :  { %v3560_v34 = vsel %vm59_vm0, %v8470_v62, 0.0 }
 0xe5f   :  { %3561 = vadd.xlane.f32.xlu0 %v3560_v34 }
 0xec7   :  { %v3523_v6 = vpop.xlane.xlu0 %3522 }
 0xec8   :  { %v3567_v48 = vmul.f32 0.0625, %v3523_v6 }
 0xec9   :  { %v3520_v44 = vpop.xlane.xlu1 %3519 }
 0xeca   :  { %v8477_v5 = vsub.f32 %v8352_v51, %v3567_v48  ;;  %v3566_v60 = vmul.f32 0.0625, %v3520_v44 }
 0xecc   :  { %v8480_v19 = vsub.f32 %v8358_v11, %v3566_v60  ;;  %v3599_v20 = vmul.f32 %v8477_v5, %v8477_v5 }
 0xece   :  { %v3529_v2 = vpop.xlane.xlu1 %3528  ;;  %v3617_v32 = vsel %vm59_vm0, %v3599_v20, 0.0  ;;  %v3598_v53 = vmul.f32 %v8480_v19, %v8480_v19 }
 0xecf   :  { %v3569_v25 = vmul.f32 0.0625, %v3529_v2  ;;  %3618 = vadd.xlane.f32.xlu1 %v3617_v32 }
 0xed0   :  { %v3526_v16 = vpop.xlane.xlu0 %3525  ;;  %v3614_v13 = vsel %vm59_vm0, %v3598_v53, 0.0 }
 0xed1   :  { %v8489_v18 = vsub.f32 %v8368_v61, %v3569_v25  ;;  %v3568_v33 = vmul.f32 0.0625, %v3526_v16  ;;  %3615 = vadd.xlane.f32.xlu0 %v3614_v13 }
 0xed2   :  { %v3535_v41 = vpop.xlane.xlu1 %3534 }
 0xed3   :  { %v8492_v54 = vsub.f32 %v8374_v42, %v3568_v33  ;;  %v3571_v0 = vmul.f32 0.0625, %v3535_v41  ;;  %v3601_v31 = vmul.f32 %v8489_v18, %v8489_v18 }
 0xed4   :  { %v3532_v45 = vpop.xlane.xlu0 %3531 }
 0xed5   :  { %v8497_v56 = vsub.f32 %v8382_v49, %v3571_v0  ;;  %v3570_v36 = vmul.f32 0.0625, %v3532_v45  ;;  %v3623_v35 = vsel %vm59_vm0, %v3601_v31, 0.0  ;;  %v3600_v50 = vmul.f32 %v8492_v54, %v8492_v54 }
 0xed6   :  { %3624 = vadd.xlane.f32.xlu1 %v3623_v35  ;;  %v3541_v37 = vpop.xlane.xlu1 %3540 }
 0xed7   :  { %v8503_v8 = vsub.f32 %v8390_v7, %v3570_v36  ;;  %v3573_v57 = vmul.f32 0.0625, %v3541_v37  ;;  %v3620_v63 = vsel %vm59_vm0, %v3600_v50, 0.0  ;;  %v3603_v23 = vmul.f32 %v8497_v56, %v8497_v56 }
 0xed8   :  { %v3538_v30 = vpop.xlane.xlu0 %3537  ;;  %3621 = vadd.xlane.f32.xlu0 %v3620_v63 }
 0xed9   :  { %v8509_v29 = vsub.f32 %v8398_v59, %v3573_v57  ;;  %v3572_v47 = vmul.f32 0.0625, %v3538_v30  ;;  %v3629_v1 = vsel %vm59_vm0, %v3603_v23, 0.0  ;;  %v3602_v26 = vmul.f32 %v8503_v8, %v8503_v8 }
 0xeda   :  { %3630 = vadd.xlane.f32.xlu1 %v3629_v1  ;;  %v3547_v46 = vpop.xlane.xlu1 %3546 }
 0xedb   :  { %v8515_v21 = vsub.f32 %v8406_v43, %v3572_v47  ;;  %v3575_v58 = vmul.f32 0.0625, %v3547_v46  ;;  %v3626_v15 = vsel %vm59_vm0, %v3602_v26, 0.0  ;;  %v3605_v3 = vmul.f32 %v8509_v29, %v8509_v29 }
 0xedc   :  { %v3544_v40 = vpop.xlane.xlu0 %3543  ;;  %3627 = vadd.xlane.f32.xlu0 %v3626_v15 }
 0xedd   :  { %v8521_v12 = vsub.f32 %v8414_v27, %v3575_v58  ;;  %v3574_v9 = vmul.f32 0.0625, %v3544_v40  ;;  %v3635_v55 = vsel %vm59_vm0, %v3605_v3, 0.0  ;;  %v3604_v34 = vmul.f32 %v8515_v21, %v8515_v21 }
 0xede   :  { %3636 = vadd.xlane.f32.xlu1 %v3635_v55  ;;  %v3553_v6 = vpop.xlane.xlu1 %3552 }
 0xedf   :  { %v8527_v48 = vsub.f32 %v8422_v28, %v3574_v9  ;;  %v3577_v44 = vmul.f32 0.0625, %v3553_v6  ;;  %v3632_v60 = vsel %vm59_vm0, %v3604_v34, 0.0  ;;  %v3607_v20 = vmul.f32 %v8521_v12, %v8521_v12 }
 0xee0   :  { %v3550_v2 = vpop.xlane.xlu0 %3549  ;;  %3633 = vadd.xlane.f32.xlu0 %v3632_v60  ;;  %v3991_v60 = vld [vmem:[%s8979_s3 + $0x30] sm:$0xff] }
 0xee1   :  { %v8533_v32 = vsub.f32 %v8430_v52, %v3577_v44  ;;  %v3576_v53 = vmul.f32 0.0625, %v3550_v2  ;;  %v3641_v25 = vsel %vm59_vm0, %v3607_v20, 0.0  ;;  %v3606_v16 = vmul.f32 %v8527_v48, %v8527_v48  ;;  %v3992_v44 = vld [vmem:[%s8979_s3 + $0x38] sm:$0xff]  ;;  %v3990_v20 = vld [vmem:[%s8979_s3 + $0x28] sm:$0xff] }
 0xee2   :  { %3642 = vadd.xlane.f32.xlu1 %v3641_v25  ;;  %v3559_v13 = vpop.xlane.xlu1 %3558  ;;  %5776 = vmatprep.subr.mxu1 %v3992_v44 }
 0xee3   :  { %v8539_v33 = vsub.f32 %v8438_v4, %v3576_v53  ;;  %v3579_v41 = vmul.f32 0.0625, %v3559_v13  ;;  %v3638_v0 = vsel %vm59_vm0, %v3606_v16, 0.0  ;;  %v3609_v31 = vmul.f32 %v8533_v32, %v8533_v32  ;;  %5777 = vmatpush3.msra.mxu1 %v3992_v44 }
 0xee4   :  { %v3556_v45 = vpop.xlane.xlu0 %3555  ;;  %3639 = vadd.xlane.f32.xlu0 %v3638_v0  ;;  %5778 = vmatprep.subr.mxu1 %v3991_v60 }
 0xee5   :  { %v8545_v36 = vsub.f32 %v8446_v38, %v3579_v41  ;;  %v3578_v35 = vmul.f32 0.0625, %v3556_v45  ;;  %v3647_v50 = vsel %vm59_vm0, %v3609_v31, 0.0  ;;  %v3608_v37 = vmul.f32 %v8539_v33, %v8539_v33  ;;  %5779 = vmatpush3.msra.mxu1 %v3991_v60 }
 0xee6   :  { %3648 = vadd.xlane.f32.xlu1 %v3647_v50  ;;  %v3565_v57 = vpop.xlane.xlu1 %3564  ;;  %5780 = vmatprep.subr.mxu1 %v3990_v20 }
 0xee7   :  { %v8551_v63 = vsub.f32 %v8454_v22, %v3578_v35  ;;  %v3581_v23 = vmul.f32 0.0625, %v3565_v57  ;;  %v3644_v30 = vsel %vm59_vm0, %v3608_v37, 0.0  ;;  %v3611_v47 = vmul.f32 %v8545_v36, %v8545_v36  ;;  %5781 = vmatpush3.msra.mxu1 %v3990_v20 }
 0xee8   :  { %v3562_v1 = vpop.xlane.xlu0 %3561  ;;  %3645 = vadd.xlane.f32.xlu0 %v3644_v30 }
 0xee9   :  { %v8557_v26 = vsub.f32 %v8462_v14, %v3581_v23  ;;  %v3580_v46 = vmul.f32 0.0625, %v3562_v1  ;;  %v3653_v58 = vsel %vm59_vm0, %v3611_v47, 0.0  ;;  %v3610_v15 = vmul.f32 %v8551_v63, %v8551_v63 }
 0xeea   :  { %3654 = vadd.xlane.f32.xlu1 %v3653_v58  ;;  %v3728_v1 = vsub.s32 2, %v9102_v10 }
 0xeeb   :  { %v8563_v3 = vsub.f32 %v8470_v62, %v3580_v46  ;;  %v3650_v40 = vsel %vm59_vm0, %v3610_v15, 0.0  ;;  %v3613_v9 = vmul.f32 %v8557_v26, %v8557_v26 }
 0xeec   :  { %3651 = vadd.xlane.f32.xlu0 %v3650_v40  ;;  %v8589_v44 = vrot.slane %v8343_v24, %v3728_v1 }
 0xeed   :  { %v3659_v55 = vsel %vm59_vm0, %v3613_v9, 0.0  ;;  %v3612_v34 = vmul.f32 %v8563_v3, %v8563_v3  ;;  %v3748_v9 = vsub.s32 3, %v9102_v10 }
 0xeee   :  { %3660 = vadd.xlane.f32.xlu1 %v3659_v55 }
 0xeef   :  { %v3656_v6 = vsel %vm59_vm0, %v3612_v34, 0.0 }
 0xef0   :  { %3657 = vadd.xlane.f32.xlu0 %v3656_v6 }
 0xeff   :  { %3770 = vrot.lane.b32.xlu1 %v8126_v17, %s6287_s0 }
 0xf06   :  { %3772 = vrot.lane.b32.xlu0 %v8112_v39, %s6287_s0  ;;  %v3989_v39 = vld [vmem:[%s8979_s3 + $0x20] sm:$0xff] }
 0xf07   :  { %5782 = vmatprep.subr.mxu1 %v3989_v39 }
 0xf08   :  { %5783 = vmatpush3.msra.mxu1 %v3989_v39 }
 0xf58   :  { %v3619_v2 = vpop.xlane.xlu1 %3618 }
 0xf59   :  { %v3663_v16 = vmul.f32 0.0625, %v3619_v2 }
 0xf5a   :  { %v3616_v17 = vpop.xlane.xlu0 %3615 }
 0xf5b   :  { %v3662_v53 = vmul.f32 0.0625, %v3616_v17  ;;  %v3679_v31 = vadd.f32 1e-05, %v3663_v16 }
 0xf5d   :  { %v3678_v25 = vadd.f32 1e-05, %v3662_v53 }
 0xf5f   :  { %6150 = vrsqrt.f32 %v3678_v25  ;;  %v3625_v13 = vpop.xlane.xlu1 %3624  ;;  %v8594_v25 = vrot.slane %v8343_v24, %v3748_v9 }
 0xf60   :  { %v3665_v35 = vmul.f32 0.0625, %v3625_v13  ;;  %6152 = vrsqrt.f32 %v3679_v31 }
 0xf61   :  { %v3622_v41 = vpop.xlane.xlu0 %3621 }
 0xf62   :  { %v3664_v0 = vmul.f32 0.0625, %v3622_v41  ;;  %v3681_v30 = vadd.f32 1e-05, %v3665_v35 }
 0xf63   :  { %v3631_v45 = vpop.xlane.xlu1 %3630 }
 0xf64   :  { %v3680_v50 = vadd.f32 1e-05, %v3664_v0  ;;  %v3667_v47 = vmul.f32 0.0625, %v3631_v45 }
 0xf65   :  { %v3628_v37 = vpop.xlane.xlu0 %3627 }
 0xf66   :  { %v3666_v57 = vmul.f32 0.0625, %v3628_v37  ;;  %6154 = vrsqrt.f32 %v3680_v50  ;;  %v3683_v34 = vadd.f32 1e-05, %v3667_v47 }
 0xf67   :  { %v3637_v23 = vpop.xlane.xlu1 %3636  ;;  %6156 = vrsqrt.f32 %v3681_v30 }
 0xf68   :  { %v3682_v46 = vadd.f32 1e-05, %v3666_v57  ;;  %v3669_v6 = vmul.f32 0.0625, %v3637_v23 }
 0xf69   :  { %v3634_v58 = vpop.xlane.xlu0 %3633 }
 0xf6a   :  { %v3668_v15 = vmul.f32 0.0625, %v3634_v58  ;;  %6158 = vrsqrt.f32 %v3682_v46  ;;  %v3685_v16 = vadd.f32 1e-05, %v3669_v6 }
 0xf6b   :  { %v3643_v40 = vpop.xlane.xlu1 %3642  ;;  %6160 = vrsqrt.f32 %v3683_v34 }
 0xf6c   :  { %v6151_v55 = vpop.eup %6150  ;;  %v3684_v60 = vadd.f32 1e-05, %v3668_v15  ;;  %v3671_v13 = vmul.f32 0.0625, %v3643_v40 }
 0xf6d   :  { %v3640_v20 = vpop.xlane.xlu0 %3639  ;;  %v3710_v39 = vmul.f32 %v6151_v55, %v8480_v19  ;;  %v6153_v19 = vpop.eup %6152 }
 0xf6e   :  { %v3670_v17 = vmul.f32 0.0625, %v3640_v20  ;;  %6162 = vrsqrt.f32 %v3684_v60  ;;  %v3687_v50 = vadd.f32 1e-05, %v3671_v13  ;;  %v3711_v1 = vmul.f32 %v6153_v19, %v8477_v5 }
 0xf6f   :  { %v3649_v2 = vpop.xlane.xlu1 %3648  ;;  %v3730_v53 = vmul.f32 %v8589_v44, %v3710_v39  ;;  %6164 = vrsqrt.f32 %v3685_v16 }
 0xf70   :  { %v3686_v41 = vadd.f32 1e-05, %v3670_v17  ;;  %v3673_v37 = vmul.f32 0.0625, %v3649_v2  ;;  %v3731_v20 = vmul.f32 %v8589_v44, %v3711_v1 }
 0xf71   :  { %v3646_v0 = vpop.xlane.xlu0 %3645  ;;  %v3750_v31 = vadd.f32 %v8594_v25, %v3730_v53 }
 0xf72   :  { %v3672_v45 = vmul.f32 0.0625, %v3646_v0  ;;  %6166 = vrsqrt.f32 %v3686_v41  ;;  %v3689_v46 = vadd.f32 1e-05, %v3673_v37 }
 0xf73   :  { %5752 = vmatprep.mubr.msk.f32.mxu0 %vm59_vm0, %v3750_v31  ;;  %v3655_v35 = vpop.xlane.xlu1 %3654  ;;  %v6155_v30 = vpop.eup %6154  ;;  %6168 = vrsqrt.f32 %v3687_v50 }
 0xf74   :  { %v3688_v57 = vadd.f32 1e-05, %v3672_v45  ;;  %v3675_v58 = vmul.f32 0.0625, %v3655_v35  ;;  %v6157_v15 = vpop.eup %6156  ;;  %v3712_v34 = vmul.f32 %v6155_v30, %v8492_v54  ;;  %v3751_v54 = vadd.f32 %v8594_v25, %v3731_v20 }
 0xf75   :  { %v3652_v23 = vpop.xlane.xlu0 %3651  ;;  %v3713_v2 = vmul.f32 %v6157_v15, %v8489_v18 }
 0xf76   :  { %v3674_v47 = vmul.f32 0.0625, %v3652_v23  ;;  %6170 = vrsqrt.f32 %v3688_v57  ;;  %v3691_v39 = vadd.f32 1e-05, %v3675_v58  ;;  %v3732_v41 = vmul.f32 %v8589_v44, %v3712_v34 }
 0xf77   :  { %v3661_v9 = vpop.xlane.xlu1 %3660  ;;  %v6159_v6 = vpop.eup %6158  ;;  %6172 = vrsqrt.f32 %v3689_v46  ;;  %v3733_v35 = vmul.f32 %v8589_v44, %v3713_v2 }
 0xf78   :  { %v3690_v40 = vadd.f32 1e-05, %v3674_v47  ;;  %v3677_v17 = vmul.f32 0.0625, %v3661_v9  ;;  %v6161_v5 = vpop.eup %6160  ;;  %v3714_v0 = vmul.f32 %v6159_v6, %v8503_v8  ;;  %v3752_v50 = vadd.f32 %v8594_v25, %v3732_v41 }
 0xf79   :  { %v3658_v55 = vpop.xlane.xlu0 %3657  ;;  %v3715_v18 = vmul.f32 %v6161_v5, %v8497_v56  ;;  %v3753_v23 = vadd.f32 %v8594_v25, %v3733_v35 }
 0xf7a   :  { %v3676_v60 = vmul.f32 0.0625, %v3658_v55  ;;  %6174 = vrsqrt.f32 %v3690_v40  ;;  %v3693_v45 = vadd.f32 1e-05, %v3677_v17  ;;  %v3734_v37 = vmul.f32 %v8589_v44, %v3714_v0 }
 0xf7b   :  { %v3771_v13 = vpop.permute.xlu1 %3770  ;;  %v6163_v31 = vpop.eup %6162  ;;  %6176 = vrsqrt.f32 %v3691_v39  ;;  %v3735_v30 = vmul.f32 %v8589_v44, %v3715_v18 }
 0xf7c   :  { %v3692_v53 = vadd.f32 1e-05, %v3676_v60  ;;  %v6165_v19 = vpop.eup %6164  ;;  %v3716_v8 = vmul.f32 %v6163_v31, %v8515_v21  ;;  %v3754_v1 = vadd.f32 %v8594_v25, %v3734_v37  ;;  %v3986_v37 = vld [vmem:[%s8979_s3 + $0x8] sm:$0xff] }
 0xf7d   :  { %v3773_v16 = vpop.permute.xlu0 %3772  ;;  %v3717_v56 = vmul.f32 %v6165_v19, %v8509_v29  ;;  %v3755_v15 = vadd.f32 %v8594_v25, %v3735_v30 }
 0xf7e   :  { %5748 = vmatprep.subr.mxu0 %v3773_v16  ;;  %6178 = vrsqrt.f32 %v3692_v53  ;;  %v3736_v46 = vmul.f32 %v8589_v44, %v3716_v8  ;;  %v8673_v8 = vld [vmem:[%s8980_s4 + $0x8] sm:$0xff] }
 0xf7f   :  { %5749 = vmatpush3.msra.mxu0 %v3773_v16  ;;  %v6167_v57 = vpop.eup %6166  ;;  %6180 = vrsqrt.f32 %v3693_v45  ;;  %v3737_v40 = vmul.f32 %v8589_v44, %v3717_v56 }
 0xf80   :  { %5750 = vmatprep.subr.mxu0 %v3771_v13  ;;  %v6169_v47 = vpop.eup %6168  ;;  %v3718_v58 = vmul.f32 %v6167_v57, %v8527_v48  ;;  %v3756_v29 = vadd.f32 %v8594_v25, %v3736_v46  ;;  %v9103_v57 = vsub.s32 0, %v9102_v10 }
 0xf81   :  { %5751 = vmatpush3.msra.mxu0 %v3771_v13  ;;  %v3719_v9 = vmul.f32 %v6169_v47, %v8521_v12  ;;  %v3757_v48 = vadd.f32 %v8594_v25, %v3737_v40 }
 0xf82   :  { %5753 = vmatmul.mubr.msk.f32.vlgmr.msra.gmra.mxu0 %vm59_vm0, %v3751_v54  ;;  %v3738_v34 = vmul.f32 %v8589_v44, %v3718_v58 }
 0xf83   :  { %5755 = vmatprep.mubr.msk.f32.mxu0 %vm59_vm0, %v3752_v50  ;;  %v6171_v21 = vpop.eup %6170  ;;  %v3739_v20 = vmul.f32 %v8589_v44, %v3719_v9  ;;  %v3988_v50 = vld [vmem:[%s8979_s3 + $0x18] sm:$0xff] }
 0xf84   :  { %v6173_v55 = vpop.eup %6172  ;;  %v3720_v6 = vmul.f32 %v6171_v21, %v8539_v33  ;;  %v3758_v12 = vadd.f32 %v8594_v25, %v3738_v34  ;;  %5784 = vmatprep.subr.mxu1 %v3988_v50 }
 0xf85   :  { %v3721_v39 = vmul.f32 %v6173_v55, %v8533_v32  ;;  %v3759_v33 = vadd.f32 %v8594_v25, %v3739_v20  ;;  %5785 = vmatpush3.msra.mxu1 %v3988_v50 }
 0xf86   :  { %5756 = vmatmul.mubr.msk.f32.gmra.mxu0 %vm59_vm0, %v3753_v23  ;;  %v3740_v2 = vmul.f32 %v8589_v44, %v3720_v6  ;;  %v3769_v23 = vrot.slane %v8673_v8, %v9103_v57 }
 0xf87   :  { %5758 = vmatprep.mubr.msk.f32.mxu0 %vm59_vm0, %v3754_v1  ;;  %v6175_v60 = vpop.eup %6174  ;;  %v3741_v16 = vmul.f32 %v8589_v44, %v3721_v39 }
 0xf88   :  { %v6177_v17 = vpop.eup %6176  ;;  %v3722_v5 = vmul.f32 %v6175_v60, %v8551_v63  ;;  %v3760_v32 = vadd.f32 %v8594_v25, %v3740_v2 }
 0xf89   :  { %v3723_v13 = vmul.f32 %v6177_v17, %v8545_v36  ;;  %v3761_v63 = vadd.f32 %v8594_v25, %v3741_v16 }
 0xf8a   :  { %5759 = vmatmul.mubr.msk.f32.gmra.mxu0 %vm59_vm0, %v3755_v15  ;;  %v3742_v0 = vmul.f32 %v8589_v44, %v3722_v5 }
 0xf8b   :  { %5761 = vmatprep.mubr.msk.f32.mxu0 %vm59_vm0, %v3756_v29  ;;  %v6179_v53 = vpop.eup %6178  ;;  %v3743_v54 = vmul.f32 %v8589_v44, %v3723_v13 }
 0xf8c   :  { %v6181_v41 = vpop.eup %6180  ;;  %v3724_v31 = vmul.f32 %v6179_v53, %v8563_v3  ;;  %v3762_v35 = vadd.f32 %v8594_v25, %v3742_v0 }
 0xf8d   :  { %v3725_v45 = vmul.f32 %v6181_v41, %v8557_v26  ;;  %v3763_v3 = vadd.f32 %v8594_v25, %v3743_v54 }
 0xf8e   :  { %5762 = vmatmul.mubr.msk.f32.gmra.mxu0 %vm59_vm0, %v3757_v48  ;;  %v3744_v36 = vmul.f32 %v8589_v44, %v3724_v31 }
 0xf8f   :  { %5764 = vmatprep.mubr.msk.f32.mxu0 %vm59_vm0, %v3758_v12  ;;  %v3745_v18 = vmul.f32 %v8589_v44, %v3725_v45  ;;  %v3987_v44 = vld [vmem:[%s8979_s3 + $0x10] sm:$0xff] }
 0xf90   :  { %v3764_v19 = vadd.f32 %v8594_v25, %v3744_v36  ;;  %5786 = vmatprep.subr.mxu1 %v3987_v44 }
 0xf91   :  { %v3765_v26 = vadd.f32 %v8594_v25, %v3745_v18  ;;  %5787 = vmatpush3.msra.mxu1 %v3987_v44  ;;  %v3985_v25 = vld [vmem:[%s8979_s3] sm:$0xff] }
 0xf92   :  { %5765 = vmatmul.mubr.msk.f32.gmra.mxu0 %vm59_vm0, %v3759_v33  ;;  %5788 = vmatprep.subr.mxu1 %v3986_v37 }
 0xf93   :  { %5767 = vmatprep.mubr.msk.f32.mxu0 %vm59_vm0, %v3760_v32  ;;  %5789 = vmatpush3.msra.mxu1 %v3986_v37 }
 0xf94   :  { %5790 = vmatprep.subr.mxu1 %v3985_v25 }
 0xf95   :  { %5791 = vmatpush3.msra.mxu1 %v3985_v25 }
 0xf96   :  { %5768 = vmatmul.mubr.msk.f32.gmra.mxu0 %vm59_vm0, %v3761_v63 }
 0xf97   :  { %5770 = vmatprep.mubr.msk.f32.mxu0 %vm59_vm0, %v3762_v35 }
 0xf9a   :  { %5771 = vmatmul.mubr.msk.f32.gmra.mxu0 %vm59_vm0, %v3763_v3 }
 0xf9b   :  { %5773 = vmatprep.mubr.msk.f32.mxu0 %vm59_vm0, %v3764_v19 }
 0xf9e   :  { %5774 = vmatmul.mubr.msk.f32.gmra.mxu0 %vm59_vm0, %v3765_v26 }
0x1042   :  { %v5754_v30 = vpop.f32.mrf.mxu0 }
0x1043   :  { %v3896_v56 = vadd.f32 %v5754_v30, %v3769_v23 }
0x1044   :  { %v3890_v47 = vpop.f32.mrf.mxu0 }
0x1045   :  { %v3891_v1 = vadd.f32 %v3890_v47, %v3769_v23  ;;  %v3970_v21 = vmax.f32 %v3896_v56, 0.0 }
0x1046   :  { %v5757_v46 = vpop.f32.mrf.mxu0 }
0x1047   :  { %v3969_v58 = vmax.f32 %v3891_v1, 0.0  ;;  %v3906_v15 = vadd.f32 %v5757_v46, %v3769_v23  ;;  %v3995_v46 = vsub.s32 7, %v9102_v10 }
0x1048   :  { %v3900_v40 = vpop.f32.mrf.mxu0 }
0x1049   :  { %v3901_v9 = vadd.f32 %v3900_v40, %v3769_v23  ;;  %5792 = vmatprep.mubr.msk.f32.mxu1 %vm3997_vm4, %v3969_v58  ;;  %v3972_v34 = vmax.f32 %v3906_v15, 0.0  ;;  %v8696_v58 = vrot.slane %v8343_v24, %v3995_v46 }
0x104a   :  { %v5760_v55 = vpop.f32.mrf.mxu0  ;;  %5793 = vmatmul.mubr.msk.f32.vlgmr.msra.gmra.mxu1 %vm3997_vm4, %v3970_v21 }
0x104b   :  { %v3971_v29 = vmax.f32 %v3901_v9, 0.0  ;;  %v3916_v6 = vadd.f32 %v5760_v55, %v3769_v23 }
0x104c   :  { %v3910_v60 = vpop.f32.mrf.mxu0 }
0x104d   :  { %v3911_v48 = vadd.f32 %v3910_v60, %v3769_v23  ;;  %5795 = vmatprep.mubr.msk.f32.mxu1 %vm3997_vm4, %v3971_v29  ;;  %v3974_v17 = vmax.f32 %v3916_v6, 0.0 }
0x104e   :  { %v5763_v20 = vpop.f32.mrf.mxu0  ;;  %5796 = vmatmul.mubr.msk.f32.gmra.mxu1 %vm3997_vm4, %v3972_v34 }
0x104f   :  { %v3973_v39 = vmax.f32 %v3911_v48, 0.0  ;;  %v3926_v12 = vadd.f32 %v5763_v20, %v3769_v23 }
0x1050   :  { %v3920_v2 = vpop.f32.mrf.mxu0 }
0x1051   :  { %v3921_v5 = vadd.f32 %v3920_v2, %v3769_v23  ;;  %5798 = vmatprep.mubr.msk.f32.mxu1 %vm3997_vm4, %v3973_v39  ;;  %v3976_v16 = vmax.f32 %v3926_v12, 0.0 }
0x1052   :  { %v5766_v53 = vpop.f32.mrf.mxu0  ;;  %5799 = vmatmul.mubr.msk.f32.gmra.mxu1 %vm3997_vm4, %v3974_v17 }
0x1053   :  { %v3975_v33 = vmax.f32 %v3921_v5, 0.0  ;;  %v3936_v13 = vadd.f32 %v5766_v53, %v3769_v23 }
0x1054   :  { %v3930_v41 = vpop.f32.mrf.mxu0 }
0x1055   :  { %v3931_v32 = vadd.f32 %v3930_v41, %v3769_v23  ;;  %5801 = vmatprep.mubr.msk.f32.mxu1 %vm3997_vm4, %v3975_v33  ;;  %v3978_v63 = vmax.f32 %v3936_v13, 0.0 }
0x1056   :  { %v5769_v0 = vpop.f32.mrf.mxu0  ;;  %5802 = vmatmul.mubr.msk.f32.gmra.mxu1 %vm3997_vm4, %v3976_v16 }
0x1057   :  { %v3977_v31 = vmax.f32 %v3931_v32, 0.0  ;;  %v3946_v54 = vadd.f32 %v5769_v0, %v3769_v23 }
0x1058   :  { %v3940_v45 = vpop.f32.mrf.mxu0 }
0x1059   :  { %v3941_v35 = vadd.f32 %v3940_v45, %v3769_v23  ;;  %5804 = vmatprep.mubr.msk.f32.mxu1 %vm3997_vm4, %v3977_v31  ;;  %v3980_v18 = vmax.f32 %v3946_v54, 0.0 }
0x105a   :  { %v5772_v36 = vpop.f32.mrf.mxu0  ;;  %5805 = vmatmul.mubr.msk.f32.gmra.mxu1 %vm3997_vm4, %v3978_v63 }
0x105b   :  { %v3979_v3 = vmax.f32 %v3941_v35, 0.0  ;;  %v3956_v19 = vadd.f32 %v5772_v36, %v3769_v23 }
0x105c   :  { %v3950_v26 = vpop.f32.mrf.mxu0 }
0x105d   :  { %v3951_v50 = vadd.f32 %v3950_v26, %v3769_v23  ;;  %5807 = vmatprep.mubr.msk.f32.mxu1 %vm3997_vm4, %v3979_v3  ;;  %v3982_v25 = vmax.f32 %v3956_v19, 0.0 }
0x105e   :  { %v5775_v44 = vpop.f32.mrf.mxu0  ;;  %5808 = vmatmul.mubr.msk.f32.gmra.mxu1 %vm3997_vm4, %v3980_v18 }
0x105f   :  { %v3981_v37 = vmax.f32 %v3951_v50, 0.0  ;;  %v3966_v57 = vadd.f32 %v5775_v44, %v3769_v23 }
0x1060   :  { %v3960_v30 = vpop.f32.mrf.mxu0 }
0x1061   :  { %v3961_v56 = vadd.f32 %v3960_v30, %v3769_v23  ;;  %5810 = vmatprep.mubr.msk.f32.mxu1 %vm3997_vm4, %v3981_v37  ;;  %v3984_v1 = vmax.f32 %v3966_v57, 0.0 }
0x1062   :  { %5811 = vmatmul.mubr.msk.f32.gmra.mxu1 %vm3997_vm4, %v3982_v25 }
0x1063   :  { %v3983_v47 = vmax.f32 %v3961_v56, 0.0 }
0x1065   :  { %5813 = vmatprep.mubr.msk.f32.mxu1 %vm3997_vm4, %v3983_v47 }
0x1066   :  { %5814 = vmatmul.mubr.msk.f32.gmra.mxu1 %vm3997_vm4, %v3984_v1 }
0x110a   :  { %v5794_v21 = vpop.f32.mrf.mxu1 }
0x110b   :  { %v4118_v15 = vadd.f32 %v5794_v21, %v8696_v58 }
0x110c   :  { %v4112_v40 = vpop.f32.mrf.mxu1 }
0x110d   :  { %v8700_v23 = vadd.f32 %v4118_v15, %v8352_v51  ;;  %v4113_v9 = vadd.f32 %v4112_v40, %v8696_v58 }
0x110e   :  { %v5797_v55 = vpop.f32.mrf.mxu1 }
0x110f   :  { %v8704_v29 = vadd.f32 %v4113_v9, %v8358_v11  ;;  %v4128_v34 = vadd.f32 %v5797_v55, %v8696_v58  ;;  %v4210_v6 = vsel %vm59_vm0, %v8700_v23, 0.0 }
0x1110   :  { %4211 = vadd.xlane.f32.xlu0 %v4210_v6  ;;  %v4122_v24 = vpop.f32.mrf.mxu1 }
0x1111   :  { %v8710_v60 = vadd.f32 %v4128_v34, %v8368_v61  ;;  %v4123_v48 = vadd.f32 %v4122_v24, %v8696_v58  ;;  %v4207_v51 = vsel %vm59_vm0, %v8704_v29, 0.0 }
0x1112   :  { %v5800_v20 = vpop.f32.mrf.mxu1  ;;  %4208 = vadd.xlane.f32.xlu1 %v4207_v51 }
0x1113   :  { %v8716_v11 = vadd.f32 %v4123_v48, %v8374_v42  ;;  %v4138_v39 = vadd.f32 %v5800_v20, %v8696_v58  ;;  %v4216_v5 = vsel %vm59_vm0, %v8710_v60, 0.0 }
0x1114   :  { %v4132_v17 = vpop.f32.mrf.mxu1 }
0x1115   :  { %v8720_v12 = vadd.f32 %v4138_v39, %v8382_v49  ;;  %v4133_v2 = vadd.f32 %v4132_v17, %v8696_v58  ;;  %v4213_v61 = vsel %vm59_vm0, %v8716_v11, 0.0 }
0x1116   :  { %v5803_v53 = vpop.f32.mrf.mxu1  ;;  %4214 = vadd.xlane.f32.xlu0 %v4213_v61  ;;  %4217 = vadd.xlane.f32.xlu1 %v4216_v5 }
0x1117   :  { %v8728_v42 = vadd.f32 %v4133_v2, %v8390_v7  ;;  %v4148_v33 = vadd.f32 %v5803_v53, %v8696_v58  ;;  %v4222_v32 = vsel %vm59_vm0, %v8720_v12, 0.0 }
0x1118   :  { %v4142_v16 = vpop.f32.mrf.mxu1 }
0x1119   :  { %v8732_v49 = vadd.f32 %v4148_v33, %v8398_v59  ;;  %v4143_v13 = vadd.f32 %v4142_v16, %v8696_v58  ;;  %v4219_v41 = vsel %vm59_vm0, %v8728_v42, 0.0 }
0x111a   :  { %v5806_v0 = vpop.f32.mrf.mxu1  ;;  %4220 = vadd.xlane.f32.xlu0 %v4219_v41  ;;  %4223 = vadd.xlane.f32.xlu1 %v4222_v32 }
0x111b   :  { %v8740_v7 = vadd.f32 %v4143_v13, %v8406_v43  ;;  %v4158_v31 = vadd.f32 %v5806_v0, %v8696_v58  ;;  %v4228_v35 = vsel %vm59_vm0, %v8732_v49, 0.0 }
0x111c   :  { %v4152_v63 = vpop.f32.mrf.mxu1 }
0x111d   :  { %v8744_v59 = vadd.f32 %v4158_v31, %v8414_v27  ;;  %v4153_v54 = vadd.f32 %v4152_v63, %v8696_v58  ;;  %v4225_v45 = vsel %vm59_vm0, %v8740_v7, 0.0 }
0x111e   :  { %v5809_v36 = vpop.f32.mrf.mxu1  ;;  %4226 = vadd.xlane.f32.xlu0 %v4225_v45  ;;  %4229 = vadd.xlane.f32.xlu1 %v4228_v35 }
0x111f   :  { %v8752_v43 = vadd.f32 %v4153_v54, %v8422_v28  ;;  %v4168_v3 = vadd.f32 %v5809_v36, %v8696_v58  ;;  %v4234_v50 = vsel %vm59_vm0, %v8744_v59, 0.0 }
0x1120   :  { %v4162_v18 = vpop.f32.mrf.mxu1 }
0x1121   :  { %v8756_v27 = vadd.f32 %v4168_v3, %v8430_v52  ;;  %v4163_v19 = vadd.f32 %v4162_v18, %v8696_v58  ;;  %v4231_v26 = vsel %vm59_vm0, %v8752_v43, 0.0 }
0x1122   :  { %v5812_v44 = vpop.f32.mrf.mxu1  ;;  %4232 = vadd.xlane.f32.xlu0 %v4231_v26  ;;  %4235 = vadd.xlane.f32.xlu1 %v4234_v50 }
0x1123   :  { %v8764_v28 = vadd.f32 %v4163_v19, %v8438_v4  ;;  %v4178_v37 = vadd.f32 %v5812_v44, %v8696_v58  ;;  %v4240_v56 = vsel %vm59_vm0, %v8756_v27, 0.0 }
0x1124   :  { %v4172_v25 = vpop.f32.mrf.mxu1 }
0x1125   :  { %v8768_v52 = vadd.f32 %v4178_v37, %v8446_v38  ;;  %v4173_v57 = vadd.f32 %v4172_v25, %v8696_v58  ;;  %v4237_v30 = vsel %vm59_vm0, %v8764_v28, 0.0 }
0x1126   :  { %v5815_v47 = vpop.f32.mrf.mxu1  ;;  %4238 = vadd.xlane.f32.xlu0 %v4237_v30  ;;  %4241 = vadd.xlane.f32.xlu1 %v4240_v56 }
0x1127   :  { %v8776_v4 = vadd.f32 %v4173_v57, %v8454_v22  ;;  %v4188_v1 = vadd.f32 %v5815_v47, %v8696_v58  ;;  %v4246_v40 = vsel %vm59_vm0, %v8768_v52, 0.0 }
0x1128   :  { %v4182_v46 = vpop.f32.mrf.mxu1 }
0x1129   :  { %v8780_v38 = vadd.f32 %v4188_v1, %v8462_v14  ;;  %v4183_v21 = vadd.f32 %v4182_v46, %v8696_v58  ;;  %v4243_v15 = vsel %vm59_vm0, %v8776_v4, 0.0 }
0x112a   :  { %4244 = vadd.xlane.f32.xlu0 %v4243_v15  ;;  %4247 = vadd.xlane.f32.xlu1 %v4246_v40 }
0x112b   :  { %v8788_v9 = vadd.f32 %v4183_v21, %v8470_v62  ;;  %v4252_v14 = vsel %vm59_vm0, %v8780_v38, 0.0 }
0x112d   :  { %v4249_v22 = vsel %vm59_vm0, %v8788_v9, 0.0 }
0x112e   :  { %4250 = vadd.xlane.f32.xlu0 %v4249_v22  ;;  %4253 = vadd.xlane.f32.xlu1 %v4252_v14 }
0x1199   :  { %v4212_v58 = vpop.xlane.xlu0 %4211 }
0x119a   :  { %v4256_v55 = vmul.f32 0.0625, %v4212_v58 }
0x119b   :  { %v4209_v34 = vpop.xlane.xlu1 %4208 }
0x119c   :  { %v8795_v6 = vsub.f32 %v8700_v23, %v4256_v55  ;;  %v4255_v24 = vmul.f32 0.0625, %v4209_v34 }
0x119e   :  { %v8798_v48 = vsub.f32 %v8704_v29, %v4255_v24  ;;  %v4288_v62 = vmul.f32 %v8795_v6, %v8795_v6 }
0x119f   :  { %v4215_v51 = vpop.xlane.xlu0 %4214  ;;  %v4218_v20 = vpop.xlane.xlu1 %4217 }
0x11a0   :  { %v4257_v39 = vmul.f32 0.0625, %v4215_v51  ;;  %v4258_v17 = vmul.f32 0.0625, %v4218_v20  ;;  %v4306_v2 = vsel %vm59_vm0, %v4288_v62, 0.0  ;;  %v4287_v61 = vmul.f32 %v8798_v48, %v8798_v48 }
0x11a1   :  { %4307 = vadd.xlane.f32.xlu1 %v4306_v2 }
0x11a2   :  { %v8806_v23 = vsub.f32 %v8716_v11, %v4257_v39  ;;  %v8809_v5 = vsub.f32 %v8710_v60, %v4258_v17  ;;  %v4303_v29 = vsel %vm59_vm0, %v4287_v61, 0.0 }
0x11a3   :  { %v4221_v53 = vpop.xlane.xlu0 %4220  ;;  %4304 = vadd.xlane.f32.xlu0 %v4303_v29  ;;  %v4224_v33 = vpop.xlane.xlu1 %4223 }
0x11a4   :  { %v4259_v16 = vmul.f32 0.0625, %v4221_v53  ;;  %v4260_v13 = vmul.f32 0.0625, %v4224_v33  ;;  %v4289_v41 = vmul.f32 %v8806_v23, %v8806_v23  ;;  %v4290_v32 = vmul.f32 %v8809_v5, %v8809_v5 }
0x11a6   :  { %v8817_v0 = vsub.f32 %v8728_v42, %v4259_v16  ;;  %v8820_v11 = vsub.f32 %v8720_v12, %v4260_v13  ;;  %v4309_v60 = vsel %vm59_vm0, %v4289_v41, 0.0  ;;  %v4312_v31 = vsel %vm59_vm0, %v4290_v32, 0.0 }
0x11a7   :  { %v4227_v63 = vpop.xlane.xlu0 %4226  ;;  %4310 = vadd.xlane.f32.xlu0 %v4309_v60  ;;  %4313 = vadd.xlane.f32.xlu1 %v4312_v31  ;;  %v4230_v54 = vpop.xlane.xlu1 %4229  ;;  %v40_v31 = vld [vmem:[%s8978_s2 + $0x8] sm:$0xff] }
0x11a8   :  { %v4261_v45 = vmul.f32 0.0625, %v4227_v63  ;;  %v4262_v35 = vmul.f32 0.0625, %v4230_v54  ;;  %v4291_v36 = vmul.f32 %v8817_v0, %v8817_v0  ;;  %v4292_v42 = vmul.f32 %v8820_v11, %v8820_v11 }
0x11aa   :  { %v8829_v3 = vsub.f32 %v8740_v7, %v4261_v45  ;;  %v8832_v12 = vsub.f32 %v8732_v49, %v4262_v35  ;;  %v4315_v18 = vsel %vm59_vm0, %v4291_v36, 0.0  ;;  %v4318_v19 = vsel %vm59_vm0, %v4292_v42, 0.0 }
0x11ab   :  { %v4233_v26 = vpop.xlane.xlu0 %4232  ;;  %4316 = vadd.xlane.f32.xlu0 %v4315_v18  ;;  %4319 = vadd.xlane.f32.xlu1 %v4318_v19  ;;  %v4236_v50 = vpop.xlane.xlu1 %4235 }
0x11ac   :  { %v4263_v44 = vmul.f32 0.0625, %v4233_v26  ;;  %v4264_v37 = vmul.f32 0.0625, %v4236_v50  ;;  %v4293_v25 = vmul.f32 %v8829_v3, %v8829_v3  ;;  %v4294_v7 = vmul.f32 %v8832_v12, %v8832_v12 }
0x11ae   :  { %v8841_v57 = vsub.f32 %v8752_v43, %v4263_v44  ;;  %v8844_v49 = vsub.f32 %v8744_v59, %v4264_v37  ;;  %v4321_v30 = vsel %vm59_vm0, %v4293_v25, 0.0  ;;  %v4324_v56 = vsel %vm59_vm0, %v4294_v7, 0.0 }
0x11af   :  { %v4239_v47 = vpop.xlane.xlu0 %4238  ;;  %4322 = vadd.xlane.f32.xlu0 %v4321_v30  ;;  %4325 = vadd.xlane.f32.xlu1 %v4324_v56  ;;  %v4242_v1 = vpop.xlane.xlu1 %4241 }
0x11b0   :  { %v4265_v46 = vmul.f32 0.0625, %v4239_v47  ;;  %v4266_v21 = vmul.f32 0.0625, %v4242_v1  ;;  %v4295_v15 = vmul.f32 %v8841_v57, %v8841_v57  ;;  %v4296_v43 = vmul.f32 %v8844_v49, %v8844_v49 }
0x11b2   :  { %v8853_v40 = vsub.f32 %v8764_v28, %v4265_v46  ;;  %v8856_v59 = vsub.f32 %v8756_v27, %v4266_v21  ;;  %v4327_v22 = vsel %vm59_vm0, %v4295_v15, 0.0  ;;  %v4330_v14 = vsel %vm59_vm0, %v4296_v43, 0.0 }
0x11b3   :  { %v4245_v58 = vpop.xlane.xlu0 %4244  ;;  %4328 = vadd.xlane.f32.xlu0 %v4327_v22  ;;  %4331 = vadd.xlane.f32.xlu1 %v4330_v14  ;;  %v4248_v55 = vpop.xlane.xlu1 %4247  ;;  %v4417_v46 = vsub.s32 4, %v9102_v10 }
0x11b4   :  { %v4267_v34 = vmul.f32 0.0625, %v4245_v58  ;;  %v4268_v24 = vmul.f32 0.0625, %v4248_v55  ;;  %v4297_v62 = vmul.f32 %v8853_v40, %v8853_v40  ;;  %v4298_v28 = vmul.f32 %v8856_v59, %v8856_v59 }
0x11b6   :  { %v8865_v51 = vsub.f32 %v8776_v4, %v4267_v34  ;;  %v8868_v27 = vsub.f32 %v8768_v52, %v4268_v24  ;;  %v4333_v20 = vsel %vm59_vm0, %v4297_v62, 0.0  ;;  %v4336_v39 = vsel %vm59_vm0, %v4298_v28, 0.0  ;;  %v6249_v34 = vld [vmem:[%s8980_s4] sm:$0xff]  ;;  %s6288_s4 = smov [#allocation2]  }
0x11b7   :  { %v4251_v17 = vpop.xlane.xlu0 %4250  ;;  %4334 = vadd.xlane.f32.xlu0 %v4333_v20  ;;  %4337 = vadd.xlane.f32.xlu1 %v4336_v39  ;;  %v4254_v2 = vpop.xlane.xlu1 %4253  ;;  %v8900_v24 = vrot.slane %v6249_v34, %v4417_v46  ;;  %v4437_v20 = vsub.s32 5, %v9102_v10  ;;  %s4673_s19 = sshll.u32 %s6288_s4, 4  ;;  %s4674_s19 = int_to_ptr.vmem [resolvable:$true] %s4673_s19 }
0x11b8   :  { %v4269_v61 = vmul.f32 0.0625, %v4251_v17  ;;  %v4270_v29 = vmul.f32 0.0625, %v4254_v2  ;;  %v4299_v53 = vmul.f32 %v8865_v51, %v8865_v51  ;;  %v4300_v4 = vmul.f32 %v8868_v27, %v8868_v27  ;;  %s6250_s20 = scalar_lea.vmem %s4674_s19, 2048  ;;  %p6255_p1 = scmp.lt.s32.totalorder %s4674_s19, %s4674_s19 }
0x11b9   :  { %p6251_p0 = scmp.ne.s32.totalorder %s4674_s19, %s6250_s20  ;;  %p6256_p2 = scmp.lt.s32.totalorder %s6250_s20, %s6250_s20 }
0x11ba   :  { %v8877_v33 = vsub.f32 %v8788_v9, %v4269_v61  ;;  %v8880_v52 = vsub.f32 %v8780_v38, %v4270_v29  ;;  %v4339_v16 = vsel %vm59_vm0, %v4299_v53, 0.0  ;;  %v4342_v13 = vsel %vm59_vm0, %v4300_v4, 0.0  ;;  %v42_v38 = vld [vmem:[%s8978_s2 + $0x18] sm:$0xff] }
0x11bb   :  { %4340 = vadd.xlane.f32.xlu0 %v4339_v16  ;;  %4343 = vadd.xlane.f32.xlu1 %v4342_v13  ;;  %p6257_p3 = por %p6256_p2, %p6255_p1 }
0x11bc   :  { %v4301_v41 = vmul.f32 %v8877_v33, %v8877_v33  ;;  %v4302_v32 = vmul.f32 %v8880_v52, %v8880_v52  ;;  %5816 = vmatprep.subr.mxu0 %v42_v38 }
0x11bd   :  { %5817 = vmatpush3.msra.mxu0 %v42_v38  ;;  %p6258_p4 = pnand %p6257_p3, %p6251_p0 }
0x11be   :  { %v4345_v60 = vsel %vm59_vm0, %v4301_v41, 0.0  ;;  %v4348_v9 = vsel %vm59_vm0, %v4302_v32, 0.0  ;;  %5818 = vmatprep.subr.mxu0 %v40_v31  ;;  %v8906_v32 = vrot.slane %v6249_v34, %v4437_v20 }
0x11bf   :  { %4346 = vadd.xlane.f32.xlu0 %v4345_v60  ;;  %4349 = vadd.xlane.f32.xlu1 %v4348_v9 }
0x11c0   :  { %5819 = vmatpush3.msra.mxu0 %v40_v31 }
0x122a   :  { %v4308_v63 = vpop.xlane.xlu1 %4307 }
0x122b   :  { %v4352_v54 = vmul.f32 0.0625, %v4308_v63 }
0x122c   :  { %v4305_v45 = vpop.xlane.xlu0 %4304 }
0x122d   :  { %v4368_v35 = vadd.f32 1e-05, %v4352_v54  ;;  %v4351_v36 = vmul.f32 0.0625, %v4305_v45 }
0x122f   :  { %6182 = vrsqrt.f32 %v4368_v35  ;;  %v4367_v42 = vadd.f32 1e-05, %v4351_v36 }
0x1230   :  { %v4311_v18 = vpop.xlane.xlu0 %4310  ;;  %v4314_v19 = vpop.xlane.xlu1 %4313 }
0x1231   :  { %6184 = vrsqrt.f32 %v4367_v42  ;;  %v4353_v26 = vmul.f32 0.0625, %v4311_v18  ;;  %v4354_v50 = vmul.f32 0.0625, %v4314_v19 }
0x1233   :  { %v4369_v44 = vadd.f32 1e-05, %v4353_v26  ;;  %v4370_v37 = vadd.f32 1e-05, %v4354_v50 }
0x1234   :  { %v4317_v25 = vpop.xlane.xlu0 %4316  ;;  %v4320_v7 = vpop.xlane.xlu1 %4319 }
0x1235   :  { %6186 = vrsqrt.f32 %v4369_v44  ;;  %v4355_v30 = vmul.f32 0.0625, %v4317_v25  ;;  %v4356_v56 = vmul.f32 0.0625, %v4320_v7 }
0x1236   :  { %6188 = vrsqrt.f32 %v4370_v37 }
0x1237   :  { %v4371_v47 = vadd.f32 1e-05, %v4355_v30  ;;  %v4372_v1 = vadd.f32 1e-05, %v4356_v56 }
0x1238   :  { %v4323_v21 = vpop.xlane.xlu0 %4322  ;;  %v4326_v15 = vpop.xlane.xlu1 %4325 }
0x1239   :  { %6190 = vrsqrt.f32 %v4371_v47  ;;  %v4357_v43 = vmul.f32 0.0625, %v4323_v21  ;;  %v4358_v22 = vmul.f32 0.0625, %v4326_v15 }
0x123a   :  { %6192 = vrsqrt.f32 %v4372_v1 }
0x123b   :  { %v4373_v14 = vadd.f32 1e-05, %v4357_v43  ;;  %v4374_v58 = vadd.f32 1e-05, %v4358_v22 }
0x123c   :  { %v6183_v55 = vpop.eup %6182  ;;  %v4329_v62 = vpop.xlane.xlu0 %4328 }
0x123d   :  { %v4332_v28 = vpop.xlane.xlu1 %4331  ;;  %v4400_v39 = vmul.f32 %v6183_v55, %v8795_v6  ;;  %6194 = vrsqrt.f32 %v4373_v14  ;;  %v4359_v17 = vmul.f32 0.0625, %v4329_v62 }
0x123e   :  { %v4360_v2 = vmul.f32 0.0625, %v4332_v28  ;;  %v6185_v61 = vpop.eup %6184  ;;  %6196 = vrsqrt.f32 %v4374_v58 }
0x123f   :  { %v4375_v29 = vadd.f32 1e-05, %v4359_v17  ;;  %v4399_v4 = vmul.f32 %v6185_v61, %v8798_v48  ;;  %v4420_v16 = vmul.f32 %v8900_v24, %v4400_v39 }
0x1240   :  { %v4376_v53 = vadd.f32 1e-05, %v4360_v2  ;;  %v4335_v13 = vpop.xlane.xlu0 %4334 }
0x1241   :  { %v4338_v41 = vpop.xlane.xlu1 %4337  ;;  %6198 = vrsqrt.f32 %v4375_v29  ;;  %v4361_v60 = vmul.f32 0.0625, %v4335_v13  ;;  %v4419_v6 = vmul.f32 %v8900_v24, %v4399_v4  ;;  %v4440_v42 = vadd.f32 %v8906_v32, %v4420_v16 }
0x1242   :  { %v4362_v9 = vmul.f32 0.0625, %v4338_v41  ;;  %v6187_v38 = vpop.eup %6186  ;;  %6200 = vrsqrt.f32 %v4376_v53 }
0x1243   :  { %v6189_v31 = vpop.eup %6188  ;;  %v4377_v63 = vadd.f32 1e-05, %v4361_v60  ;;  %v4439_v45 = vadd.f32 %v8906_v32, %v4419_v6  ;;  %v4401_v48 = vmul.f32 %v6187_v38, %v8806_v23 }
0x1244   :  { %v4378_v54 = vadd.f32 1e-05, %v4362_v9  ;;  %v4341_v35 = vpop.xlane.xlu0 %4340  ;;  %v4402_v18 = vmul.f32 %v6189_v31, %v8809_v5 }
0x1245   :  { %v4344_v36 = vpop.xlane.xlu1 %4343  ;;  %6202 = vrsqrt.f32 %v4377_v63  ;;  %v4363_v19 = vmul.f32 0.0625, %v4341_v35  ;;  %5820 = vmatprep.mubr.msk.f32.mxu0 %vm59_vm0, %v4439_v45  ;;  %v4421_v50 = vmul.f32 %v8900_v24, %v4401_v48 }
0x1246   :  { %v4364_v26 = vmul.f32 0.0625, %v4344_v36  ;;  %v6191_v44 = vpop.eup %6190  ;;  %6204 = vrsqrt.f32 %v4378_v54  ;;  %5821 = vmatmul.mubr.msk.f32.vlgmr.msra.gmra.mxu0 %vm59_vm0, %v4440_v42  ;;  %v4422_v37 = vmul.f32 %v8900_v24, %v4402_v18 }
0x1247   :  { %v6193_v23 = vpop.eup %6192  ;;  %v4379_v25 = vadd.f32 1e-05, %v4363_v19  ;;  %v4441_v30 = vadd.f32 %v8906_v32, %v4421_v50  ;;  %v4403_v5 = vmul.f32 %v6191_v44, %v8817_v0 }
0x1248   :  { %v4380_v7 = vadd.f32 1e-05, %v4364_v26  ;;  %v4347_v56 = vpop.xlane.xlu0 %4346  ;;  %v4442_v1 = vadd.f32 %v8906_v32, %v4422_v37  ;;  %v4404_v46 = vmul.f32 %v6193_v23, %v8820_v11 }
0x1249   :  { %v4350_v47 = vpop.xlane.xlu1 %4349  ;;  %6206 = vrsqrt.f32 %v4379_v25  ;;  %v4365_v21 = vmul.f32 0.0625, %v4347_v56  ;;  %5823 = vmatprep.mubr.msk.f32.mxu0 %vm59_vm0, %v4441_v30  ;;  %v4423_v43 = vmul.f32 %v8900_v24, %v4403_v5 }
0x124a   :  { %v4366_v15 = vmul.f32 0.0625, %v4350_v47  ;;  %v6195_v22 = vpop.eup %6194  ;;  %6208 = vrsqrt.f32 %v4380_v7  ;;  %5824 = vmatmul.mubr.msk.f32.gmra.mxu0 %vm59_vm0, %v4442_v1  ;;  %v4424_v14 = vmul.f32 %v8900_v24, %v4404_v46 }
0x124b   :  { %v6197_v0 = vpop.eup %6196  ;;  %v4381_v58 = vadd.f32 1e-05, %v4365_v21  ;;  %v4443_v34 = vadd.f32 %v8906_v32, %v4423_v43  ;;  %v4405_v11 = vmul.f32 %v6195_v22, %v8829_v3 }
0x124c   :  { %v4382_v55 = vadd.f32 1e-05, %v4366_v15  ;;  %v4444_v62 = vadd.f32 %v8906_v32, %v4424_v14  ;;  %v4406_v28 = vmul.f32 %v6197_v0, %v8832_v12 }
0x124d   :  { %6210 = vrsqrt.f32 %v4381_v58  ;;  %5826 = vmatprep.mubr.msk.f32.mxu0 %vm59_vm0, %v4443_v34  ;;  %v4425_v20 = vmul.f32 %v8900_v24, %v4405_v11 }
0x124e   :  { %v6199_v39 = vpop.eup %6198  ;;  %6212 = vrsqrt.f32 %v4382_v55  ;;  %5827 = vmatmul.mubr.msk.f32.gmra.mxu0 %vm59_vm0, %v4444_v62  ;;  %v4426_v17 = vmul.f32 %v8900_v24, %v4406_v28 }
0x124f   :  { %v6201_v2 = vpop.eup %6200  ;;  %v4445_v61 = vadd.f32 %v8906_v32, %v4425_v20  ;;  %v4407_v3 = vmul.f32 %v6199_v39, %v8841_v57 }
0x1250   :  { %v4446_v29 = vadd.f32 %v8906_v32, %v4426_v17  ;;  %v4408_v12 = vmul.f32 %v6201_v2, %v8844_v49 }
0x1251   :  { %5829 = vmatprep.mubr.msk.f32.mxu0 %vm59_vm0, %v4445_v61  ;;  %v4427_v53 = vmul.f32 %v8900_v24, %v4407_v3 }
0x1252   :  { %v6203_v4 = vpop.eup %6202  ;;  %5830 = vmatmul.mubr.msk.f32.gmra.mxu0 %vm59_vm0, %v4446_v29  ;;  %v4428_v16 = vmul.f32 %v8900_v24, %v4408_v12 }
0x1253   :  { %v6205_v13 = vpop.eup %6204  ;;  %v4447_v41 = vadd.f32 %v8906_v32, %v4427_v53  ;;  %v4409_v60 = vmul.f32 %v6203_v4, %v8853_v40 }
0x1254   :  { %v4448_v57 = vadd.f32 %v8906_v32, %v4428_v16  ;;  %v4410_v9 = vmul.f32 %v6205_v13, %v8856_v59 }
0x1255   :  { %5832 = vmatprep.mubr.msk.f32.mxu0 %vm59_vm0, %v4447_v41  ;;  %v4429_v49 = vmul.f32 %v8900_v24, %v4409_v60 }
0x1256   :  { %v6207_v6 = vpop.eup %6206  ;;  %5833 = vmatmul.mubr.msk.f32.gmra.mxu0 %vm59_vm0, %v4448_v57  ;;  %v4430_v38 = vmul.f32 %v8900_v24, %v4410_v9 }
0x1257   :  { %v6209_v31 = vpop.eup %6208  ;;  %v4449_v63 = vadd.f32 %v8906_v32, %v4429_v49  ;;  %v4411_v54 = vmul.f32 %v6207_v6, %v8865_v51 }
0x1258   :  { %v4450_v40 = vadd.f32 %v8906_v32, %v4430_v38  ;;  %v4412_v45 = vmul.f32 %v6209_v31, %v8868_v27 }
0x1259   :  { %5835 = vmatprep.mubr.msk.f32.mxu0 %vm59_vm0, %v4449_v63  ;;  %v4431_v59 = vmul.f32 %v8900_v24, %v4411_v54 }
0x125a   :  { %v6211_v48 = vpop.eup %6210  ;;  %5836 = vmatmul.mubr.msk.f32.gmra.mxu0 %vm59_vm0, %v4450_v40  ;;  %v4432_v35 = vmul.f32 %v8900_v24, %v4412_v45 }
0x125b   :  { %v6213_v36 = vpop.eup %6212  ;;  %v4451_v42 = vadd.f32 %v8906_v32, %v4431_v59  ;;  %v4413_v18 = vmul.f32 %v6211_v48, %v8877_v33  ;;  %v9104_v33 = vsub.s32 1, %v9102_v10 }
0x125c   :  { %v4452_v51 = vadd.f32 %v8906_v32, %v4432_v35  ;;  %v4414_v19 = vmul.f32 %v6213_v36, %v8880_v52 }
0x125d   :  { %5838 = vmatprep.mubr.msk.f32.mxu0 %vm59_vm0, %v4451_v42  ;;  %v4433_v27 = vmul.f32 %v8900_v24, %v4413_v18  ;;  %v4458_v52 = vrot.slane %v8673_v8, %v9104_v33 }
0x125e   :  { %5839 = vmatmul.mubr.msk.f32.gmra.mxu0 %vm59_vm0, %v4452_v51  ;;  %v4434_v26 = vmul.f32 %v8900_v24, %v4414_v19 }
0x125f   :  { %v4453_v50 = vadd.f32 %v8906_v32, %v4433_v27 }
0x1260   :  { %v4454_v44 = vadd.f32 %v8906_v32, %v4434_v26 }
0x1261   :  { %5841 = vmatprep.mubr.msk.f32.mxu0 %vm59_vm0, %v4453_v50 }
0x1262   :  { %5842 = vmatmul.mubr.msk.f32.gmra.mxu0 %vm59_vm0, %v4454_v44 }
0x1306   :  { %v5822_v37 = vpop.f32.mrf.mxu0 }
0x1307   :  { %v4579_v23 = vadd.f32 %v5822_v37, %v4458_v52 }
0x1308   :  { %v4573_v25 = vpop.f32.mrf.mxu0 }
0x1309   :  { %4653 = vst [vmem:[#allocation2 + $0x8] sm:$0xff] %v4579_v23  ;;  %v4574_v7 = vadd.f32 %v4573_v25, %v4458_v52 }
0x130a   :  { %v5825_v30 = vpop.f32.mrf.mxu0 }
0x130b   :  { %4652 = vst [vmem:[#allocation2] sm:$0xff] %v4574_v7  ;;  %v4589_v24 = vadd.f32 %v5825_v30, %v4458_v52 }
0x130c   :  { %v4583_v5 = vpop.f32.mrf.mxu0 }
0x130d   :  { %4655 = vst [vmem:[#allocation2 + $0x18] sm:$0xff] %v4589_v24  ;;  %v4584_v56 = vadd.f32 %v4583_v5, %v4458_v52 }
0x130e   :  { %v5828_v32 = vpop.f32.mrf.mxu0 }
0x130f   :  { %4654 = vst [vmem:[#allocation2 + $0x10] sm:$0xff] %v4584_v56  ;;  %v4599_v47 = vadd.f32 %v5828_v32, %v4458_v52 }
0x1310   :  { %v4593_v1 = vpop.f32.mrf.mxu0 }
0x1311   :  { %4657 = vst [vmem:[#allocation2 + $0x28] sm:$0xff] %v4599_v47  ;;  %v4594_v46 = vadd.f32 %v4593_v1, %v4458_v52 }
0x1312   :  { %v5831_v10 = vpop.f32.mrf.mxu0 }
0x1313   :  { %4656 = vst [vmem:[#allocation2 + $0x20] sm:$0xff] %v4594_v46  ;;  %v4609_v8 = vadd.f32 %v5831_v10, %v4458_v52 }
0x1314   :  { %v4603_v21 = vpop.f32.mrf.mxu0 }
0x1315   :  { %4659 = vst [vmem:[#allocation2 + $0x38] sm:$0xff] %v4609_v8  ;;  %v4604_v15 = vadd.f32 %v4603_v21, %v4458_v52 }
0x1316   :  { %v5834_v43 = vpop.f32.mrf.mxu0 }
0x1317   :  { %4658 = vst [vmem:[#allocation2 + $0x30] sm:$0xff] %v4604_v15  ;;  %v4619_v22 = vadd.f32 %v5834_v43, %v4458_v52 }
0x1318   :  { %v4613_v14 = vpop.f32.mrf.mxu0 }
0x1319   :  { %4661 = vst [vmem:[#allocation2 + $0x48] sm:$0xff] %v4619_v22  ;;  %v4614_v0 = vadd.f32 %v4613_v14, %v4458_v52 }
0x131a   :  { %v5837_v58 = vpop.f32.mrf.mxu0 }
0x131b   :  { %4660 = vst [vmem:[#allocation2 + $0x40] sm:$0xff] %v4614_v0  ;;  %v4629_v55 = vadd.f32 %v5837_v58, %v4458_v52 }
0x131c   :  { %v4623_v34 = vpop.f32.mrf.mxu0 }
0x131d   :  { %4663 = vst [vmem:[#allocation2 + $0x58] sm:$0xff] %v4629_v55  ;;  %v4624_v11 = vadd.f32 %v4623_v34, %v4458_v52 }
0x131e   :  { %v5840_v62 = vpop.f32.mrf.mxu0 }
0x131f   :  { %4662 = vst [vmem:[#allocation2 + $0x50] sm:$0xff] %v4624_v11  ;;  %v4639_v28 = vadd.f32 %v5840_v62, %v4458_v52 }
0x1320   :  { %v4633_v20 = vpop.f32.mrf.mxu0 }
0x1321   :  { %4665 = vst [vmem:[#allocation2 + $0x68] sm:$0xff] %v4639_v28  ;;  %v4634_v39 = vadd.f32 %v4633_v20, %v4458_v52 }
0x1322   :  { %v5843_v17 = vpop.f32.mrf.mxu0 }
0x1323   :  { %4664 = vst [vmem:[#allocation2 + $0x60] sm:$0xff] %v4634_v39  ;;  %v4649_v2 = vadd.f32 %v5843_v17, %v4458_v52 }
0x1324   :  { %v4643_v61 = vpop.f32.mrf.mxu0 }
0x1325   :  { %4667 = vst [vmem:[#allocation2 + $0x78] sm:$0xff] %v4649_v2  ;;  %v4644_v3 = vadd.f32 %v4643_v61, %v4458_v52 }
0x1327   :  { %4666 = vst [vmem:[#allocation2 + $0x70] sm:$0xff] %v4644_v3 }
0x1328   :  { %6261 = shalt.err (!%p6258_p4)
}
0x1329   :  { %s6289_s22 = smov 128  }
0x132a   :  { %4679 = dma.vmem_to_hbm [thread:$0]  %s4674_s19, 2048, %s8981_s5, [#allocation3], %s6289_s22, %s6289_s22, %s6285_s10  }
0x132b   :  { %6270 = dma.done.wait [#allocation3], 2048  }
0x132c   :  { %6271 = vsyncadd [#allocation3], 4294965248 }
0x132d   :  { %4683 = vsyncpa [#allocation3], 1 }

</bundles_post_ra>
